<compile_context>
chip_gen: v5e
topology: v5e:2x2
jax: 0.10.0
libtpu: 0.0.40
codegen_flags: <defaults>
</compile_context>

<pallas_src>
import numpy as np
import jax
import jax.numpy as jnp
from jax import lax
from jax.experimental import pallas as pl
from jax.experimental.pallas import tpu as pltpu

# ----------------------------- configuration --------------------------------
IMAGE_SIZE = 16
PATCH_SIZE = 4
CHANNELS = 4
DIM = 32
DEPTH = 2
HEADS = 4
DIM_HEAD = 8
MLP_DIM = 64
NUM_CLASSES = 10
BATCH = 2

NUM_PATCHES = (IMAGE_SIZE // PATCH_SIZE) ** 2         # 16
PATCH_DIM = CHANNELS * PATCH_SIZE * PATCH_SIZE         # 64
SEQ = NUM_PATCHES + 1                                  # 17 (cls + patches)
SEQ_PAD = 24                                           # per-image rows, 8-aligned
INNER = HEADS * DIM_HEAD                               # 32
QKVO_W = 2 * INNER + HEADS * DIM                       # 192 lanes: q(32)|k(32)|vo(128)
SCALE = DIM_HEAD ** -0.5
LN_EPS = 1e-5                                          # torch.nn.LayerNorm default
LANES = 128
W_LANES = 192
MAX_FOLD_ROWS = 128                                    # cap folded rows near 128

# ---- packed bf16 matmul-weight slab (width 192); row offsets all 16-aligned
W_PE = 0
W_QKVO = W_PE + PATCH_DIM        # 64
W_FF1 = W_QKVO + DIM             # 96
W_FF2 = W_FF1 + DIM              # 128
W_HEAD = W_FF2 + MLP_DIM         # 192
W_ROWS = W_HEAD + DIM            # 224

# ---- packed f32 vector/constant slab (width 128)
(V_PE_G1, V_PE_B1, V_PE_B, V_PE_G2, V_PE_B2,
 V_ATTN_G, V_ATTN_B, V_OUT_B,
 V_FF_G, V_FF_B, V_FF_B1, V_FF_B2,
 V_FIN_G, V_FIN_B, V_HEAD_B) = range(15)
VEC_ROWS = 16                    # 15 vector rows, padded to a multiple of 8


# ------------------------------ kernel helpers -------------------------------
def _layernorm(x, g, b):
    mu = jnp.mean(x, axis=-1, keepdims=True)
    var = jnp.mean(jnp.square(x - mu), axis=-1, keepdims=True)
    return (x - mu) * lax.rsqrt(var + LN_EPS) * g + b


def _erf(x):
    # Abramowitz & Stegun 7.1.26 (|err| < 1.5e-7).
    # TODO(synk): swap for lax.erf if/when a Mosaic lowering is guaranteed.
    a1, a2, a3, a4, a5 = 0.254829592, -0.284496736, 1.421413741, -1.453152027, 1.061405429
    p = 0.3275911
    sgn = jnp.where(x >= 0.0, 1.0, -1.0)
    ax = jnp.abs(x)
    t = 1.0 / (1.0 + p * ax)
    poly = ((((a5 * t + a4) * t + a3) * t + a2) * t + a1) * t
    return sgn * (1.0 - poly * jnp.exp(-ax * ax))


def _gelu_exact(x):
    # nn.GELU() default = exact (erf) gelu.
    return 0.5 * x * (1.0 + _erf(x * (1.0 / np.sqrt(2.0))))


def _softmax_last(x):
    x = x - jnp.max(x, axis=-1, keepdims=True)
    e = jnp.exp(x)
    return e * pl.reciprocal(jnp.sum(e, axis=-1, keepdims=True), approx=True)


def _mm(a, w_bf16):
    # bf16 MXU operands, f32 accumulation.
    return jnp.dot(a.astype(jnp.bfloat16), w_bf16, preferred_element_type=jnp.float32)


# --------------------------------- kernel ------------------------------------
def _make_kernel(bb):
    """Kernel processing `bb` images, each SEQ_PAD rows, stacked on the sublane axis."""
    rows = bb * SEQ_PAD
    pos_off = VEC_ROWS
    mask_off = pos_off + rows

    def kernel(p_ref, w_ref, v_ref, o_ref):
        # 1-row constant vectors are loaded on demand (cheap vld, no vreg lock-up).
        def vrow(r, width):
            return v_ref[r:r + 1, :width]

        # --- to_patch_embedding: LayerNorm -> Linear -> LayerNorm ---
        p = p_ref[...]                                              # (rows, PATCH_DIM)
        e = _layernorm(p, vrow(V_PE_G1, PATCH_DIM), vrow(V_PE_B1, PATCH_DIM))
        e = _mm(e, w_ref[W_PE:W_PE + PATCH_DIM, :DIM]) + vrow(V_PE_B, DIM)
        e = _layernorm(e, vrow(V_PE_G2, DIM), vrow(V_PE_B2, DIM))   # (rows, DIM)

        # --- cat(cls, patches) + pos_embedding; cls/pad rows zeroed by keep mask ---
        x = (e * v_ref[pos_off:pos_off + rows, DIM:2 * DIM]
             + v_ref[pos_off:pos_off + rows, :DIM])

        # --- Transformer: same attn/ff weights reused `depth` times (as in ref) ---
        for _ in range(DEPTH):
            # ---- Attention (q pre-scaled; out_w pre-folded into vo columns) ----
            h = _layernorm(x, vrow(V_ATTN_G, DIM), vrow(V_ATTN_B, DIM))
            qkvo = _mm(h, w_ref[W_QKVO:W_QKVO + DIM, :QKVO_W])      # (rows, 192)
            attn_acc = None
            for hh in range(HEADS):
                q = qkvo[:, hh * DIM_HEAD:(hh + 1) * DIM_HEAD]
                k = qkvo[:, INNER + hh * DIM_HEAD:INNER + (hh + 1) * DIM_HEAD]
                vo = qkvo[:, 2 * INNER + hh * DIM:2 * INNER + (hh + 1) * DIM]
                s = lax.dot_general(q.astype(jnp.bfloat16), k.astype(jnp.bfloat16),
                                    (((1,), (1,)), ((), ())),
                                    preferred_element_type=jnp.float32)
                # f32 block-diagonal mask: no cross-image / pad-column attention
                s = s + v_ref[mask_off:mask_off + rows, :rows]
                a = _softmax_last(s)                                 # (rows, rows)
                av = jnp.dot(a.astype(jnp.bfloat16), vo.astype(jnp.bfloat16),
                             preferred_element_type=jnp.float32)     # (rows, DIM)
                attn_acc = av if attn_acc is None else attn_acc + av
            x = x + attn_acc + vrow(V_OUT_B, DIM)

            # ---- FeedForward ----
            h = _layernorm(x, vrow(V_FF_G, DIM), vrow(V_FF_B, DIM))
            h = _mm(h, w_ref[W_FF1:W_FF1 + DIM, :MLP_DIM]) + vrow(V_FF_B1, MLP_DIM)
            h = _gelu_exact(h)
            x = x + _mm(h, w_ref[W_FF2:W_FF2 + MLP_DIM, :DIM]) + vrow(V_FF_B2, DIM)

        # --- final norm + mlp_head over ALL rows, lane-dense store; cls rows are
        #     picked out in the wrapper (no in-kernel row gather/relayout) ---
        xf = _layernorm(x, vrow(V_FIN_G, DIM), vrow(V_FIN_B, DIM))
        o_ref[...] = _mm(xf, w_ref[W_HEAD:W_HEAD + DIM, :LANES]) + vrow(V_HEAD_B, LANES)

    return kernel


# ------------------------------- JAX wrapper ----------------------------------
def _img_to_patches(img):
    # 'b c (h p1) (w p2) -> b (h w) (p1 p2 c)'
    B, C, H, W = img.shape
    x = img.reshape(B, C, H // PATCH_SIZE, PATCH_SIZE, W // PATCH_SIZE, PATCH_SIZE)
    x = jnp.transpose(x, (0, 2, 4, 3, 5, 1))              # b, h, w, p1, p2, c
    return x.reshape(B, NUM_PATCHES, PATCH_DIM)


def _pad_block(a, rows, lanes):
    r, c = a.shape
    return jnp.pad(a, ((0, rows - r), (0, lanes - c)))


def _pack_weight_slabs(p, bb):
    rows = bb * SEQ_PAD

    # --- fold out_w into the V columns (per head) and SCALE into the Q columns ---
    vo_w = jnp.concatenate(
        [p["qkv_w_flat"][:, 2 * INNER + h * DIM_HEAD:2 * INNER + (h + 1) * DIM_HEAD]
         @ p["out_w_flat"][h * DIM_HEAD:(h + 1) * DIM_HEAD, :]
         for h in range(HEADS)], axis=1)                             # (DIM, 128)
    qkvo_w = jnp.concatenate([
        p["qkv_w_flat"][:, :INNER] * SCALE,                          # q (pre-scaled)
        p["qkv_w_flat"][:, INNER:2 * INNER],                         # k
        vo_w,                                                        # vo
    ], axis=1)                                                       # (DIM, 192)

    # bf16 matmul-weight slab
    w_slab = jnp.concatenate([
        _pad_block(p["pe_w"], PATCH_DIM, W_LANES),
        _pad_block(qkvo_w, DIM, W_LANES),
        _pad_block(p["ff_w1"], DIM, W_LANES),
        _pad_block(p["ff_w2"], MLP_DIM, W_LANES),
        _pad_block(p["head_w"], DIM, W_LANES),
    ], axis=0).astype(jnp.bfloat16)
    assert w_slab.shape == (W_ROWS, W_LANES)

    # f32 vector / constant slab
    vec_rows = jnp.concatenate([
        _pad_block(p["pe_g1"], 1, LANES), _pad_block(p["pe_b1"], 1, LANES),
        _pad_block(p["pe_b"], 1, LANES), _pad_block(p["pe_g2"], 1, LANES),
        _pad_block(p["pe_b2"], 1, LANES),
        _pad_block(p["attn_g"], 1, LANES), _pad_block(p["attn_b"], 1, LANES),
        _pad_block(p["out_b"], 1, LANES),
        _pad_block(p["ff_g"], 1, LANES), _pad_block(p["ff_b"], 1, LANES),
        _pad_block(p["ff_b1"], 1, LANES), _pad_block(p["ff_b2"], 1, LANES),
        _pad_block(p["fin_g"], 1, LANES), _pad_block(p["fin_b"], 1, LANES),
        _pad_block(p["head_b"], 1, LANES),
    ], axis=0)
    vec_rows = jnp.pad(vec_rows, ((0, VEC_ROWS - vec_rows.shape[0]), (0, 0)))

    # pos embedding per image (cls pre-added at row 0, zero at pad rows) + keep mask
    pos_pad = jnp.concatenate([
        p["pos"].at[0].add(p["cls"][0]),
        jnp.zeros((SEQ_PAD - SEQ, DIM), jnp.float32)], axis=0)       # (SEQ_PAD, DIM)
    pos_cls = jnp.tile(pos_pad, (bb, 1))                             # (rows, DIM)
    keep_pat = jnp.zeros((SEQ_PAD, DIM), jnp.float32).at[1:SEQ, :].set(1.0)
    keep = jnp.tile(keep_pat, (bb, 1))                               # (rows, DIM)
    pk_block = _pad_block(jnp.concatenate([pos_cls, keep], axis=1), rows, LANES)

    # block-diagonal + pad-column mask (always needed: pad rows must not be attended)
    ridx = jnp.arange(rows)
    img_id = ridx // SEQ_PAD
    real_col = (ridx % SEQ_PAD) < SEQ
    ok = (img_id[:, None] == img_id[None, :]) & real_col[None, :]
    amask = jnp.where(ok, 0.0, -1e30).astype(jnp.float32)            # (rows, rows)
    mask_block = _pad_block(amask, rows, LANES)

    v_slab = jnp.concatenate([vec_rows, pk_block, mask_block], axis=0).astype(jnp.float32)
    return w_slab, v_slab


def _chip_parallel_grid_cores():
    """How many TensorCores a parallel grid axis can be sharded across."""
    try:
        kind = jax.devices()[0].device_kind.lower()
    except Exception:
        return 1
    if any(tag in kind for tag in ("v7", "7x", "v4", "v5p")):
        return 2
    if kind.strip() in ("tpu v5", "tpu5"):        # some v5p spellings drop the 'p'
        return 2
    return 1


def _default_batch_per_step(batch):
    """Fold the batch (rows capped near 128); keep >= num_cores grid steps on multi-TC."""
    cores = _chip_parallel_grid_cores()
    max_bb = max(1, MAX_FOLD_ROWS // SEQ_PAD)     # 5 with SEQ_PAD=24
    target = min(max_bb, batch)
    if cores > 1:
        target = min(target, max(1, batch // cores))
    for bb in range(target, 0, -1):               # largest divisor of batch <= target
        if batch % bb == 0:
            return bb
    return 1


def vit_forward(img, params, batch_per_step=None):
    B = img.shape[0]
    bb = batch_per_step if batch_per_step is not None else _default_batch_per_step(B)
    bb = max(1, min(bb, B))
    assert B % bb == 0, "batch_per_step must divide the batch"
    rows = bb * SEQ_PAD
    n_steps = B // bb

    patches = _img_to_patches(img).astype(jnp.float32)               # (B, 16, 64)
    # row 0 per image = cls placeholder (zero), rows 1..16 = patches, 17..23 = pad
    blocks = jnp.concatenate([
        jnp.zeros((B, 1, PATCH_DIM), jnp.float32),
        patches,
        jnp.zeros((B, SEQ_PAD - SEQ, PATCH_DIM), jnp.float32)], axis=1)
    blocks = blocks.reshape(n_steps, rows, PATCH_DIM)

    w_slab, v_slab = _pack_weight_slabs(params, bb)

    flops_step = (
        2 * rows * PATCH_DIM * DIM
        + DEPTH * (2 * rows * DIM * QKVO_W
                   + HEADS * (2 * rows * rows * DIM_HEAD + 2 * rows * rows * DIM)
                   + 4 * rows * DIM * MLP_DIM)
        + 2 * rows * DIM * LANES)
    trans_step = DEPTH * (HEADS * rows * rows + rows * MLP_DIM)
    bytes_accessed = int(blocks.size * 4 + w_slab.size * 2 + v_slab.size * 4
                         + n_steps * rows * LANES * 4)

    out = pl.pallas_call(
        _make_kernel(bb),
        out_shape=jax.ShapeDtypeStruct((n_steps, rows, LANES), jnp.float32),
        grid=(n_steps,),
        in_specs=[
            pl.BlockSpec((None, rows, PATCH_DIM), lambda g: (g, 0, 0)),
            pl.BlockSpec(w_slab.shape, lambda g: (0, 0)),   # resident (constant map)
            pl.BlockSpec(v_slab.shape, lambda g: (0, 0)),   # resident (constant map)
        ],
        out_specs=pl.BlockSpec((None, rows, LANES), lambda g: (g, 0, 0)),
        compiler_params=pltpu.CompilerParams(dimension_semantics=("parallel",)),
        cost_estimate=pl.CostEstimate(flops=int(n_steps * flops_step),
                                      transcendentals=int(n_steps * trans_step),
                                      bytes_accessed=bytes_accessed),
    )(blocks, w_slab, v_slab)

    # cls rows sit at sublane-aligned offsets b*SEQ_PAD; slice them out host-side.
    logits = out.reshape(n_steps, bb, SEQ_PAD, LANES)[:, :, 0, :NUM_CLASSES]
    logits = logits.reshape(B, NUM_CLASSES)
    attn_weights = []   # reference's arg-order quirk makes vis falsy -> always []
    return logits, attn_weights


# --------------------------- parameter construction --------------------------
def init_params(key):
    ks = jax.random.split(key, 16)

    def nrm(k, shape, std=0.02):
        return jax.random.normal(k, shape, jnp.float32) * std

    ones = lambda s: jnp.ones(s, jnp.float32)
    zeros = lambda s: jnp.zeros(s, jnp.float32)

    return dict(
        # patch embedding
        pe_g1=ones((1, PATCH_DIM)), pe_b1=zeros((1, PATCH_DIM)),
        pe_w=nrm(ks[0], (PATCH_DIM, DIM)), pe_b=nrm(ks[1], (1, DIM)),
        pe_g2=ones((1, DIM)), pe_b2=zeros((1, DIM)),
        # tokens
        cls=jax.random.normal(ks[2], (1, DIM), jnp.float32),
        pos=jax.random.normal(ks[3], (SEQ, DIM), jnp.float32),
        # attention (shared across depth)
        attn_g=ones((1, DIM)), attn_b=zeros((1, DIM)),
        qkv_w_flat=nrm(ks[4], (DIM, 3 * INNER)),
        out_w_flat=nrm(ks[5], (INNER, DIM)), out_b=nrm(ks[6], (1, DIM)),
        # feedforward (shared across depth)
        ff_g=ones((1, DIM)), ff_b=zeros((1, DIM)),
        ff_w1=nrm(ks[7], (DIM, MLP_DIM)), ff_b1=nrm(ks[8], (1, MLP_DIM)),
        ff_w2=nrm(ks[9], (MLP_DIM, DIM)), ff_b2=nrm(ks[10], (1, DIM)),
        # final norm + head
        fin_g=ones((1, DIM)), fin_b=zeros((1, DIM)),
        head_w=nrm(ks[11], (DIM, NUM_CLASSES)), head_b=nrm(ks[12], (1, NUM_CLASSES)),
    )


# ------------------------------ pure-JAX reference ----------------------------
def vit_reference(img, p):
    x = _img_to_patches(img).astype(jnp.float32)
    B = x.shape[0]

    def ln(t, g, b):
        mu = jnp.mean(t, axis=-1, keepdims=True)
        var = jnp.mean(jnp.square(t - mu), axis=-1, keepdims=True)
        return (t - mu) / jnp.sqrt(var + LN_EPS) * g + b

    x = ln(x, p["pe_g1"][0], p["pe_b1"][0])
    x = x @ p["pe_w"] + p["pe_b"][0]
    x = ln(x, p["pe_g2"][0], p["pe_b2"][0])
    cls = jnp.broadcast_to(p["cls"][None], (B, 1, DIM))
    x = jnp.concatenate([cls, x], axis=1) + p["pos"][None]
    for _ in range(DEPTH):
        h = ln(x, p["attn_g"][0], p["attn_b"][0])
        qkv = h @ p["qkv_w_flat"]
        q, k, v = jnp.split(qkv, 3, axis=-1)
        sh = lambda t: t.reshape(B, SEQ, HEADS, DIM_HEAD).transpose(0, 2, 1, 3)
        q, k, v = sh(q), sh(k), sh(v)
        dots = jnp.einsum("bhnd,bhmd->bhnm", q, k) * SCALE
        attn = jax.nn.softmax(dots, axis=-1)
        o = jnp.einsum("bhnm,bhmd->bhnd", attn, v)
        o = o.transpose(0, 2, 1, 3).reshape(B, SEQ, INNER)
        o = o @ p["out_w_flat"] + p["out_b"][0]
        x = o + x
        h = ln(x, p["ff_g"][0], p["ff_b"][0])
        h = h @ p["ff_w1"] + p["ff_b1"][0]
        h = jax.nn.gelu(h, approximate=False)
        h = h @ p["ff_w2"] + p["ff_b2"][0]
        x = h + x
    x = ln(x, p["fin_g"][0], p["fin_b"][0])
    x = x[:, 0]
    return x @ p["head_w"] + p["head_b"][0]


# ----------------------------------- main -------------------------------------
if __name__ == "__main__":
    key = jax.random.PRNGKey(0)
    k_img, k_par = jax.random.split(key)
    img = jax.random.normal(k_img, (BATCH, CHANNELS, IMAGE_SIZE, IMAGE_SIZE), jnp.float32)
    params = init_params(k_par)

    ref = jax.block_until_ready(vit_reference(img, params))

    # Kernel uses bf16 MXU operands with f32 accumulation (and host-folded weights);
    # the reference is pure f32, so compare at bf16-level tolerance.
    RTOL = ATOL = 1e-2

    # device-adaptive default path
    logits, attn_weights = vit_forward(img, params)
    logits = jax.block_until_ready(logits)
    assert logits.shape == (BATCH, NUM_CLASSES)
    assert attn_weights == []
    np.testing.assert_allclose(np.asarray(logits), np.asarray(ref), rtol=RTOL, atol=ATOL)

    # explicitly exercise both variants: parallel batch grid (bb=1, multi-TC style)
    # and fully batch-folded single step (bb=BATCH, v5e/v6e style)
    for bb in (1, BATCH):
        lg, _ = vit_forward(img, params, batch_per_step=bb)
        lg = jax.block_until_ready(lg)
        np.testing.assert_allclose(np.asarray(lg), np.asarray(ref), rtol=RTOL, atol=ATOL)

    print("KERNEL_OK")
</pallas_src>

<mosaic_0001>
module attributes {stable_mosaic.version = 11 : i64} {
  func.func @kernel(%arg0: i32, %arg1: memref<1x48x64xf32, #tpu.memory_space<vmem>>, %arg2: memref<224x192xbf16, #tpu.memory_space<vmem>>, %arg3: memref<112x128xf32, #tpu.memory_space<vmem>>, %arg4: memref<1x48x128xf32, #tpu.memory_space<vmem>>) attributes {dimension_semantics = [#tpu.dimension_semantics<parallel>], iteration_bounds = array<i64: 1>, scalar_prefetch = 0 : i64, scratch_operands = 0 : i64, tpu.core_type = #tpu.core_type<tc>, window_params = [{transform_indices = @transform_0, window_bounds = array<i64: 1, 48, 64>}, {pipeline_mode = #tpu.pipeline_mode<synchronous>, transform_indices = @transform_1, window_bounds = array<i64: 224, 192>}, {pipeline_mode = #tpu.pipeline_mode<synchronous>, transform_indices = @transform_2, window_bounds = array<i64: 112, 128>}, {transform_indices = @transform_3, window_bounds = array<i64: 1, 48, 128>}]} {
    %c0 = arith.constant 0 : index
    %c0_0 = arith.constant 0 : index
    %c0_1 = arith.constant 0 : index
    %0 = vector.load %arg1[%c0, %c0_0, %c0_1] : memref<1x48x64xf32, #tpu.memory_space<vmem>>, vector<1x48x64xf32>
    %1 = vector.shape_cast %0 : vector<1x48x64xf32> to vector<48x64xf32>
    %c0_2 = arith.constant 0 : index
    %c0_3 = arith.constant 0 : index
    %2 = vector.load %arg3[%c0_2, %c0_3] : memref<112x128xf32, #tpu.memory_space<vmem>>, vector<1x64xf32>
    %c1 = arith.constant 1 : index
    %c0_4 = arith.constant 0 : index
    %3 = vector.load %arg3[%c1, %c0_4] : memref<112x128xf32, #tpu.memory_space<vmem>>, vector<1x64xf32>
    %cst = arith.constant dense<0.000000e+00> : vector<48xf32>
    %4 = vector.multi_reduction <add>, %1, %cst [1] : vector<48x64xf32> to vector<48xf32>
    %5 = vector.shape_cast %4 : vector<48xf32> to vector<48x1xf32>
    %cst_5 = arith.constant 6.400000e+01 : f32
    %6 = vector.broadcast %cst_5 : f32 to vector<48x1xf32>
    %7 = arith.divf %5, %6 : vector<48x1xf32>
    %8 = vector.broadcast %7 : vector<48x1xf32> to vector<48x64xf32>
    %9 = arith.subf %1, %8 : vector<48x64xf32>
    %10 = arith.mulf %9, %9 : vector<48x64xf32>
    %cst_6 = arith.constant dense<0.000000e+00> : vector<48xf32>
    %11 = vector.multi_reduction <add>, %10, %cst_6 [1] : vector<48x64xf32> to vector<48xf32>
    %12 = vector.shape_cast %11 : vector<48xf32> to vector<48x1xf32>
    %cst_7 = arith.constant 6.400000e+01 : f32
    %13 = vector.broadcast %cst_7 : f32 to vector<48x1xf32>
    %14 = arith.divf %12, %13 : vector<48x1xf32>
    %15 = vector.broadcast %7 : vector<48x1xf32> to vector<48x64xf32>
    %16 = arith.subf %1, %15 : vector<48x64xf32>
    %cst_8 = arith.constant 9.99999974E-6 : f32
    %17 = vector.broadcast %cst_8 : f32 to vector<48x1xf32>
    %18 = arith.addf %14, %17 : vector<48x1xf32>
    %19 = math.rsqrt %18 : vector<48x1xf32>
    %20 = vector.broadcast %19 : vector<48x1xf32> to vector<48x64xf32>
    %21 = arith.mulf %16, %20 : vector<48x64xf32>
    %22 = vector.broadcast %2 : vector<1x64xf32> to vector<48x64xf32>
    %23 = arith.mulf %21, %22 : vector<48x64xf32>
    %24 = vector.broadcast %3 : vector<1x64xf32> to vector<48x64xf32>
    %25 = arith.addf %23, %24 : vector<48x64xf32>
    %c0_9 = arith.constant 0 : index
    %c0_10 = arith.constant 0 : index
    %26 = vector.load %arg2[%c0_9, %c0_10] : memref<224x192xbf16, #tpu.memory_space<vmem>>, vector<64x32xbf16>
    %27 = arith.truncf %25 : vector<48x64xf32> to vector<48x64xbf16>
    %cst_11 = arith.constant dense<0.000000e+00> : vector<48x32xf32>
    %28 = tpu.matmul %27, %26, %cst_11 {dimension_numbers = #tpu.dot_dimension_numbers<[1], [0], [0], [1], [0, 0, 1, 1], [], []>} : vector<48x64xbf16>, vector<64x32xbf16>, vector<48x32xf32> -> vector<48x32xf32>
    %c2 = arith.constant 2 : index
    %c0_12 = arith.constant 0 : index
    %29 = vector.load %arg3[%c2, %c0_12] : memref<112x128xf32, #tpu.memory_space<vmem>>, vector<1x32xf32>
    %30 = vector.broadcast %29 : vector<1x32xf32> to vector<48x32xf32>
    %31 = arith.addf %28, %30 : vector<48x32xf32>
    %c3 = arith.constant 3 : index
    %c0_13 = arith.constant 0 : index
    %32 = vector.load %arg3[%c3, %c0_13] : memref<112x128xf32, #tpu.memory_space<vmem>>, vector<1x32xf32>
    %c4 = arith.constant 4 : index
    %c0_14 = arith.constant 0 : index
    %33 = vector.load %arg3[%c4, %c0_14] : memref<112x128xf32, #tpu.memory_space<vmem>>, vector<1x32xf32>
    %cst_15 = arith.constant dense<0.000000e+00> : vector<48xf32>
    %34 = vector.multi_reduction <add>, %31, %cst_15 [1] : vector<48x32xf32> to vector<48xf32>
    %35 = vector.shape_cast %34 : vector<48xf32> to vector<48x1xf32>
    %cst_16 = arith.constant 3.200000e+01 : f32
    %36 = vector.broadcast %cst_16 : f32 to vector<48x1xf32>
    %37 = arith.divf %35, %36 : vector<48x1xf32>
    %38 = vector.broadcast %37 : vector<48x1xf32> to vector<48x32xf32>
    %39 = arith.subf %31, %38 : vector<48x32xf32>
    %40 = arith.mulf %39, %39 : vector<48x32xf32>
    %cst_17 = arith.constant dense<0.000000e+00> : vector<48xf32>
    %41 = vector.multi_reduction <add>, %40, %cst_17 [1] : vector<48x32xf32> to vector<48xf32>
    %42 = vector.shape_cast %41 : vector<48xf32> to vector<48x1xf32>
    %cst_18 = arith.constant 3.200000e+01 : f32
    %43 = vector.broadcast %cst_18 : f32 to vector<48x1xf32>
    %44 = arith.divf %42, %43 : vector<48x1xf32>
    %45 = vector.broadcast %37 : vector<48x1xf32> to vector<48x32xf32>
    %46 = arith.subf %31, %45 : vector<48x32xf32>
    %cst_19 = arith.constant 9.99999974E-6 : f32
    %47 = vector.broadcast %cst_19 : f32 to vector<48x1xf32>
    %48 = arith.addf %44, %47 : vector<48x1xf32>
    %49 = math.rsqrt %48 : vector<48x1xf32>
    %50 = vector.broadcast %49 : vector<48x1xf32> to vector<48x32xf32>
    %51 = arith.mulf %46, %50 : vector<48x32xf32>
    %52 = vector.broadcast %32 : vector<1x32xf32> to vector<48x32xf32>
    %53 = arith.mulf %51, %52 : vector<48x32xf32>
    %54 = vector.broadcast %33 : vector<1x32xf32> to vector<48x32xf32>
    %55 = arith.addf %53, %54 : vector<48x32xf32>
    %c16 = arith.constant 16 : index
    %c32 = arith.constant 32 : index
    %56 = vector.load %arg3[%c16, %c32] : memref<112x128xf32, #tpu.memory_space<vmem>>, vector<48x32xf32>
    %57 = arith.mulf %55, %56 : vector<48x32xf32>
    %c16_20 = arith.constant 16 : index
    %c0_21 = arith.constant 0 : index
    %58 = vector.load %arg3[%c16_20, %c0_21] : memref<112x128xf32, #tpu.memory_space<vmem>>, vector<48x32xf32>
    %59 = arith.addf %57, %58 : vector<48x32xf32>
    %c5 = arith.constant 5 : index
    %c0_22 = arith.constant 0 : index
    %60 = vector.load %arg3[%c5, %c0_22] : memref<112x128xf32, #tpu.memory_space<vmem>>, vector<1x32xf32>
    %c6 = arith.constant 6 : index
    %c0_23 = arith.constant 0 : index
    %61 = vector.load %arg3[%c6, %c0_23] : memref<112x128xf32, #tpu.memory_space<vmem>>, vector<1x32xf32>
    %cst_24 = arith.constant dense<0.000000e+00> : vector<48xf32>
    %62 = vector.multi_reduction <add>, %59, %cst_24 [1] : vector<48x32xf32> to vector<48xf32>
    %63 = vector.shape_cast %62 : vector<48xf32> to vector<48x1xf32>
    %cst_25 = arith.constant 3.200000e+01 : f32
    %64 = vector.broadcast %cst_25 : f32 to vector<48x1xf32>
    %65 = arith.divf %63, %64 : vector<48x1xf32>
    %66 = vector.broadcast %65 : vector<48x1xf32> to vector<48x32xf32>
    %67 = arith.subf %59, %66 : vector<48x32xf32>
    %68 = arith.mulf %67, %67 : vector<48x32xf32>
    %cst_26 = arith.constant dense<0.000000e+00> : vector<48xf32>
    %69 = vector.multi_reduction <add>, %68, %cst_26 [1] : vector<48x32xf32> to vector<48xf32>
    %70 = vector.shape_cast %69 : vector<48xf32> to vector<48x1xf32>
    %cst_27 = arith.constant 3.200000e+01 : f32
    %71 = vector.broadcast %cst_27 : f32 to vector<48x1xf32>
    %72 = arith.divf %70, %71 : vector<48x1xf32>
    %73 = vector.broadcast %65 : vector<48x1xf32> to vector<48x32xf32>
    %74 = arith.subf %59, %73 : vector<48x32xf32>
    %cst_28 = arith.constant 9.99999974E-6 : f32
    %75 = vector.broadcast %cst_28 : f32 to vector<48x1xf32>
    %76 = arith.addf %72, %75 : vector<48x1xf32>
    %77 = math.rsqrt %76 : vector<48x1xf32>
    %78 = vector.broadcast %77 : vector<48x1xf32> to vector<48x32xf32>
    %79 = arith.mulf %74, %78 : vector<48x32xf32>
    %80 = vector.broadcast %60 : vector<1x32xf32> to vector<48x32xf32>
    %81 = arith.mulf %79, %80 : vector<48x32xf32>
    %82 = vector.broadcast %61 : vector<1x32xf32> to vector<48x32xf32>
    %83 = arith.addf %81, %82 : vector<48x32xf32>
    %c64 = arith.constant 64 : index
    %c0_29 = arith.constant 0 : index
    %84 = vector.load %arg2[%c64, %c0_29] : memref<224x192xbf16, #tpu.memory_space<vmem>>, vector<32x192xbf16>
    %85 = arith.truncf %83 : vector<48x32xf32> to vector<48x32xbf16>
    %cst_30 = arith.constant dense<0.000000e+00> : vector<48x192xf32>
    %86 = tpu.matmul %85, %84, %cst_30 {dimension_numbers = #tpu.dot_dimension_numbers<[1], [0], [0], [1], [0, 0, 1, 1], [], []>} : vector<48x32xbf16>, vector<32x192xbf16>, vector<48x192xf32> -> vector<48x192xf32>
    %87 = vector.extract_strided_slice %86 {offsets = [0, 0], sizes = [48, 8], strides = [1, 1]} : vector<48x192xf32> to vector<48x8xf32>
    %88 = vector.extract_strided_slice %86 {offsets = [0, 32], sizes = [48, 8], strides = [1, 1]} : vector<48x192xf32> to vector<48x8xf32>
    %89 = vector.extract_strided_slice %86 {offsets = [0, 64], sizes = [48, 32], strides = [1, 1]} : vector<48x192xf32> to vector<48x32xf32>
    %90 = arith.truncf %87 : vector<48x8xf32> to vector<48x8xbf16>
    %91 = arith.truncf %88 : vector<48x8xf32> to vector<48x8xbf16>
    %cst_31 = arith.constant dense<0.000000e+00> : vector<48x48xf32>
    %92 = tpu.matmul %90, %91, %cst_31 {dimension_numbers = #tpu.dot_dimension_numbers<[1], [1], [0], [0], [0, 0, 1, 0], [], []>} : vector<48x8xbf16>, vector<48x8xbf16>, vector<48x48xf32> -> vector<48x48xf32>
    %c64_32 = arith.constant 64 : index
    %c0_33 = arith.constant 0 : index
    %93 = vector.load %arg3[%c64_32, %c0_33] : memref<112x128xf32, #tpu.memory_space<vmem>>, vector<48x48xf32>
    %94 = arith.addf %92, %93 : vector<48x48xf32>
    %cst_34 = arith.constant dense<0xFF800000> : vector<48xf32>
    %95 = vector.multi_reduction <maximumf>, %94, %cst_34 [1] : vector<48x48xf32> to vector<48xf32>
    %96 = vector.shape_cast %95 : vector<48xf32> to vector<48x1xf32>
    %97 = vector.broadcast %96 : vector<48x1xf32> to vector<48x48xf32>
    %98 = arith.subf %94, %97 : vector<48x48xf32>
    %99 = math.exp %98 : vector<48x48xf32>
    %cst_35 = arith.constant dense<0.000000e+00> : vector<48xf32>
    %100 = vector.multi_reduction <add>, %99, %cst_35 [1] : vector<48x48xf32> to vector<48xf32>
    %101 = vector.shape_cast %100 : vector<48xf32> to vector<48x1xf32>
    %102 = tpu.reciprocal %101 {approx = true} : vector<48x1xf32> -> vector<48x1xf32>
    %103 = vector.broadcast %102 : vector<48x1xf32> to vector<48x48xf32>
    %104 = arith.mulf %99, %103 : vector<48x48xf32>
    %105 = arith.truncf %104 : vector<48x48xf32> to vector<48x48xbf16>
    %106 = arith.truncf %89 : vector<48x32xf32> to vector<48x32xbf16>
    %cst_36 = arith.constant dense<0.000000e+00> : vector<48x32xf32>
    %107 = tpu.matmul %105, %106, %cst_36 {dimension_numbers = #tpu.dot_dimension_numbers<[1], [0], [0], [1], [0, 0, 1, 1], [], []>} : vector<48x48xbf16>, vector<48x32xbf16>, vector<48x32xf32> -> vector<48x32xf32>
    %108 = vector.extract_strided_slice %86 {offsets = [0, 8], sizes = [48, 8], strides = [1, 1]} : vector<48x192xf32> to vector<48x8xf32>
    %109 = vector.extract_strided_slice %86 {offsets = [0, 40], sizes = [48, 8], strides = [1, 1]} : vector<48x192xf32> to vector<48x8xf32>
    %110 = vector.extract_strided_slice %86 {offsets = [0, 96], sizes = [48, 32], strides = [1, 1]} : vector<48x192xf32> to vector<48x32xf32>
    %111 = arith.truncf %108 : vector<48x8xf32> to vector<48x8xbf16>
    %112 = arith.truncf %109 : vector<48x8xf32> to vector<48x8xbf16>
    %cst_37 = arith.constant dense<0.000000e+00> : vector<48x48xf32>
    %113 = tpu.matmul %111, %112, %cst_37 {dimension_numbers = #tpu.dot_dimension_numbers<[1], [1], [0], [0], [0, 0, 1, 0], [], []>} : vector<48x8xbf16>, vector<48x8xbf16>, vector<48x48xf32> -> vector<48x48xf32>
    %c64_38 = arith.constant 64 : index
    %c0_39 = arith.constant 0 : index
    %114 = vector.load %arg3[%c64_38, %c0_39] : memref<112x128xf32, #tpu.memory_space<vmem>>, vector<48x48xf32>
    %115 = arith.addf %113, %114 : vector<48x48xf32>
    %cst_40 = arith.constant dense<0xFF800000> : vector<48xf32>
    %116 = vector.multi_reduction <maximumf>, %115, %cst_40 [1] : vector<48x48xf32> to vector<48xf32>
    %117 = vector.shape_cast %116 : vector<48xf32> to vector<48x1xf32>
    %118 = vector.broadcast %117 : vector<48x1xf32> to vector<48x48xf32>
    %119 = arith.subf %115, %118 : vector<48x48xf32>
    %120 = math.exp %119 : vector<48x48xf32>
    %cst_41 = arith.constant dense<0.000000e+00> : vector<48xf32>
    %121 = vector.multi_reduction <add>, %120, %cst_41 [1] : vector<48x48xf32> to vector<48xf32>
    %122 = vector.shape_cast %121 : vector<48xf32> to vector<48x1xf32>
    %123 = tpu.reciprocal %122 {approx = true} : vector<48x1xf32> -> vector<48x1xf32>
    %124 = vector.broadcast %123 : vector<48x1xf32> to vector<48x48xf32>
    %125 = arith.mulf %120, %124 : vector<48x48xf32>
    %126 = arith.truncf %125 : vector<48x48xf32> to vector<48x48xbf16>
    %127 = arith.truncf %110 : vector<48x32xf32> to vector<48x32xbf16>
    %cst_42 = arith.constant dense<0.000000e+00> : vector<48x32xf32>
    %128 = tpu.matmul %126, %127, %cst_42 {dimension_numbers = #tpu.dot_dimension_numbers<[1], [0], [0], [1], [0, 0, 1, 1], [], []>} : vector<48x48xbf16>, vector<48x32xbf16>, vector<48x32xf32> -> vector<48x32xf32>
    %129 = arith.addf %107, %128 : vector<48x32xf32>
    %130 = vector.extract_strided_slice %86 {offsets = [0, 16], sizes = [48, 8], strides = [1, 1]} : vector<48x192xf32> to vector<48x8xf32>
    %131 = vector.extract_strided_slice %86 {offsets = [0, 48], sizes = [48, 8], strides = [1, 1]} : vector<48x192xf32> to vector<48x8xf32>
    %132 = vector.extract_strided_slice %86 {offsets = [0, 128], sizes = [48, 32], strides = [1, 1]} : vector<48x192xf32> to vector<48x32xf32>
    %133 = arith.truncf %130 : vector<48x8xf32> to vector<48x8xbf16>
    %134 = arith.truncf %131 : vector<48x8xf32> to vector<48x8xbf16>
    %cst_43 = arith.constant dense<0.000000e+00> : vector<48x48xf32>
    %135 = tpu.matmul %133, %134, %cst_43 {dimension_numbers = #tpu.dot_dimension_numbers<[1], [1], [0], [0], [0, 0, 1, 0], [], []>} : vector<48x8xbf16>, vector<48x8xbf16>, vector<48x48xf32> -> vector<48x48xf32>
    %c64_44 = arith.constant 64 : index
    %c0_45 = arith.constant 0 : index
    %136 = vector.load %arg3[%c64_44, %c0_45] : memref<112x128xf32, #tpu.memory_space<vmem>>, vector<48x48xf32>
    %137 = arith.addf %135, %136 : vector<48x48xf32>
    %cst_46 = arith.constant dense<0xFF800000> : vector<48xf32>
    %138 = vector.multi_reduction <maximumf>, %137, %cst_46 [1] : vector<48x48xf32> to vector<48xf32>
    %139 = vector.shape_cast %138 : vector<48xf32> to vector<48x1xf32>
    %140 = vector.broadcast %139 : vector<48x1xf32> to vector<48x48xf32>
    %141 = arith.subf %137, %140 : vector<48x48xf32>
    %142 = math.exp %141 : vector<48x48xf32>
    %cst_47 = arith.constant dense<0.000000e+00> : vector<48xf32>
    %143 = vector.multi_reduction <add>, %142, %cst_47 [1] : vector<48x48xf32> to vector<48xf32>
    %144 = vector.shape_cast %143 : vector<48xf32> to vector<48x1xf32>
    %145 = tpu.reciprocal %144 {approx = true} : vector<48x1xf32> -> vector<48x1xf32>
    %146 = vector.broadcast %145 : vector<48x1xf32> to vector<48x48xf32>
    %147 = arith.mulf %142, %146 : vector<48x48xf32>
    %148 = arith.truncf %147 : vector<48x48xf32> to vector<48x48xbf16>
    %149 = arith.truncf %132 : vector<48x32xf32> to vector<48x32xbf16>
    %cst_48 = arith.constant dense<0.000000e+00> : vector<48x32xf32>
    %150 = tpu.matmul %148, %149, %cst_48 {dimension_numbers = #tpu.dot_dimension_numbers<[1], [0], [0], [1], [0, 0, 1, 1], [], []>} : vector<48x48xbf16>, vector<48x32xbf16>, vector<48x32xf32> -> vector<48x32xf32>
    %151 = arith.addf %129, %150 : vector<48x32xf32>
    %152 = vector.extract_strided_slice %86 {offsets = [0, 24], sizes = [48, 8], strides = [1, 1]} : vector<48x192xf32> to vector<48x8xf32>
    %153 = vector.extract_strided_slice %86 {offsets = [0, 56], sizes = [48, 8], strides = [1, 1]} : vector<48x192xf32> to vector<48x8xf32>
    %154 = vector.extract_strided_slice %86 {offsets = [0, 160], sizes = [48, 32], strides = [1, 1]} : vector<48x192xf32> to vector<48x32xf32>
    %155 = arith.truncf %152 : vector<48x8xf32> to vector<48x8xbf16>
    %156 = arith.truncf %153 : vector<48x8xf32> to vector<48x8xbf16>
    %cst_49 = arith.constant dense<0.000000e+00> : vector<48x48xf32>
    %157 = tpu.matmul %155, %156, %cst_49 {dimension_numbers = #tpu.dot_dimension_numbers<[1], [1], [0], [0], [0, 0, 1, 0], [], []>} : vector<48x8xbf16>, vector<48x8xbf16>, vector<48x48xf32> -> vector<48x48xf32>
    %c64_50 = arith.constant 64 : index
    %c0_51 = arith.constant 0 : index
    %158 = vector.load %arg3[%c64_50, %c0_51] : memref<112x128xf32, #tpu.memory_space<vmem>>, vector<48x48xf32>
    %159 = arith.addf %157, %158 : vector<48x48xf32>
    %cst_52 = arith.constant dense<0xFF800000> : vector<48xf32>
    %160 = vector.multi_reduction <maximumf>, %159, %cst_52 [1] : vector<48x48xf32> to vector<48xf32>
    %161 = vector.shape_cast %160 : vector<48xf32> to vector<48x1xf32>
    %162 = vector.broadcast %161 : vector<48x1xf32> to vector<48x48xf32>
    %163 = arith.subf %159, %162 : vector<48x48xf32>
    %164 = math.exp %163 : vector<48x48xf32>
    %cst_53 = arith.constant dense<0.000000e+00> : vector<48xf32>
    %165 = vector.multi_reduction <add>, %164, %cst_53 [1] : vector<48x48xf32> to vector<48xf32>
    %166 = vector.shape_cast %165 : vector<48xf32> to vector<48x1xf32>
    %167 = tpu.reciprocal %166 {approx = true} : vector<48x1xf32> -> vector<48x1xf32>
    %168 = vector.broadcast %167 : vector<48x1xf32> to vector<48x48xf32>
    %169 = arith.mulf %164, %168 : vector<48x48xf32>
    %170 = arith.truncf %169 : vector<48x48xf32> to vector<48x48xbf16>
    %171 = arith.truncf %154 : vector<48x32xf32> to vector<48x32xbf16>
    %cst_54 = arith.constant dense<0.000000e+00> : vector<48x32xf32>
    %172 = tpu.matmul %170, %171, %cst_54 {dimension_numbers = #tpu.dot_dimension_numbers<[1], [0], [0], [1], [0, 0, 1, 1], [], []>} : vector<48x48xbf16>, vector<48x32xbf16>, vector<48x32xf32> -> vector<48x32xf32>
    %173 = arith.addf %151, %172 : vector<48x32xf32>
    %174 = arith.addf %59, %173 : vector<48x32xf32>
    %c7 = arith.constant 7 : index
    %c0_55 = arith.constant 0 : index
    %175 = vector.load %arg3[%c7, %c0_55] : memref<112x128xf32, #tpu.memory_space<vmem>>, vector<1x32xf32>
    %176 = vector.broadcast %175 : vector<1x32xf32> to vector<48x32xf32>
    %177 = arith.addf %174, %176 : vector<48x32xf32>
    %c8 = arith.constant 8 : index
    %c0_56 = arith.constant 0 : index
    %178 = vector.load %arg3[%c8, %c0_56] : memref<112x128xf32, #tpu.memory_space<vmem>>, vector<1x32xf32>
    %c9 = arith.constant 9 : index
    %c0_57 = arith.constant 0 : index
    %179 = vector.load %arg3[%c9, %c0_57] : memref<112x128xf32, #tpu.memory_space<vmem>>, vector<1x32xf32>
    %cst_58 = arith.constant dense<0.000000e+00> : vector<48xf32>
    %180 = vector.multi_reduction <add>, %177, %cst_58 [1] : vector<48x32xf32> to vector<48xf32>
    %181 = vector.shape_cast %180 : vector<48xf32> to vector<48x1xf32>
    %cst_59 = arith.constant 3.200000e+01 : f32
    %182 = vector.broadcast %cst_59 : f32 to vector<48x1xf32>
    %183 = arith.divf %181, %182 : vector<48x1xf32>
    %184 = vector.broadcast %183 : vector<48x1xf32> to vector<48x32xf32>
    %185 = arith.subf %177, %184 : vector<48x32xf32>
    %186 = arith.mulf %185, %185 : vector<48x32xf32>
    %cst_60 = arith.constant dense<0.000000e+00> : vector<48xf32>
    %187 = vector.multi_reduction <add>, %186, %cst_60 [1] : vector<48x32xf32> to vector<48xf32>
    %188 = vector.shape_cast %187 : vector<48xf32> to vector<48x1xf32>
    %cst_61 = arith.constant 3.200000e+01 : f32
    %189 = vector.broadcast %cst_61 : f32 to vector<48x1xf32>
    %190 = arith.divf %188, %189 : vector<48x1xf32>
    %191 = vector.broadcast %183 : vector<48x1xf32> to vector<48x32xf32>
    %192 = arith.subf %177, %191 : vector<48x32xf32>
    %cst_62 = arith.constant 9.99999974E-6 : f32
    %193 = vector.broadcast %cst_62 : f32 to vector<48x1xf32>
    %194 = arith.addf %190, %193 : vector<48x1xf32>
    %195 = math.rsqrt %194 : vector<48x1xf32>
    %196 = vector.broadcast %195 : vector<48x1xf32> to vector<48x32xf32>
    %197 = arith.mulf %192, %196 : vector<48x32xf32>
    %198 = vector.broadcast %178 : vector<1x32xf32> to vector<48x32xf32>
    %199 = arith.mulf %197, %198 : vector<48x32xf32>
    %200 = vector.broadcast %179 : vector<1x32xf32> to vector<48x32xf32>
    %201 = arith.addf %199, %200 : vector<48x32xf32>
    %c96 = arith.constant 96 : index
    %c0_63 = arith.constant 0 : index
    %202 = vector.load %arg2[%c96, %c0_63] : memref<224x192xbf16, #tpu.memory_space<vmem>>, vector<32x64xbf16>
    %203 = arith.truncf %201 : vector<48x32xf32> to vector<48x32xbf16>
    %cst_64 = arith.constant dense<0.000000e+00> : vector<48x64xf32>
    %204 = tpu.matmul %203, %202, %cst_64 {dimension_numbers = #tpu.dot_dimension_numbers<[1], [0], [0], [1], [0, 0, 1, 1], [], []>} : vector<48x32xbf16>, vector<32x64xbf16>, vector<48x64xf32> -> vector<48x64xf32>
    %c10 = arith.constant 10 : index
    %c0_65 = arith.constant 0 : index
    %205 = vector.load %arg3[%c10, %c0_65] : memref<112x128xf32, #tpu.memory_space<vmem>>, vector<1x64xf32>
    %206 = vector.broadcast %205 : vector<1x64xf32> to vector<48x64xf32>
    %207 = arith.addf %204, %206 : vector<48x64xf32>
    %cst_66 = arith.constant 5.000000e-01 : f32
    %208 = vector.broadcast %cst_66 : f32 to vector<48x64xf32>
    %209 = arith.mulf %208, %207 : vector<48x64xf32>
    %cst_67 = arith.constant 0.707106769 : f32
    %210 = vector.broadcast %cst_67 : f32 to vector<48x64xf32>
    %211 = arith.mulf %207, %210 : vector<48x64xf32>
    %cst_68 = arith.constant 0.000000e+00 : f32
    %212 = vector.broadcast %cst_68 : f32 to vector<48x64xf32>
    %213 = arith.cmpf oge, %211, %212 : vector<48x64xf32>
    %cst_69 = arith.constant 1.000000e+00 : f32
    %cst_70 = arith.constant -1.000000e+00 : f32
    %214 = vector.broadcast %cst_69 : f32 to vector<48x64xf32>
    %215 = vector.broadcast %cst_70 : f32 to vector<48x64xf32>
    %216 = arith.select %213, %214, %215 : vector<48x64xi1>, vector<48x64xf32>
    %217 = math.absf %211 : vector<48x64xf32>
    %cst_71 = arith.constant 0.327591091 : f32
    %218 = vector.broadcast %cst_71 : f32 to vector<48x64xf32>
    %219 = arith.mulf %218, %217 : vector<48x64xf32>
    %cst_72 = arith.constant 1.000000e+00 : f32
    %220 = vector.broadcast %cst_72 : f32 to vector<48x64xf32>
    %221 = arith.addf %220, %219 : vector<48x64xf32>
    %cst_73 = arith.constant 1.000000e+00 : f32
    %222 = vector.broadcast %cst_73 : f32 to vector<48x64xf32>
    %223 = arith.divf %222, %221 : vector<48x64xf32>
    %cst_74 = arith.constant 1.06140542 : f32
    %224 = vector.broadcast %cst_74 : f32 to vector<48x64xf32>
    %225 = arith.mulf %224, %223 : vector<48x64xf32>
    %cst_75 = arith.constant -1.45315206 : f32
    %226 = vector.broadcast %cst_75 : f32 to vector<48x64xf32>
    %227 = arith.addf %225, %226 : vector<48x64xf32>
    %228 = arith.mulf %227, %223 : vector<48x64xf32>
    %cst_76 = arith.constant 1.42141378 : f32
    %229 = vector.broadcast %cst_76 : f32 to vector<48x64xf32>
    %230 = arith.addf %228, %229 : vector<48x64xf32>
    %231 = arith.mulf %230, %223 : vector<48x64xf32>
    %cst_77 = arith.constant -0.284496725 : f32
    %232 = vector.broadcast %cst_77 : f32 to vector<48x64xf32>
    %233 = arith.addf %231, %232 : vector<48x64xf32>
    %234 = arith.mulf %233, %223 : vector<48x64xf32>
    %cst_78 = arith.constant 0.254829586 : f32
    %235 = vector.broadcast %cst_78 : f32 to vector<48x64xf32>
    %236 = arith.addf %234, %235 : vector<48x64xf32>
    %237 = arith.mulf %236, %223 : vector<48x64xf32>
    %cst_79 = arith.constant 0.000000e+00 : f32
    %238 = vector.broadcast %cst_79 : f32 to vector<48x64xf32>
    %239 = arith.subf %238, %217 : vector<48x64xf32>
    %240 = arith.mulf %239, %217 : vector<48x64xf32>
    %241 = math.exp %240 : vector<48x64xf32>
    %242 = arith.mulf %237, %241 : vector<48x64xf32>
    %cst_80 = arith.constant 1.000000e+00 : f32
    %243 = vector.broadcast %cst_80 : f32 to vector<48x64xf32>
    %244 = arith.subf %243, %242 : vector<48x64xf32>
    %245 = arith.mulf %216, %244 : vector<48x64xf32>
    %cst_81 = arith.constant 1.000000e+00 : f32
    %246 = vector.broadcast %cst_81 : f32 to vector<48x64xf32>
    %247 = arith.addf %246, %245 : vector<48x64xf32>
    %248 = arith.mulf %209, %247 : vector<48x64xf32>
    %c128 = arith.constant 128 : index
    %c0_82 = arith.constant 0 : index
    %249 = vector.load %arg2[%c128, %c0_82] : memref<224x192xbf16, #tpu.memory_space<vmem>>, vector<64x32xbf16>
    %250 = arith.truncf %248 : vector<48x64xf32> to vector<48x64xbf16>
    %cst_83 = arith.constant dense<0.000000e+00> : vector<48x32xf32>
    %251 = tpu.matmul %250, %249, %cst_83 {dimension_numbers = #tpu.dot_dimension_numbers<[1], [0], [0], [1], [0, 0, 1, 1], [], []>} : vector<48x64xbf16>, vector<64x32xbf16>, vector<48x32xf32> -> vector<48x32xf32>
    %252 = arith.addf %177, %251 : vector<48x32xf32>
    %c11 = arith.constant 11 : index
    %c0_84 = arith.constant 0 : index
    %253 = vector.load %arg3[%c11, %c0_84] : memref<112x128xf32, #tpu.memory_space<vmem>>, vector<1x32xf32>
    %254 = vector.broadcast %253 : vector<1x32xf32> to vector<48x32xf32>
    %255 = arith.addf %252, %254 : vector<48x32xf32>
    %c5_85 = arith.constant 5 : index
    %c0_86 = arith.constant 0 : index
    %256 = vector.load %arg3[%c5_85, %c0_86] : memref<112x128xf32, #tpu.memory_space<vmem>>, vector<1x32xf32>
    %c6_87 = arith.constant 6 : index
    %c0_88 = arith.constant 0 : index
    %257 = vector.load %arg3[%c6_87, %c0_88] : memref<112x128xf32, #tpu.memory_space<vmem>>, vector<1x32xf32>
    %cst_89 = arith.constant dense<0.000000e+00> : vector<48xf32>
    %258 = vector.multi_reduction <add>, %255, %cst_89 [1] : vector<48x32xf32> to vector<48xf32>
    %259 = vector.shape_cast %258 : vector<48xf32> to vector<48x1xf32>
    %cst_90 = arith.constant 3.200000e+01 : f32
    %260 = vector.broadcast %cst_90 : f32 to vector<48x1xf32>
    %261 = arith.divf %259, %260 : vector<48x1xf32>
    %262 = vector.broadcast %261 : vector<48x1xf32> to vector<48x32xf32>
    %263 = arith.subf %255, %262 : vector<48x32xf32>
    %264 = arith.mulf %263, %263 : vector<48x32xf32>
    %cst_91 = arith.constant dense<0.000000e+00> : vector<48xf32>
    %265 = vector.multi_reduction <add>, %264, %cst_91 [1] : vector<48x32xf32> to vector<48xf32>
    %266 = vector.shape_cast %265 : vector<48xf32> to vector<48x1xf32>
    %cst_92 = arith.constant 3.200000e+01 : f32
    %267 = vector.broadcast %cst_92 : f32 to vector<48x1xf32>
    %268 = arith.divf %266, %267 : vector<48x1xf32>
    %269 = vector.broadcast %261 : vector<48x1xf32> to vector<48x32xf32>
    %270 = arith.subf %255, %269 : vector<48x32xf32>
    %cst_93 = arith.constant 9.99999974E-6 : f32
    %271 = vector.broadcast %cst_93 : f32 to vector<48x1xf32>
    %272 = arith.addf %268, %271 : vector<48x1xf32>
    %273 = math.rsqrt %272 : vector<48x1xf32>
    %274 = vector.broadcast %273 : vector<48x1xf32> to vector<48x32xf32>
    %275 = arith.mulf %270, %274 : vector<48x32xf32>
    %276 = vector.broadcast %256 : vector<1x32xf32> to vector<48x32xf32>
    %277 = arith.mulf %275, %276 : vector<48x32xf32>
    %278 = vector.broadcast %257 : vector<1x32xf32> to vector<48x32xf32>
    %279 = arith.addf %277, %278 : vector<48x32xf32>
    %c64_94 = arith.constant 64 : index
    %c0_95 = arith.constant 0 : index
    %280 = vector.load %arg2[%c64_94, %c0_95] : memref<224x192xbf16, #tpu.memory_space<vmem>>, vector<32x192xbf16>
    %281 = arith.truncf %279 : vector<48x32xf32> to vector<48x32xbf16>
    %cst_96 = arith.constant dense<0.000000e+00> : vector<48x192xf32>
    %282 = tpu.matmul %281, %280, %cst_96 {dimension_numbers = #tpu.dot_dimension_numbers<[1], [0], [0], [1], [0, 0, 1, 1], [], []>} : vector<48x32xbf16>, vector<32x192xbf16>, vector<48x192xf32> -> vector<48x192xf32>
    %283 = vector.extract_strided_slice %282 {offsets = [0, 0], sizes = [48, 8], strides = [1, 1]} : vector<48x192xf32> to vector<48x8xf32>
    %284 = vector.extract_strided_slice %282 {offsets = [0, 32], sizes = [48, 8], strides = [1, 1]} : vector<48x192xf32> to vector<48x8xf32>
    %285 = vector.extract_strided_slice %282 {offsets = [0, 64], sizes = [48, 32], strides = [1, 1]} : vector<48x192xf32> to vector<48x32xf32>
    %286 = arith.truncf %283 : vector<48x8xf32> to vector<48x8xbf16>
    %287 = arith.truncf %284 : vector<48x8xf32> to vector<48x8xbf16>
    %cst_97 = arith.constant dense<0.000000e+00> : vector<48x48xf32>
    %288 = tpu.matmul %286, %287, %cst_97 {dimension_numbers = #tpu.dot_dimension_numbers<[1], [1], [0], [0], [0, 0, 1, 0], [], []>} : vector<48x8xbf16>, vector<48x8xbf16>, vector<48x48xf32> -> vector<48x48xf32>
    %c64_98 = arith.constant 64 : index
    %c0_99 = arith.constant 0 : index
    %289 = vector.load %arg3[%c64_98, %c0_99] : memref<112x128xf32, #tpu.memory_space<vmem>>, vector<48x48xf32>
    %290 = arith.addf %288, %289 : vector<48x48xf32>
    %cst_100 = arith.constant dense<0xFF800000> : vector<48xf32>
    %291 = vector.multi_reduction <maximumf>, %290, %cst_100 [1] : vector<48x48xf32> to vector<48xf32>
    %292 = vector.shape_cast %291 : vector<48xf32> to vector<48x1xf32>
    %293 = vector.broadcast %292 : vector<48x1xf32> to vector<48x48xf32>
    %294 = arith.subf %290, %293 : vector<48x48xf32>
    %295 = math.exp %294 : vector<48x48xf32>
    %cst_101 = arith.constant dense<0.000000e+00> : vector<48xf32>
    %296 = vector.multi_reduction <add>, %295, %cst_101 [1] : vector<48x48xf32> to vector<48xf32>
    %297 = vector.shape_cast %296 : vector<48xf32> to vector<48x1xf32>
    %298 = tpu.reciprocal %297 {approx = true} : vector<48x1xf32> -> vector<48x1xf32>
    %299 = vector.broadcast %298 : vector<48x1xf32> to vector<48x48xf32>
    %300 = arith.mulf %295, %299 : vector<48x48xf32>
    %301 = arith.truncf %300 : vector<48x48xf32> to vector<48x48xbf16>
    %302 = arith.truncf %285 : vector<48x32xf32> to vector<48x32xbf16>
    %cst_102 = arith.constant dense<0.000000e+00> : vector<48x32xf32>
    %303 = tpu.matmul %301, %302, %cst_102 {dimension_numbers = #tpu.dot_dimension_numbers<[1], [0], [0], [1], [0, 0, 1, 1], [], []>} : vector<48x48xbf16>, vector<48x32xbf16>, vector<48x32xf32> -> vector<48x32xf32>
    %304 = vector.extract_strided_slice %282 {offsets = [0, 8], sizes = [48, 8], strides = [1, 1]} : vector<48x192xf32> to vector<48x8xf32>
    %305 = vector.extract_strided_slice %282 {offsets = [0, 40], sizes = [48, 8], strides = [1, 1]} : vector<48x192xf32> to vector<48x8xf32>
    %306 = vector.extract_strided_slice %282 {offsets = [0, 96], sizes = [48, 32], strides = [1, 1]} : vector<48x192xf32> to vector<48x32xf32>
    %307 = arith.truncf %304 : vector<48x8xf32> to vector<48x8xbf16>
    %308 = arith.truncf %305 : vector<48x8xf32> to vector<48x8xbf16>
    %cst_103 = arith.constant dense<0.000000e+00> : vector<48x48xf32>
    %309 = tpu.matmul %307, %308, %cst_103 {dimension_numbers = #tpu.dot_dimension_numbers<[1], [1], [0], [0], [0, 0, 1, 0], [], []>} : vector<48x8xbf16>, vector<48x8xbf16>, vector<48x48xf32> -> vector<48x48xf32>
    %c64_104 = arith.constant 64 : index
    %c0_105 = arith.constant 0 : index
    %310 = vector.load %arg3[%c64_104, %c0_105] : memref<112x128xf32, #tpu.memory_space<vmem>>, vector<48x48xf32>
    %311 = arith.addf %309, %310 : vector<48x48xf32>
    %cst_106 = arith.constant dense<0xFF800000> : vector<48xf32>
    %312 = vector.multi_reduction <maximumf>, %311, %cst_106 [1] : vector<48x48xf32> to vector<48xf32>
    %313 = vector.shape_cast %312 : vector<48xf32> to vector<48x1xf32>
    %314 = vector.broadcast %313 : vector<48x1xf32> to vector<48x48xf32>
    %315 = arith.subf %311, %314 : vector<48x48xf32>
    %316 = math.exp %315 : vector<48x48xf32>
    %cst_107 = arith.constant dense<0.000000e+00> : vector<48xf32>
    %317 = vector.multi_reduction <add>, %316, %cst_107 [1] : vector<48x48xf32> to vector<48xf32>
    %318 = vector.shape_cast %317 : vector<48xf32> to vector<48x1xf32>
    %319 = tpu.reciprocal %318 {approx = true} : vector<48x1xf32> -> vector<48x1xf32>
    %320 = vector.broadcast %319 : vector<48x1xf32> to vector<48x48xf32>
    %321 = arith.mulf %316, %320 : vector<48x48xf32>
    %322 = arith.truncf %321 : vector<48x48xf32> to vector<48x48xbf16>
    %323 = arith.truncf %306 : vector<48x32xf32> to vector<48x32xbf16>
    %cst_108 = arith.constant dense<0.000000e+00> : vector<48x32xf32>
    %324 = tpu.matmul %322, %323, %cst_108 {dimension_numbers = #tpu.dot_dimension_numbers<[1], [0], [0], [1], [0, 0, 1, 1], [], []>} : vector<48x48xbf16>, vector<48x32xbf16>, vector<48x32xf32> -> vector<48x32xf32>
    %325 = arith.addf %303, %324 : vector<48x32xf32>
    %326 = vector.extract_strided_slice %282 {offsets = [0, 16], sizes = [48, 8], strides = [1, 1]} : vector<48x192xf32> to vector<48x8xf32>
    %327 = vector.extract_strided_slice %282 {offsets = [0, 48], sizes = [48, 8], strides = [1, 1]} : vector<48x192xf32> to vector<48x8xf32>
    %328 = vector.extract_strided_slice %282 {offsets = [0, 128], sizes = [48, 32], strides = [1, 1]} : vector<48x192xf32> to vector<48x32xf32>
    %329 = arith.truncf %326 : vector<48x8xf32> to vector<48x8xbf16>
    %330 = arith.truncf %327 : vector<48x8xf32> to vector<48x8xbf16>
    %cst_109 = arith.constant dense<0.000000e+00> : vector<48x48xf32>
    %331 = tpu.matmul %329, %330, %cst_109 {dimension_numbers = #tpu.dot_dimension_numbers<[1], [1], [0], [0], [0, 0, 1, 0], [], []>} : vector<48x8xbf16>, vector<48x8xbf16>, vector<48x48xf32> -> vector<48x48xf32>
    %c64_110 = arith.constant 64 : index
    %c0_111 = arith.constant 0 : index
    %332 = vector.load %arg3[%c64_110, %c0_111] : memref<112x128xf32, #tpu.memory_space<vmem>>, vector<48x48xf32>
    %333 = arith.addf %331, %332 : vector<48x48xf32>
    %cst_112 = arith.constant dense<0xFF800000> : vector<48xf32>
    %334 = vector.multi_reduction <maximumf>, %333, %cst_112 [1] : vector<48x48xf32> to vector<48xf32>
    %335 = vector.shape_cast %334 : vector<48xf32> to vector<48x1xf32>
    %336 = vector.broadcast %335 : vector<48x1xf32> to vector<48x48xf32>
    %337 = arith.subf %333, %336 : vector<48x48xf32>
    %338 = math.exp %337 : vector<48x48xf32>
    %cst_113 = arith.constant dense<0.000000e+00> : vector<48xf32>
    %339 = vector.multi_reduction <add>, %338, %cst_113 [1] : vector<48x48xf32> to vector<48xf32>
    %340 = vector.shape_cast %339 : vector<48xf32> to vector<48x1xf32>
    %341 = tpu.reciprocal %340 {approx = true} : vector<48x1xf32> -> vector<48x1xf32>
    %342 = vector.broadcast %341 : vector<48x1xf32> to vector<48x48xf32>
    %343 = arith.mulf %338, %342 : vector<48x48xf32>
    %344 = arith.truncf %343 : vector<48x48xf32> to vector<48x48xbf16>
    %345 = arith.truncf %328 : vector<48x32xf32> to vector<48x32xbf16>
    %cst_114 = arith.constant dense<0.000000e+00> : vector<48x32xf32>
    %346 = tpu.matmul %344, %345, %cst_114 {dimension_numbers = #tpu.dot_dimension_numbers<[1], [0], [0], [1], [0, 0, 1, 1], [], []>} : vector<48x48xbf16>, vector<48x32xbf16>, vector<48x32xf32> -> vector<48x32xf32>
    %347 = arith.addf %325, %346 : vector<48x32xf32>
    %348 = vector.extract_strided_slice %282 {offsets = [0, 24], sizes = [48, 8], strides = [1, 1]} : vector<48x192xf32> to vector<48x8xf32>
    %349 = vector.extract_strided_slice %282 {offsets = [0, 56], sizes = [48, 8], strides = [1, 1]} : vector<48x192xf32> to vector<48x8xf32>
    %350 = vector.extract_strided_slice %282 {offsets = [0, 160], sizes = [48, 32], strides = [1, 1]} : vector<48x192xf32> to vector<48x32xf32>
    %351 = arith.truncf %348 : vector<48x8xf32> to vector<48x8xbf16>
    %352 = arith.truncf %349 : vector<48x8xf32> to vector<48x8xbf16>
    %cst_115 = arith.constant dense<0.000000e+00> : vector<48x48xf32>
    %353 = tpu.matmul %351, %352, %cst_115 {dimension_numbers = #tpu.dot_dimension_numbers<[1], [1], [0], [0], [0, 0, 1, 0], [], []>} : vector<48x8xbf16>, vector<48x8xbf16>, vector<48x48xf32> -> vector<48x48xf32>
    %c64_116 = arith.constant 64 : index
    %c0_117 = arith.constant 0 : index
    %354 = vector.load %arg3[%c64_116, %c0_117] : memref<112x128xf32, #tpu.memory_space<vmem>>, vector<48x48xf32>
    %355 = arith.addf %353, %354 : vector<48x48xf32>
    %cst_118 = arith.constant dense<0xFF800000> : vector<48xf32>
    %356 = vector.multi_reduction <maximumf>, %355, %cst_118 [1] : vector<48x48xf32> to vector<48xf32>
    %357 = vector.shape_cast %356 : vector<48xf32> to vector<48x1xf32>
    %358 = vector.broadcast %357 : vector<48x1xf32> to vector<48x48xf32>
    %359 = arith.subf %355, %358 : vector<48x48xf32>
    %360 = math.exp %359 : vector<48x48xf32>
    %cst_119 = arith.constant dense<0.000000e+00> : vector<48xf32>
    %361 = vector.multi_reduction <add>, %360, %cst_119 [1] : vector<48x48xf32> to vector<48xf32>
    %362 = vector.shape_cast %361 : vector<48xf32> to vector<48x1xf32>
    %363 = tpu.reciprocal %362 {approx = true} : vector<48x1xf32> -> vector<48x1xf32>
    %364 = vector.broadcast %363 : vector<48x1xf32> to vector<48x48xf32>
    %365 = arith.mulf %360, %364 : vector<48x48xf32>
    %366 = arith.truncf %365 : vector<48x48xf32> to vector<48x48xbf16>
    %367 = arith.truncf %350 : vector<48x32xf32> to vector<48x32xbf16>
    %cst_120 = arith.constant dense<0.000000e+00> : vector<48x32xf32>
    %368 = tpu.matmul %366, %367, %cst_120 {dimension_numbers = #tpu.dot_dimension_numbers<[1], [0], [0], [1], [0, 0, 1, 1], [], []>} : vector<48x48xbf16>, vector<48x32xbf16>, vector<48x32xf32> -> vector<48x32xf32>
    %369 = arith.addf %347, %368 : vector<48x32xf32>
    %370 = arith.addf %255, %369 : vector<48x32xf32>
    %c7_121 = arith.constant 7 : index
    %c0_122 = arith.constant 0 : index
    %371 = vector.load %arg3[%c7_121, %c0_122] : memref<112x128xf32, #tpu.memory_space<vmem>>, vector<1x32xf32>
    %372 = vector.broadcast %371 : vector<1x32xf32> to vector<48x32xf32>
    %373 = arith.addf %370, %372 : vector<48x32xf32>
    %c8_123 = arith.constant 8 : index
    %c0_124 = arith.constant 0 : index
    %374 = vector.load %arg3[%c8_123, %c0_124] : memref<112x128xf32, #tpu.memory_space<vmem>>, vector<1x32xf32>
    %c9_125 = arith.constant 9 : index
    %c0_126 = arith.constant 0 : index
    %375 = vector.load %arg3[%c9_125, %c0_126] : memref<112x128xf32, #tpu.memory_space<vmem>>, vector<1x32xf32>
    %cst_127 = arith.constant dense<0.000000e+00> : vector<48xf32>
    %376 = vector.multi_reduction <add>, %373, %cst_127 [1] : vector<48x32xf32> to vector<48xf32>
    %377 = vector.shape_cast %376 : vector<48xf32> to vector<48x1xf32>
    %cst_128 = arith.constant 3.200000e+01 : f32
    %378 = vector.broadcast %cst_128 : f32 to vector<48x1xf32>
    %379 = arith.divf %377, %378 : vector<48x1xf32>
    %380 = vector.broadcast %379 : vector<48x1xf32> to vector<48x32xf32>
    %381 = arith.subf %373, %380 : vector<48x32xf32>
    %382 = arith.mulf %381, %381 : vector<48x32xf32>
    %cst_129 = arith.constant dense<0.000000e+00> : vector<48xf32>
    %383 = vector.multi_reduction <add>, %382, %cst_129 [1] : vector<48x32xf32> to vector<48xf32>
    %384 = vector.shape_cast %383 : vector<48xf32> to vector<48x1xf32>
    %cst_130 = arith.constant 3.200000e+01 : f32
    %385 = vector.broadcast %cst_130 : f32 to vector<48x1xf32>
    %386 = arith.divf %384, %385 : vector<48x1xf32>
    %387 = vector.broadcast %379 : vector<48x1xf32> to vector<48x32xf32>
    %388 = arith.subf %373, %387 : vector<48x32xf32>
    %cst_131 = arith.constant 9.99999974E-6 : f32
    %389 = vector.broadcast %cst_131 : f32 to vector<48x1xf32>
    %390 = arith.addf %386, %389 : vector<48x1xf32>
    %391 = math.rsqrt %390 : vector<48x1xf32>
    %392 = vector.broadcast %391 : vector<48x1xf32> to vector<48x32xf32>
    %393 = arith.mulf %388, %392 : vector<48x32xf32>
    %394 = vector.broadcast %374 : vector<1x32xf32> to vector<48x32xf32>
    %395 = arith.mulf %393, %394 : vector<48x32xf32>
    %396 = vector.broadcast %375 : vector<1x32xf32> to vector<48x32xf32>
    %397 = arith.addf %395, %396 : vector<48x32xf32>
    %c96_132 = arith.constant 96 : index
    %c0_133 = arith.constant 0 : index
    %398 = vector.load %arg2[%c96_132, %c0_133] : memref<224x192xbf16, #tpu.memory_space<vmem>>, vector<32x64xbf16>
    %399 = arith.truncf %397 : vector<48x32xf32> to vector<48x32xbf16>
    %cst_134 = arith.constant dense<0.000000e+00> : vector<48x64xf32>
    %400 = tpu.matmul %399, %398, %cst_134 {dimension_numbers = #tpu.dot_dimension_numbers<[1], [0], [0], [1], [0, 0, 1, 1], [], []>} : vector<48x32xbf16>, vector<32x64xbf16>, vector<48x64xf32> -> vector<48x64xf32>
    %c10_135 = arith.constant 10 : index
    %c0_136 = arith.constant 0 : index
    %401 = vector.load %arg3[%c10_135, %c0_136] : memref<112x128xf32, #tpu.memory_space<vmem>>, vector<1x64xf32>
    %402 = vector.broadcast %401 : vector<1x64xf32> to vector<48x64xf32>
    %403 = arith.addf %400, %402 : vector<48x64xf32>
    %cst_137 = arith.constant 5.000000e-01 : f32
    %404 = vector.broadcast %cst_137 : f32 to vector<48x64xf32>
    %405 = arith.mulf %404, %403 : vector<48x64xf32>
    %cst_138 = arith.constant 0.707106769 : f32
    %406 = vector.broadcast %cst_138 : f32 to vector<48x64xf32>
    %407 = arith.mulf %403, %406 : vector<48x64xf32>
    %cst_139 = arith.constant 0.000000e+00 : f32
    %408 = vector.broadcast %cst_139 : f32 to vector<48x64xf32>
    %409 = arith.cmpf oge, %407, %408 : vector<48x64xf32>
    %cst_140 = arith.constant 1.000000e+00 : f32
    %cst_141 = arith.constant -1.000000e+00 : f32
    %410 = vector.broadcast %cst_140 : f32 to vector<48x64xf32>
    %411 = vector.broadcast %cst_141 : f32 to vector<48x64xf32>
    %412 = arith.select %409, %410, %411 : vector<48x64xi1>, vector<48x64xf32>
    %413 = math.absf %407 : vector<48x64xf32>
    %cst_142 = arith.constant 0.327591091 : f32
    %414 = vector.broadcast %cst_142 : f32 to vector<48x64xf32>
    %415 = arith.mulf %414, %413 : vector<48x64xf32>
    %cst_143 = arith.constant 1.000000e+00 : f32
    %416 = vector.broadcast %cst_143 : f32 to vector<48x64xf32>
    %417 = arith.addf %416, %415 : vector<48x64xf32>
    %cst_144 = arith.constant 1.000000e+00 : f32
    %418 = vector.broadcast %cst_144 : f32 to vector<48x64xf32>
    %419 = arith.divf %418, %417 : vector<48x64xf32>
    %cst_145 = arith.constant 1.06140542 : f32
    %420 = vector.broadcast %cst_145 : f32 to vector<48x64xf32>
    %421 = arith.mulf %420, %419 : vector<48x64xf32>
    %cst_146 = arith.constant -1.45315206 : f32
    %422 = vector.broadcast %cst_146 : f32 to vector<48x64xf32>
    %423 = arith.addf %421, %422 : vector<48x64xf32>
    %424 = arith.mulf %423, %419 : vector<48x64xf32>
    %cst_147 = arith.constant 1.42141378 : f32
    %425 = vector.broadcast %cst_147 : f32 to vector<48x64xf32>
    %426 = arith.addf %424, %425 : vector<48x64xf32>
    %427 = arith.mulf %426, %419 : vector<48x64xf32>
    %cst_148 = arith.constant -0.284496725 : f32
    %428 = vector.broadcast %cst_148 : f32 to vector<48x64xf32>
    %429 = arith.addf %427, %428 : vector<48x64xf32>
    %430 = arith.mulf %429, %419 : vector<48x64xf32>
    %cst_149 = arith.constant 0.254829586 : f32
    %431 = vector.broadcast %cst_149 : f32 to vector<48x64xf32>
    %432 = arith.addf %430, %431 : vector<48x64xf32>
    %433 = arith.mulf %432, %419 : vector<48x64xf32>
    %cst_150 = arith.constant 0.000000e+00 : f32
    %434 = vector.broadcast %cst_150 : f32 to vector<48x64xf32>
    %435 = arith.subf %434, %413 : vector<48x64xf32>
    %436 = arith.mulf %435, %413 : vector<48x64xf32>
    %437 = math.exp %436 : vector<48x64xf32>
    %438 = arith.mulf %433, %437 : vector<48x64xf32>
    %cst_151 = arith.constant 1.000000e+00 : f32
    %439 = vector.broadcast %cst_151 : f32 to vector<48x64xf32>
    %440 = arith.subf %439, %438 : vector<48x64xf32>
    %441 = arith.mulf %412, %440 : vector<48x64xf32>
    %cst_152 = arith.constant 1.000000e+00 : f32
    %442 = vector.broadcast %cst_152 : f32 to vector<48x64xf32>
    %443 = arith.addf %442, %441 : vector<48x64xf32>
    %444 = arith.mulf %405, %443 : vector<48x64xf32>
    %c128_153 = arith.constant 128 : index
    %c0_154 = arith.constant 0 : index
    %445 = vector.load %arg2[%c128_153, %c0_154] : memref<224x192xbf16, #tpu.memory_space<vmem>>, vector<64x32xbf16>
    %446 = arith.truncf %444 : vector<48x64xf32> to vector<48x64xbf16>
    %cst_155 = arith.constant dense<0.000000e+00> : vector<48x32xf32>
    %447 = tpu.matmul %446, %445, %cst_155 {dimension_numbers = #tpu.dot_dimension_numbers<[1], [0], [0], [1], [0, 0, 1, 1], [], []>} : vector<48x64xbf16>, vector<64x32xbf16>, vector<48x32xf32> -> vector<48x32xf32>
    %448 = arith.addf %373, %447 : vector<48x32xf32>
    %c11_156 = arith.constant 11 : index
    %c0_157 = arith.constant 0 : index
    %449 = vector.load %arg3[%c11_156, %c0_157] : memref<112x128xf32, #tpu.memory_space<vmem>>, vector<1x32xf32>
    %450 = vector.broadcast %449 : vector<1x32xf32> to vector<48x32xf32>
    %451 = arith.addf %448, %450 : vector<48x32xf32>
    %c12 = arith.constant 12 : index
    %c0_158 = arith.constant 0 : index
    %452 = vector.load %arg3[%c12, %c0_158] : memref<112x128xf32, #tpu.memory_space<vmem>>, vector<1x32xf32>
    %c13 = arith.constant 13 : index
    %c0_159 = arith.constant 0 : index
    %453 = vector.load %arg3[%c13, %c0_159] : memref<112x128xf32, #tpu.memory_space<vmem>>, vector<1x32xf32>
    %cst_160 = arith.constant dense<0.000000e+00> : vector<48xf32>
    %454 = vector.multi_reduction <add>, %451, %cst_160 [1] : vector<48x32xf32> to vector<48xf32>
    %455 = vector.shape_cast %454 : vector<48xf32> to vector<48x1xf32>
    %cst_161 = arith.constant 3.200000e+01 : f32
    %456 = vector.broadcast %cst_161 : f32 to vector<48x1xf32>
    %457 = arith.divf %455, %456 : vector<48x1xf32>
    %458 = vector.broadcast %457 : vector<48x1xf32> to vector<48x32xf32>
    %459 = arith.subf %451, %458 : vector<48x32xf32>
    %460 = arith.mulf %459, %459 : vector<48x32xf32>
    %cst_162 = arith.constant dense<0.000000e+00> : vector<48xf32>
    %461 = vector.multi_reduction <add>, %460, %cst_162 [1] : vector<48x32xf32> to vector<48xf32>
    %462 = vector.shape_cast %461 : vector<48xf32> to vector<48x1xf32>
    %cst_163 = arith.constant 3.200000e+01 : f32
    %463 = vector.broadcast %cst_163 : f32 to vector<48x1xf32>
    %464 = arith.divf %462, %463 : vector<48x1xf32>
    %465 = vector.broadcast %457 : vector<48x1xf32> to vector<48x32xf32>
    %466 = arith.subf %451, %465 : vector<48x32xf32>
    %cst_164 = arith.constant 9.99999974E-6 : f32
    %467 = vector.broadcast %cst_164 : f32 to vector<48x1xf32>
    %468 = arith.addf %464, %467 : vector<48x1xf32>
    %469 = math.rsqrt %468 : vector<48x1xf32>
    %470 = vector.broadcast %469 : vector<48x1xf32> to vector<48x32xf32>
    %471 = arith.mulf %466, %470 : vector<48x32xf32>
    %472 = vector.broadcast %452 : vector<1x32xf32> to vector<48x32xf32>
    %473 = arith.mulf %471, %472 : vector<48x32xf32>
    %474 = vector.broadcast %453 : vector<1x32xf32> to vector<48x32xf32>
    %475 = arith.addf %473, %474 : vector<48x32xf32>
    %c192 = arith.constant 192 : index
    %c0_165 = arith.constant 0 : index
    %476 = vector.load %arg2[%c192, %c0_165] : memref<224x192xbf16, #tpu.memory_space<vmem>>, vector<32x128xbf16>
    %477 = arith.truncf %475 : vector<48x32xf32> to vector<48x32xbf16>
    %cst_166 = arith.constant dense<0.000000e+00> : vector<48x128xf32>
    %478 = tpu.matmul %477, %476, %cst_166 {dimension_numbers = #tpu.dot_dimension_numbers<[1], [0], [0], [1], [0, 0, 1, 1], [], []>} : vector<48x32xbf16>, vector<32x128xbf16>, vector<48x128xf32> -> vector<48x128xf32>
    %c14 = arith.constant 14 : index
    %c0_167 = arith.constant 0 : index
    %479 = vector.load %arg3[%c14, %c0_167] : memref<112x128xf32, #tpu.memory_space<vmem>>, vector<1x128xf32>
    %480 = vector.broadcast %479 : vector<1x128xf32> to vector<48x128xf32>
    %481 = arith.addf %478, %480 : vector<48x128xf32>
    %c0_168 = arith.constant 0 : index
    %c0_169 = arith.constant 0 : index
    %c0_170 = arith.constant 0 : index
    %482 = vector.load %arg4[%c0_168, %c0_169, %c0_170] : memref<1x48x128xf32, #tpu.memory_space<vmem>>, vector<1x48x128xf32>
    %483 = vector.shape_cast %482 : vector<1x48x128xf32> to vector<48x128xf32>
    %484 = vector.shape_cast %481 : vector<48x128xf32> to vector<1x48x128xf32>
    tpu.vector_store %arg4[%c0_168, %c0_169, %c0_170], %484 {strides = array<i32>} : memref<1x48x128xf32, #tpu.memory_space<vmem>>, vector<1x48x128xf32>,
    return
  }
  func.func @transform_0(%arg0: i32) -> (i32, i32, i32) {
    %c0_i32 = arith.constant 0 : i32
    %c0_i32_0 = arith.constant 0 : i32
    %c0_i32_1 = arith.constant 0 : i32
    return %arg0, %c0_i32, %c0_i32_0 : i32, i32, i32
  }
  func.func @transform_1(%arg0: i32) -> (i32, i32) {
    %c0_i32 = arith.constant 0 : i32
    %c0_i32_0 = arith.constant 0 : i32
    %c0_i32_1 = arith.constant 0 : i32
    return %c0_i32, %c0_i32_0 : i32, i32
  }
  func.func @transform_2(%arg0: i32) -> (i32, i32) {
    %c0_i32 = arith.constant 0 : i32
    %c0_i32_0 = arith.constant 0 : i32
    %c0_i32_1 = arith.constant 0 : i32
    return %c0_i32, %c0_i32_0 : i32, i32
  }
  func.func @transform_3(%arg0: i32) -> (i32, i32, i32) {
    %c0_i32 = arith.constant 0 : i32
    %c0_i32_0 = arith.constant 0 : i32
    %c0_i32_1 = arith.constant 0 : i32
    return %arg0, %c0_i32, %c0_i32_0 : i32, i32, i32
  }
}

</mosaic_0001>

<bundles_post_ra>
// kernel: tpu_custom_call.1
= control target key start
LH: loop header
LB: loop body
LE: loop exit
PB: predicated region body
PF: predicated region fallthrough
CT: control target
= control target key end

     0   :  { %vm24_vm0 = vcmask 523264   ;;  %s5899_s0 = inlined_call_operand.vmem [shape: f32[1,48,64], index: 0, kind: input, shape index: {}]   ;;  %s5900_s1 = inlined_call_operand.vmem [shape: bf16[224,192], index: 1, kind: input, shape index: {}]   ;;  %s5901_s2 = inlined_call_operand.vmem [shape: f32[112,128], index: 2, kind: input, shape index: {}]   ;;  %s5902_s3 = inlined_call_operand.hbm [shape: f32[1,48,128], index: 3, kind: output, shape index: {}]  }
   0x1   :  { %v20_v0 = vld [vmem:[%s5899_s0 + $0x20] sm:$0xff]  ;;  %v18_v1 = vld [vmem:[%s5899_s0 + $0x10] sm:$0xff]  ;;  %v21_v6 = vld [vmem:[%s5899_s0 + $0x28] sm:$0xff] }
   0x2   :  { %v16_v2 = vld [vmem:[%s5899_s0] sm:$0xff]  ;;  %v37_v3 = vsel %vm24_vm0, %v20_v0, 0.0  ;;  %v31_v4 = vsel %vm24_vm0, %v18_v1, 0.0  ;;  %v19_v7 = vld [vmem:[%s5899_s0 + $0x18] sm:$0xff]  ;;  %v40_v8 = vsel %vm24_vm0, %v21_v6, 0.0  ;;  %v17_v10 = vld [vmem:[%s5899_s0 + $0x8] sm:$0xff] }
   0x3   :  { %v25_v5 = vsel %vm24_vm0, %v16_v2, 0.0  ;;  %38 = vadd.xlane.f32.xlu2 %v37_v3  ;;  %32 = vadd.xlane.f32.xlu1 %v31_v4  ;;  %v34_v9 = vsel %vm24_vm0, %v19_v7, 0.0 }
   0x4   :  { %26 = vadd.xlane.f32.xlu0 %v25_v5 }
   0x5   :  { %8 = vsyncpa [#allocation3], 0  ;;  %v28_v11 = vsel %vm24_vm0, %v17_v10, 0.0  ;;  %v4031_v12 = vmov 64.0   ;;  %v3486_v49 = vld [vmem:[%s5900_s1 + $0x30] sm:$0xf] }
   0x6   :  { %3664 = vrcp.f32 %v4031_v12  ;;  %v3617_v50 = vld [vmem:[%s5900_s1 + $0x34] sm:$0xf0]  ;;  %v3482_v52 = vld [vmem:[%s5900_s1 + $0x20] sm:$0xf]  ;;  %v3616_v53 = vld [vmem:[%s5900_s1 + $0x24] sm:$0xf0] }
   0x7   :  { %v3487_v51 = vor.u32 %v3617_v50, %v3486_v49  ;;  %v3483_v54 = vor.u32 %v3616_v53, %v3482_v52  ;;  %v3478_v55 = vld [vmem:[%s5900_s1 + $0x10] sm:$0xf]  ;;  %v3615_v56 = vld [vmem:[%s5900_s1 + $0x14] sm:$0xf0]  ;;  %v3474_v61 = vld [vmem:[%s5900_s1] sm:$0xf] }
   0x8   :  { %v3479_v57 = vor.u32 %v3615_v56, %v3478_v55  ;;  %v3614_v62 = vld [vmem:[%s5900_s1 + $0x4] sm:$0xf0]  ;;  %v3650_v49 = vld [vmem:[%s5901_s2 + $0x1] ss:$0 sm:$0xff]  ;;  %s4032_s20 = smov 96   ;;  %s4034_s27 = smov 88  }
   0x9   :  { %228 = vmatpush.bf16.msra.mxu0 %v3487_v51  ;;  %s4035_s28 = smov 120   ;;  %s4036_s29 = smov 32  }
   0xa   :  { %s4037_s13 = smov 72   ;;  %s4038_s14 = smov 80  }
   0xb   :  { %41 = vadd.xlane.f32.xlu2 %v40_v8  ;;  %35 = vadd.xlane.f32.xlu1 %v34_v9  ;;  %s4039_s17 = smov 104   ;;  %s4040_s18 = smov 112  }
   0xc   :  { %29 = vadd.xlane.f32.xlu0 %v28_v11  ;;  %v3665_v13 = vpop.eup %3664  ;;  %s4041_s19 = smov 64   ;;  %s4043_s24 = smov [#allocation2]  }
   0xd   :  { %v44_v14 = vmul.f32 64.0, %v3665_v13  ;;  %vm48_vm1 = vweird.f32 %v3665_v13  ;;  %229 = vmatpush.bf16.msra.mxu0 %v3483_v54  ;;  %s3458_s25 = sshll.u32 %s4043_s24, 4  ;;  %s4044_s4 = smov 128   ;;  %s3459_s25 = int_to_ptr.vmem [resolvable:$true] %s3458_s25 }
   0xf   :  { %v45_v15 = vsub.f32 1.0, %v44_v14 }
  0x11   :  { %v46_v16 = vmul.f32 %v3665_v13, %v45_v15  ;;  %230 = vmatpush.bf16.msra.mxu0 %v3479_v57 }
  0x13   :  { %v47_v17 = vadd.f32 %v3665_v13, %v46_v16 }
  0x15   :  { %v4090_v18 = vsel %vm48_vm1, %v3665_v13, %v47_v17 }
  0x76   :  { %v39_v19 = vpop.xlane.xlu2 %38  ;;  %v33_v20 = vpop.xlane.xlu1 %32 }
  0x77   :  { %v52_v21 = vmul.f32 %v4090_v18, %v33_v20  ;;  %v27_v22 = vpop.xlane.xlu0 %26  ;;  %v54_v35 = vmul.f32 %v4090_v18, %v39_v19 }
  0x78   :  { %v50_v23 = vmul.f32 %v4090_v18, %v27_v22 }
  0x79   :  { %v4094_v24 = vsub.f32 %v18_v1, %v52_v21  ;;  %v4118_v42 = vsub.f32 %v20_v0, %v54_v35  ;;  %v3475_v1 = vor.u32 %v3614_v62, %v3474_v61 }
  0x7a   :  { %v4096_v25 = vsub.f32 %v16_v2, %v50_v23 }
  0x7b   :  { %v64_v26 = vmul.f32 %v4094_v24, %v4094_v24  ;;  %v66_v47 = vmul.f32 %v4118_v42, %v4118_v42  ;;  %231 = vmatpush.bf16.msra.mxu0 %v3475_v1 }
  0x7c   :  { %v62_v27 = vmul.f32 %v4096_v25, %v4096_v25 }
  0x7d   :  { %v74_v28 = vsel %vm24_vm0, %v64_v26, 0.0  ;;  %v80_v48 = vsel %vm24_vm0, %v66_v47, 0.0 }
  0x7e   :  { %v42_v29 = vpop.xlane.xlu2 %41  ;;  %75 = vadd.xlane.f32.xlu2 %v74_v28  ;;  %v36_v30 = vpop.xlane.xlu1 %35  ;;  %v68_v31 = vsel %vm24_vm0, %v62_v27, 0.0 }
  0x7f   :  { %v55_v32 = vmul.f32 %v4090_v18, %v42_v29  ;;  %v53_v33 = vmul.f32 %v4090_v18, %v36_v30  ;;  %69 = vadd.xlane.f32.xlu0 %v68_v31  ;;  %v30_v34 = vpop.xlane.xlu0 %29 }
  0x80   :  { %v51_v36 = vmul.f32 %v4090_v18, %v30_v34 }
  0x81   :  { %v4108_v37 = vsub.f32 %v21_v6, %v55_v32  ;;  %v4110_v38 = vsub.f32 %v19_v7, %v53_v33 }
  0x82   :  { %v4112_v39 = vsub.f32 %v17_v10, %v51_v36 }
  0x83   :  { %v67_v40 = vmul.f32 %v4108_v37, %v4108_v37  ;;  %v65_v41 = vmul.f32 %v4110_v38, %v4110_v38 }
  0x84   :  { %v63_v43 = vmul.f32 %v4112_v39, %v4112_v39 }
  0x85   :  { %v83_v44 = vsel %vm24_vm0, %v67_v40, 0.0  ;;  %v77_v45 = vsel %vm24_vm0, %v65_v41, 0.0  ;;  %v3649_v40 = vld [vmem:[%s5901_s2] ss:$0 sm:$0xff] }
  0x86   :  { %84 = vadd.xlane.f32.xlu2 %v83_v44  ;;  %v71_v46 = vsel %vm24_vm0, %v63_v43, 0.0 }
  0x87   :  { %78 = vadd.xlane.f32.xlu0 %v77_v45  ;;  %72 = vadd.xlane.f32.xlu1 %v71_v46 }
  0x8f   :  { %81 = vadd.xlane.f32.xlu1 %v80_v48 }
  0xf1   :  { %v76_v58 = vpop.xlane.xlu2 %75 }
  0xf2   :  { %v70_v59 = vpop.xlane.xlu0 %69  ;;  %v88_v63 = vmul.f32 %v76_v58, %v4090_v18 }
  0xf3   :  { %v86_v60 = vmul.f32 %v70_v59, %v4090_v18 }
  0xf4   :  { %v4154_v2 = vadd.f32 1e-05, %v88_v63 }
  0xf5   :  { %v92_v0 = vadd.f32 1e-05, %v86_v60 }
  0xf6   :  { %vm124_vm10 = vweird.f32 %v4154_v2 }
  0xf7   :  { %3666 = vrsqrt.f32 %v92_v0  ;;  %vm104_vm3 = vweird.f32 %v92_v0 }
  0xf8   :  { %3668 = vrsqrt.f32 %v4154_v2 }
  0xf9   :  { %v85_v13 = vpop.xlane.xlu2 %84 }
  0xfa   :  { %v73_v3 = vpop.xlane.xlu1 %72  ;;  %v79_v4 = vpop.xlane.xlu0 %78  ;;  %v91_v20 = vmul.f32 %v85_v13, %v4090_v18 }
  0xfb   :  { %v87_v5 = vmul.f32 %v73_v3, %v4090_v18  ;;  %v89_v6 = vmul.f32 %v79_v4, %v4090_v18 }
  0xfc   :  { %v97_v30 = vadd.f32 1e-05, %v91_v20 }
  0xfd   :  { %v3667_v7 = vpop.eup %3666  ;;  %v93_v8 = vadd.f32 1e-05, %v87_v5  ;;  %v95_v9 = vadd.f32 1e-05, %v89_v6 }
  0xfe   :  { %v99_v10 = vmul.f32 %v3667_v7, %v92_v0  ;;  %v3669_v15 = vpop.eup %3668  ;;  %vm105_vm2 = vweird.f32 %v3667_v7  ;;  %vm154_vm1 = vweird.f32 %v97_v30 }
  0xff   :  { %3670 = vrsqrt.f32 %v93_v8  ;;  %v119_v22 = vmul.f32 %v3669_v15, %v4154_v2  ;;  %vm106_vm4 = vmor %vm104_vm3, %vm105_vm2  ;;  %vm114_vm6 = vweird.f32 %v93_v8  ;;  %vm134_vm8 = vweird.f32 %v95_v9 }
 0x100   :  { %v100_v11 = vmul.f32 %v3667_v7, %v99_v10  ;;  %3672 = vrsqrt.f32 %v95_v9  ;;  %vm125_vm11 = vweird.f32 %v3669_v15 }
 0x101   :  { %v120_v32 = vmul.f32 %v3669_v15, %v119_v22  ;;  %vm126_vm13 = vmor %vm124_vm10, %vm125_vm11 }
 0x102   :  { %v101_v12 = vmul.f32 0.5, %v100_v11  ;;  %v82_v14 = vpop.xlane.xlu1 %81 }
 0x103   :  { %v90_v16 = vmul.f32 %v82_v14, %v4090_v18  ;;  %v121_v41 = vmul.f32 0.5, %v120_v32 }
 0x104   :  { %v102_v17 = vsub.f32 1.5, %v101_v12 }
 0x105   :  { %v3671_v19 = vpop.eup %3670  ;;  %v96_v28 = vadd.f32 1e-05, %v90_v16  ;;  %v122_v50 = vsub.f32 1.5, %v121_v41  ;;  %v4033_v41 = vmov 32.0  }
 0x106   :  { %v3673_v21 = vpop.eup %3672  ;;  %v103_v23 = vmul.f32 %v3667_v7, %v102_v17  ;;  %v109_v26 = vmul.f32 %v3671_v19, %v93_v8  ;;  %vm115_vm5 = vweird.f32 %v3671_v19 }
 0x107   :  { %v129_v27 = vmul.f32 %v3673_v21, %v95_v9  ;;  %3674 = vrsqrt.f32 %v96_v28  ;;  %vm116_vm7 = vmor %vm114_vm6, %vm115_vm5  ;;  %vm135_vm9 = vweird.f32 %v3673_v21  ;;  %v123_v56 = vmul.f32 %v3669_v15, %v122_v50 }
 0x108   :  { %v110_v29 = vmul.f32 %v3671_v19, %v109_v26  ;;  %v107_v33 = vsel %vm106_vm4, %v3667_v7, %v103_v23  ;;  %3676 = vrsqrt.f32 %v97_v30  ;;  %vm136_vm12 = vmor %vm134_vm8, %vm135_vm9  ;;  %vm144_vm14 = vweird.f32 %v96_v28 }
 0x109   :  { %v130_v31 = vmul.f32 %v3673_v21, %v129_v27  ;;  %v158_v36 = vmul.f32 %v107_v33, %v4096_v25  ;;  %v127_v60 = vsel %vm126_vm13, %v3669_v15, %v123_v56  ;;  %vm250_vm5 = vcmask 261120  }
 0x10a   :  { %v111_v34 = vmul.f32 0.5, %v110_v29  ;;  %v160_v0 = vmul.f32 %v127_v60, %v4094_v24  ;;  %3678 = vrcp.f32 %v4033_v41 }
 0x10b   :  { %v131_v18 = vmul.f32 0.5, %v130_v31  ;;  %v165_v48 = vmul.f32 %v3649_v40, %v158_v36 }
 0x10c   :  { %v112_v35 = vsub.f32 1.5, %v111_v34  ;;  %v167_v4 = vmul.f32 %v3649_v40, %v160_v0 }
 0x10d   :  { %v132_v45 = vsub.f32 1.5, %v131_v18  ;;  %v3675_v46 = vpop.eup %3674  ;;  %v172_v54 = vadd.f32 %v3650_v49, %v165_v48 }
 0x10e   :  { %v113_v43 = vmul.f32 %v3671_v19, %v112_v35  ;;  %v3677_v25 = vpop.eup %3676  ;;  %v139_v53 = vmul.f32 %v3675_v46, %v96_v28  ;;  %vm145_vm15 = vweird.f32 %v3675_v46  ;;  %v174_v8 = vadd.f32 %v3650_v49, %v167_v4 }
 0x10f   :  { %v133_v52 = vmul.f32 %v3673_v21, %v132_v45  ;;  %vm155_vm2 = vweird.f32 %v3677_v25  ;;  %vm146_vm3 = vmor %vm144_vm14, %vm145_vm15 }
 0x110   :  { %v117_v44 = vsel %vm116_vm7, %v3671_v19, %v113_v43  ;;  %v140_v59 = vmul.f32 %v3675_v46, %v139_v53  ;;  %vm156_vm4 = vmor %vm154_vm1, %vm155_vm2  ;;  %v3679_v43 = vpop.eup %3678 }
 0x111   :  { %v159_v47 = vmul.f32 %v117_v44, %v4112_v39  ;;  %v149_v39 = vmul.f32 %v3677_v25, %v97_v30  ;;  %v137_v58 = vsel %vm136_vm12, %v3673_v21, %v133_v52  ;;  %v3651_v21 = vld [vmem:[%s5901_s2 + $0x2] ss:$0 sm:$0xff]  ;;  %v270_v44 = vmul.f32 32.0, %v3679_v43 }
 0x112   :  { %v161_v62 = vmul.f32 %v137_v58, %v4110_v38  ;;  %v141_v63 = vmul.f32 0.5, %v140_v59  ;;  %vm274_vm6 = vweird.f32 %v3679_v43 }
 0x113   :  { %v166_v51 = vmul.f32 %v3649_v40, %v159_v47  ;;  %v150_v61 = vmul.f32 %v3677_v25, %v149_v39  ;;  %v271_v45 = vsub.f32 1.0, %v270_v44  ;;  %v4276_v44 = vld [vmem:[%s5901_s2 + $0x3] ss:$0 sm:$0xff] }
 0x114   :  { %v168_v2 = vmul.f32 %v3649_v40, %v161_v62  ;;  %v142_v3 = vsub.f32 1.5, %v141_v63 }
 0x115   :  { %v173_v55 = vadd.f32 %v3650_v49, %v166_v51  ;;  %v151_v1 = vmul.f32 0.5, %v150_v61 }
 0x116   :  { %v175_v6 = vadd.f32 %v3650_v49, %v168_v2  ;;  %v143_v7 = vmul.f32 %v3675_v46, %v142_v3 }
 0x117   :  { %v186_v57 = vpack.c.bf16 %v173_v55, %v172_v54  ;;  %v152_v5 = vsub.f32 1.5, %v151_v1 }
 0x118   :  { %v187_v10 = vpack.c.bf16 %v175_v6, %v174_v8  ;;  %v147_v38 = vsel %vm146_vm3, %v3675_v46, %v143_v7  ;;  %v272_v46 = vmul.f32 %v3679_v43, %v271_v45 }
 0x119   :  { %3488 = vmatmul.msk.bf16.vlgmr.msra.gmra.mxu0 %vm24_vm0, %v186_v57  ;;  %v153_v9 = vmul.f32 %v3677_v25, %v152_v5  ;;  %v162_v11 = vmul.f32 %v147_v38, %v4118_v42 }
 0x11a   :  { %v273_v47 = vadd.f32 %v3679_v43, %v272_v46 }
 0x11b   :  { %v157_v24 = vsel %vm156_vm4, %v3677_v25, %v153_v9  ;;  %v169_v13 = vmul.f32 %v3649_v40, %v162_v11 }
 0x11c   :  { %v163_v12 = vmul.f32 %v157_v24, %v4108_v37  ;;  %v4194_v48 = vsel %vm274_vm6, %v3679_v43, %v273_v47  ;;  %v4234_v24 = vld [vmem:[%s5901_s2 + $0x20] sm:$0xff] }
 0x11d   :  { %v176_v15 = vadd.f32 %v3650_v49, %v169_v13  ;;  %v4247_v13 = vld [vmem:[%s5901_s2 + $0x10] sm:$0xff] }
 0x11e   :  { %v170_v14 = vmul.f32 %v3649_v40, %v163_v12  ;;  %v4190_v40 = vld [vmem:[%s5901_s2 + $0x28] sm:$0xff]  ;;  %v4242_v12 = vld [vmem:[%s5901_s2 + $0x38] sm:$0xff] }
 0x120   :  { %v177_v16 = vadd.f32 %v3650_v49, %v170_v14  ;;  %v4256_v14 = vld [vmem:[%s5901_s2 + $0x18] sm:$0xff] }
 0x122   :  { %v188_v17 = vpack.c.bf16 %v177_v16, %v176_v15  ;;  %v4263_v15 = vld [vmem:[%s5901_s2 + $0x30] sm:$0xff] }
 0x129   :  { %3489 = vmatmul.msk.bf16.gmra.mxu0 %vm24_vm0, %v187_v10 }
 0x139   :  { %3490 = vmatmul.msk.bf16.gmra.mxu0 %vm24_vm0, %v188_v17 }
 0x196   :  { %v233_v19 = vpop.f32.mrf.mxu0 }
 0x197   :  { %v234_v28 = vadd.f32 %v3651_v21, %v233_v19 }
 0x199   :  { %v251_v32 = vsel %vm250_vm5, %v234_v28, 0.0 }
 0x19e   :  { %v235_v20 = vpop.f32.mrf.mxu0 }
 0x19f   :  { %v236_v33 = vadd.f32 %v3651_v21, %v235_v20 }
 0x1a1   :  { %v254_v18 = vsel %vm250_vm5, %v236_v33, 0.0 }
 0x1a6   :  { %v238_v22 = vpop.f32.mrf.mxu0 }
 0x1a7   :  { %v239_v23 = vadd.f32 %v3651_v21, %v238_v22 }
 0x1a9   :  { %v257_v42 = vsel %vm250_vm5, %v239_v23, 0.0 }
 0x1aa   :  { %258 = vadd.xlane.f32.xlu0 %v257_v42 }
 0x1ae   :  { %v240_v37 = vpop.f32.mrf.mxu0 }
 0x1af   :  { %v241_v26 = vadd.f32 %v3651_v21, %v240_v37 }
 0x1b1   :  { %v260_v27 = vsel %vm250_vm5, %v241_v26, 0.0 }
 0x1b2   :  { %261 = vadd.xlane.f32.xlu1 %v260_v27 }
 0x1b6   :  { %v243_v29 = vpop.f32.mrf.mxu0 }
 0x1b7   :  { %v244_v30 = vadd.f32 %v3651_v21, %v243_v29 }
 0x1b9   :  { %v263_v31 = vsel %vm250_vm5, %v244_v30, 0.0 }
 0x1ba   :  { %264 = vadd.xlane.f32.xlu2 %v263_v31  ;;  %252 = vadd.xlane.f32.xlu1 %v251_v32 }
 0x1be   :  { %v245_v34 = vpop.f32.mrf.mxu0 }
 0x1bf   :  { %v246_v35 = vadd.f32 %v3651_v21, %v245_v34 }
 0x1c1   :  { %v266_v36 = vsel %vm250_vm5, %v246_v35, 0.0 }
 0x1c2   :  { %255 = vadd.xlane.f32.xlu2 %v254_v18  ;;  %267 = vadd.xlane.f32.xlu0 %v266_v36 }
 0x1da   :  { %422 = vrot.lane.b32.xlu2 %v4190_v40, %s4032_s20 }
 0x21d   :  { %v259_v49 = vpop.xlane.xlu0 %258 }
 0x21e   :  { %v278_v50 = vmul.f32 %v4194_v48, %v259_v49 }
 0x220   :  { %v4197_v25 = vsub.f32 %v239_v23, %v278_v50 }
 0x222   :  { %v290_v51 = vmul.f32 %v4197_v25, %v4197_v25 }
 0x224   :  { %v300_v52 = vsel %vm250_vm5, %v290_v51, 0.0 }
 0x225   :  { %v262_v53 = vpop.xlane.xlu1 %261  ;;  %301 = vadd.xlane.f32.xlu0 %v300_v52 }
 0x226   :  { %v279_v54 = vmul.f32 %v4194_v48, %v262_v53  ;;  %v4285_v53 = vld [vmem:[%s5901_s2 + $0x4] ss:$0 sm:$0xff] }
 0x228   :  { %v4203_v55 = vsub.f32 %v241_v26, %v279_v54 }
 0x22a   :  { %v291_v56 = vmul.f32 %v4203_v55, %v4203_v55 }
 0x22c   :  { %v303_v39 = vsel %vm250_vm5, %v291_v56, 0.0 }
 0x22d   :  { %v265_v57 = vpop.xlane.xlu2 %264  ;;  %304 = vadd.xlane.f32.xlu1 %v303_v39  ;;  %v253_v58 = vpop.xlane.xlu1 %252 }
 0x22e   :  { %v280_v59 = vmul.f32 %v4194_v48, %v265_v57  ;;  %v276_v60 = vmul.f32 %v4194_v48, %v253_v58 }
 0x230   :  { %v4210_v61 = vsub.f32 %v244_v30, %v280_v59  ;;  %v4212_v62 = vsub.f32 %v234_v28, %v276_v60 }
 0x232   :  { %v292_v63 = vmul.f32 %v4210_v61, %v4210_v61  ;;  %v288_v0 = vmul.f32 %v4212_v62, %v4212_v62 }
 0x234   :  { %v306_v1 = vsel %vm250_vm5, %v292_v63, 0.0  ;;  %v294_v2 = vsel %vm250_vm5, %v288_v0, 0.0 }
 0x235   :  { %307 = vadd.xlane.f32.xlu2 %v306_v1  ;;  %v256_v3 = vpop.xlane.xlu2 %255  ;;  %295 = vadd.xlane.f32.xlu0 %v294_v2  ;;  %v268_v4 = vpop.xlane.xlu0 %267 }
 0x236   :  { %v277_v5 = vmul.f32 %v4194_v48, %v256_v3  ;;  %v281_v7 = vmul.f32 %v4194_v48, %v268_v4 }
 0x238   :  { %v4221_v6 = vsub.f32 %v236_v33, %v277_v5  ;;  %v4226_v9 = vsub.f32 %v246_v35, %v281_v7 }
 0x23a   :  { %v289_v8 = vmul.f32 %v4221_v6, %v4221_v6  ;;  %v293_v38 = vmul.f32 %v4226_v9, %v4226_v9 }
 0x23c   :  { %v297_v10 = vsel %vm250_vm5, %v289_v8, 0.0  ;;  %v309_v11 = vsel %vm250_vm5, %v293_v38, 0.0 }
 0x23d   :  { %298 = vadd.xlane.f32.xlu0 %v297_v10  ;;  %v4268_v20 = vpop.permute.xlu2 %422 }
 0x245   :  { %310 = vadd.xlane.f32.xlu0 %v309_v11 }
 0x246   :  { %420 = vrot.lane.b32.xlu1 %v4234_v24, %s4032_s20 }
 0x24d   :  { %426 = vrot.lane.b32.xlu2 %v4242_v12, %s4032_s20 }
 0x24e   :  { %416 = vrot.lane.b32.xlu1 %v4247_v13, %s4032_s20 }
 0x255   :  { %418 = vrot.lane.b32.xlu2 %v4256_v14, %s4032_s20 }
 0x259   :  { %424 = vrot.lane.b32.xlu0 %v4263_v15, %s4032_s20 }
 0x298   :  { %v302_v16 = vpop.xlane.xlu0 %301 }
 0x299   :  { %v314_v17 = vmul.f32 %v302_v16, %v4194_v48 }
 0x29b   :  { %v320_v19 = vadd.f32 1e-05, %v314_v17 }
 0x29d   :  { %3680 = vrsqrt.f32 %v320_v19  ;;  %vm350_vm8 = vweird.f32 %v320_v19 }
 0x2a0   :  { %v305_v21 = vpop.xlane.xlu1 %304 }
 0x2a1   :  { %v315_v22 = vmul.f32 %v305_v21, %v4194_v48 }
 0x2a3   :  { %v3681_v23 = vpop.eup %3680  ;;  %v321_v42 = vadd.f32 1e-05, %v315_v22 }
 0x2a4   :  { %v345_v37 = vmul.f32 %v3681_v23, %v320_v19  ;;  %vm351_vm7 = vweird.f32 %v3681_v23 }
 0x2a5   :  { %3682 = vrsqrt.f32 %v321_v42  ;;  %vm352_vm9 = vmor %vm350_vm8, %vm351_vm7  ;;  %vm360_vm11 = vweird.f32 %v321_v42 }
 0x2a6   :  { %v346_v26 = vmul.f32 %v3681_v23, %v345_v37 }
 0x2a8   :  { %v347_v27 = vmul.f32 0.5, %v346_v26  ;;  %v308_v28 = vpop.xlane.xlu2 %307  ;;  %v296_v29 = vpop.xlane.xlu0 %295 }
 0x2a9   :  { %v316_v30 = vmul.f32 %v308_v28, %v4194_v48  ;;  %v312_v31 = vmul.f32 %v296_v29, %v4194_v48 }
 0x2aa   :  { %v348_v32 = vsub.f32 1.5, %v347_v27 }
 0x2ab   :  { %v3683_v33 = vpop.eup %3682  ;;  %v322_v34 = vadd.f32 1e-05, %v316_v30  ;;  %v318_v35 = vadd.f32 1e-05, %v312_v31 }
 0x2ac   :  { %v349_v18 = vmul.f32 %v3681_v23, %v348_v32  ;;  %v355_v36 = vmul.f32 %v3683_v33, %v321_v42  ;;  %vm361_vm10 = vweird.f32 %v3683_v33 }
 0x2ad   :  { %3684 = vrsqrt.f32 %v322_v34  ;;  %vm362_vm12 = vmor %vm360_vm11, %vm361_vm10  ;;  %vm370_vm15 = vweird.f32 %v322_v34  ;;  %vm330_vm2 = vweird.f32 %v318_v35 }
 0x2ae   :  { %v356_v41 = vmul.f32 %v3683_v33, %v355_v36  ;;  %3686 = vrsqrt.f32 %v318_v35  ;;  %v353_v43 = vsel %vm352_vm9, %v3681_v23, %v349_v18 }
 0x2af   :  { %v386_v45 = vmul.f32 %v353_v43, %v4197_v25 }
 0x2b0   :  { %v357_v46 = vmul.f32 0.5, %v356_v41  ;;  %v299_v47 = vpop.xlane.xlu0 %298 }
 0x2b1   :  { %v313_v49 = vmul.f32 %v299_v47, %v4194_v48  ;;  %v393_v54 = vmul.f32 %v4276_v44, %v386_v45 }
 0x2b2   :  { %v358_v50 = vsub.f32 1.5, %v357_v46 }
 0x2b3   :  { %v3685_v51 = vpop.eup %3684  ;;  %v4280_v52 = vadd.f32 1e-05, %v313_v49  ;;  %v400_v0 = vadd.f32 %v4285_v53, %v393_v54  ;;  %v427_v54 = vpop.permute.xlu2 %426 }
 0x2b4   :  { %v3687_v56 = vpop.eup %3686  ;;  %v359_v39 = vmul.f32 %v3683_v33, %v358_v50  ;;  %v365_v25 = vmul.f32 %v3685_v51, %v322_v34  ;;  %vm371_vm13 = vweird.f32 %v3685_v51 }
 0x2b5   :  { %v325_v57 = vmul.f32 %v3687_v56, %v318_v35  ;;  %3688 = vrsqrt.f32 %v4280_v52  ;;  %vm331_vm14 = vweird.f32 %v3687_v56  ;;  %vm372_vm1 = vmor %vm370_vm15, %vm371_vm13  ;;  %vm340_vm6 = vweird.f32 %v4280_v52 }
 0x2b6   :  { %v363_v58 = vsel %vm362_vm12, %v3683_v33, %v359_v39  ;;  %v366_v59 = vmul.f32 %v3685_v51, %v365_v25  ;;  %vm332_vm3 = vmor %vm330_vm2, %vm331_vm14 }
 0x2b7   :  { %v387_v60 = vmul.f32 %v363_v58, %v4203_v55  ;;  %v326_v63 = vmul.f32 %v3687_v56, %v325_v57 }
 0x2b8   :  { %v367_v1 = vmul.f32 0.5, %v366_v59  ;;  %v421_v2 = vpop.permute.xlu1 %420  ;;  %v311_v3 = vpop.xlane.xlu0 %310 }
 0x2b9   :  { %v327_v4 = vmul.f32 0.5, %v326_v63  ;;  %v436_v5 = vmul.f32 %v421_v2, %v400_v0  ;;  %v317_v7 = vmul.f32 %v311_v3, %v4194_v48  ;;  %v394_v8 = vmul.f32 %v4276_v44, %v387_v60 }
 0x2ba   :  { %v368_v10 = vsub.f32 1.5, %v367_v1 }
 0x2bb   :  { %v3689_v38 = vpop.eup %3688  ;;  %v328_v11 = vsub.f32 1.5, %v327_v4  ;;  %v4294_v16 = vadd.f32 %v436_v5, %v4234_v24  ;;  %v323_v55 = vadd.f32 1e-05, %v317_v7  ;;  %v401_v17 = vadd.f32 %v4285_v53, %v394_v8 }
 0x2bc   :  { %v369_v19 = vmul.f32 %v3685_v51, %v368_v10  ;;  %v335_v21 = vmul.f32 %v3689_v38, %v4280_v52  ;;  %vm341_vm4 = vweird.f32 %v3689_v38 }
 0x2bd   :  { %v329_v22 = vmul.f32 %v3687_v56, %v328_v11  ;;  %3690 = vrsqrt.f32 %v323_v55  ;;  %v454_v23 = vsel %vm250_vm5, %v4294_v16, 0.0  ;;  %v437_v24 = vmul.f32 %v4268_v20, %v401_v17  ;;  %vm342_vm7 = vmor %vm340_vm6, %vm341_vm4 }
 0x2be   :  { %v336_v42 = vmul.f32 %v3689_v38, %v335_v21  ;;  %455 = vadd.xlane.f32.xlu1 %v454_v23  ;;  %v373_v37 = vsel %vm372_vm1, %v3685_v51, %v369_v19  ;;  %vm380_vm9 = vweird.f32 %v323_v55 }
 0x2bf   :  { %v333_v26 = vsel %vm332_vm3, %v3687_v56, %v329_v22  ;;  %v4302_v28 = vadd.f32 %v437_v24, %v4190_v40  ;;  %v388_v30 = vmul.f32 %v373_v37, %v4210_v61 }
 0x2c0   :  { %v337_v27 = vmul.f32 0.5, %v336_v42  ;;  %v384_v29 = vmul.f32 %v333_v26, %v4212_v62  ;;  %v417_v35 = vpop.permute.xlu1 %416 }
 0x2c1   :  { %v457_v32 = vsel %vm250_vm5, %v4302_v28, 0.0  ;;  %v395_v36 = vmul.f32 %v4276_v44, %v388_v30 }
 0x2c2   :  { %v338_v31 = vsub.f32 1.5, %v337_v27  ;;  %v391_v33 = vmul.f32 %v4276_v44, %v384_v29  ;;  %458 = vadd.xlane.f32.xlu2 %v457_v32 }
 0x2c3   :  { %v3691_v34 = vpop.eup %3690  ;;  %v402_v45 = vadd.f32 %v4285_v53, %v395_v36  ;;  %v3621_v36 = vld [vmem:[%s5900_s1 + $0x54] sm:$0xf0] }
 0x2c4   :  { %v375_v20 = vmul.f32 %v3691_v34, %v323_v55  ;;  %v398_v18 = vadd.f32 %v4285_v53, %v391_v33  ;;  %v339_v40 = vmul.f32 %v3689_v38, %v338_v31  ;;  %vm381_vm8 = vweird.f32 %v3691_v34 }
 0x2c5   :  { %vm382_vm10 = vmor %vm380_vm9, %vm381_vm8 }
 0x2c6   :  { %v376_v41 = vmul.f32 %v3691_v34, %v375_v20  ;;  %v434_v62 = vmul.f32 %v417_v35, %v398_v18  ;;  %v343_v49 = vsel %vm342_vm7, %v3689_v38, %v339_v40  ;;  %v3501_v18 = vld [vmem:[%s5900_s1 + $0x50] sm:$0xf]  ;;  %v3620_v40 = vld [vmem:[%s5900_s1 + $0x54] sm:$0xf] }
 0x2c7   :  { %v385_v52 = vmul.f32 %v343_v49, %v4221_v6  ;;  %v419_v6 = vpop.permute.xlu2 %418 }
 0x2c8   :  { %v377_v61 = vmul.f32 0.5, %v376_v41  ;;  %v4313_v43 = vadd.f32 %v434_v62, %v4247_v13  ;;  %v4390_v41 = vor.u32 %v3621_v36, %v3501_v18  ;;  %v3503_v62 = vld [vmem:[%s5900_s1 + $0x58] sm:$0xf0] }
 0x2c9   :  { %v392_v59 = vmul.f32 %v4276_v44, %v385_v52 }
 0x2ca   :  { %v378_v46 = vsub.f32 1.5, %v377_v61  ;;  %v448_v47 = vsel %vm250_vm5, %v4313_v43, 0.0  ;;  %v4395_v61 = vor.u32 %v3620_v40, %v3503_v62  ;;  %3630 = vmatpush.bf16.msra.mxu1 %v4390_v41  ;;  %636 = vmatpush.bf16.msrb.mxu0 %v4390_v41 }
 0x2cb   :  { %449 = vadd.xlane.f32.xlu2 %v448_v47  ;;  %v425_v50 = vpop.permute.xlu0 %424  ;;  %v399_v0 = vadd.f32 %v4285_v53, %v392_v59  ;;  %v3618_v47 = vld [vmem:[%s5900_s1 + $0x44] sm:$0xf] }
 0x2cc   :  { %v379_v51 = vmul.f32 %v3691_v34, %v378_v46  ;;  %v438_v56 = vmul.f32 %v425_v50, %v402_v45  ;;  %3632 = vmatpush.bf16.msra.mxu3 %v4395_v61  ;;  %v3493_v45 = vld [vmem:[%s5900_s1 + $0x40] sm:$0xf]  ;;  %v3619_v46 = vld [vmem:[%s5900_s1 + $0x44] sm:$0xf0]  ;;  %660 = vmatpush.bf16.msra.mxu2 %v4395_v61  ;;  %v3495_v50 = vld [vmem:[%s5900_s1 + $0x48] sm:$0xf0] }
 0x2cd   :  { %v4410_v49 = vor.u32 %v3619_v46, %v3493_v45 }
 0x2ce   :  { %v383_v13 = vsel %vm382_vm10, %v3691_v34, %v379_v51  ;;  %v4320_v39 = vadd.f32 %v438_v56, %v4263_v15  ;;  %v435_v15 = vmul.f32 %v419_v6, %v399_v0 }
 0x2cf   :  { %v389_v25 = vmul.f32 %v383_v13, %v4226_v9  ;;  %3631 = vmatpush.bf16.msra.mxu1 %v4410_v49  ;;  %637 = vmatpush.bf16.msrb.mxu0 %v4410_v49 }
 0x2d0   :  { %v460_v57 = vsel %vm250_vm5, %v4320_v39, 0.0  ;;  %v4335_v2 = vadd.f32 %v435_v15, %v4256_v14 }
 0x2d1   :  { %v396_v58 = vmul.f32 %v4276_v44, %v389_v25  ;;  %461 = vadd.xlane.f32.xlu0 %v460_v57 }
 0x2d2   :  { %v451_v44 = vsel %vm250_vm5, %v4335_v2, 0.0 }
 0x2d3   :  { %v403_v60 = vadd.f32 %v4285_v53, %v396_v58 }
 0x2d5   :  { %v439_v63 = vmul.f32 %v427_v54, %v403_v60  ;;  %v4415_v54 = vor.u32 %v3618_v47, %v3495_v50 }
 0x2d7   :  { %v4330_v1 = vadd.f32 %v439_v63, %v4242_v12  ;;  %3633 = vmatpush.bf16.msra.mxu3 %v4415_v54  ;;  %661 = vmatpush.bf16.msra.mxu2 %v4415_v54 }
 0x2d9   :  { %v463_v9 = vsel %vm250_vm5, %v4330_v1, 0.0 }
 0x2da   :  { %464 = vadd.xlane.f32.xlu1 %v463_v9 }
 0x2e2   :  { %452 = vadd.xlane.f32.xlu1 %v451_v44 }
 0x331   :  { %v456_v3 = vpop.xlane.xlu1 %455 }
 0x332   :  { %v468_v4 = vmul.f32 %v456_v3, %v4194_v48 }
 0x334   :  { %v4341_v53 = vsub.f32 %v4294_v16, %v468_v4 }
 0x335   :  { %v459_v12 = vpop.xlane.xlu2 %458 }
 0x336   :  { %v480_v5 = vmul.f32 %v4341_v53, %v4341_v53  ;;  %v469_v7 = vmul.f32 %v459_v12, %v4194_v48 }
 0x338   :  { %v490_v8 = vsel %vm250_vm5, %v480_v5, 0.0  ;;  %v4348_v14 = vsub.f32 %v4302_v28, %v469_v7 }
 0x339   :  { %491 = vadd.xlane.f32.xlu0 %v490_v8 }
 0x33a   :  { %v481_v10 = vmul.f32 %v4348_v14, %v4348_v14 }
 0x33c   :  { %v493_v38 = vsel %vm250_vm5, %v481_v10, 0.0 }
 0x33d   :  { %494 = vadd.xlane.f32.xlu2 %v493_v38 }
 0x33e   :  { %v450_v11 = vpop.xlane.xlu2 %449 }
 0x33f   :  { %v466_v55 = vmul.f32 %v450_v11, %v4194_v48 }
 0x341   :  { %v4355_v17 = vsub.f32 %v4313_v43, %v466_v55 }
 0x343   :  { %v478_v19 = vmul.f32 %v4355_v17, %v4355_v17 }
 0x344   :  { %v462_v21 = vpop.xlane.xlu0 %461 }
 0x345   :  { %v470_v22 = vmul.f32 %v462_v21, %v4194_v48  ;;  %v484_v23 = vsel %vm250_vm5, %v478_v19, 0.0  ;;  %v4432_v19 = vld [vmem:[%s5901_s2 + $0x5] ss:$0 sm:$0xff] }
 0x346   :  { %485 = vadd.xlane.f32.xlu2 %v484_v23 }
 0x347   :  { %v4362_v42 = vsub.f32 %v4320_v39, %v470_v22 }
 0x349   :  { %v482_v24 = vmul.f32 %v4362_v42, %v4362_v42 }
 0x34b   :  { %v496_v37 = vsel %vm250_vm5, %v482_v24, 0.0 }
 0x34c   :  { %497 = vadd.xlane.f32.xlu1 %v496_v37 }
 0x34d   :  { %v465_v26 = vpop.xlane.xlu1 %464 }
 0x34e   :  { %v471_v27 = vmul.f32 %v465_v26, %v4194_v48  ;;  %v4439_v26 = vld [vmem:[%s5901_s2 + $0x6] ss:$0 sm:$0xff] }
 0x350   :  { %v4369_v29 = vsub.f32 %v4330_v1, %v471_v27 }
 0x352   :  { %v483_v30 = vmul.f32 %v4369_v29, %v4369_v29 }
 0x354   :  { %v499_v31 = vsel %vm250_vm5, %v483_v30, 0.0 }
 0x355   :  { %v453_v32 = vpop.xlane.xlu1 %452  ;;  %500 = vadd.xlane.f32.xlu0 %v499_v31 }
 0x356   :  { %v467_v33 = vmul.f32 %v453_v32, %v4194_v48 }
 0x358   :  { %v4376_v34 = vsub.f32 %v4335_v2, %v467_v33 }
 0x35a   :  { %v479_v35 = vmul.f32 %v4376_v34, %v4376_v34 }
 0x35c   :  { %v487_v20 = vsel %vm250_vm5, %v479_v35, 0.0 }
 0x35d   :  { %488 = vadd.xlane.f32.xlu1 %v487_v20 }
 0x3ac   :  { %v492_v51 = vpop.xlane.xlu0 %491 }
 0x3ad   :  { %v504_v56 = vmul.f32 %v492_v51, %v4194_v48 }
 0x3af   :  { %v510_v52 = vadd.f32 1e-05, %v504_v56 }
 0x3b0   :  { %v495_v13 = vpop.xlane.xlu2 %494 }
 0x3b1   :  { %3692 = vrsqrt.f32 %v510_v52  ;;  %v505_v25 = vmul.f32 %v495_v13, %v4194_v48  ;;  %vm540_vm12 = vweird.f32 %v510_v52 }
 0x3b3   :  { %v511_v57 = vadd.f32 1e-05, %v505_v25 }
 0x3b5   :  { %3694 = vrsqrt.f32 %v511_v57  ;;  %vm550_vm15 = vweird.f32 %v511_v57 }
 0x3b7   :  { %v3693_v58 = vpop.eup %3692 }
 0x3b8   :  { %v535_v59 = vmul.f32 %v3693_v58, %v510_v52  ;;  %vm541_vm11 = vweird.f32 %v3693_v58 }
 0x3b9   :  { %v486_v60 = vpop.xlane.xlu2 %485  ;;  %vm542_vm13 = vmor %vm540_vm12, %vm541_vm11 }
 0x3ba   :  { %v536_v63 = vmul.f32 %v3693_v58, %v535_v59  ;;  %v502_v0 = vmul.f32 %v486_v60, %v4194_v48 }
 0x3bb   :  { %v3695_v6 = vpop.eup %3694 }
 0x3bc   :  { %v537_v15 = vmul.f32 0.5, %v536_v63  ;;  %v545_v9 = vmul.f32 %v3695_v6, %v511_v57  ;;  %v4424_v4 = vadd.f32 1e-05, %v502_v0  ;;  %vm551_vm14 = vweird.f32 %v3695_v6 }
 0x3bd   :  { %vm552_vm1 = vmor %vm550_vm15, %vm551_vm14  ;;  %vm696_vm15 = vcmask 64512  }
 0x3be   :  { %v538_v44 = vsub.f32 1.5, %v537_v15  ;;  %v546_v3 = vmul.f32 %v3695_v6, %v545_v9  ;;  %3696 = vrsqrt.f32 %v4424_v4  ;;  %vm520_vm10 = vweird.f32 %v4424_v4 }
 0x3bf   :  { %v498_v12 = vpop.xlane.xlu1 %497 }
 0x3c0   :  { %v539_v5 = vmul.f32 %v3693_v58, %v538_v44  ;;  %v506_v7 = vmul.f32 %v498_v12, %v4194_v48  ;;  %v547_v8 = vmul.f32 0.5, %v546_v3 }
 0x3c2   :  { %v543_v10 = vsel %vm542_vm13, %v3693_v58, %v539_v5  ;;  %v512_v38 = vadd.f32 1e-05, %v506_v7  ;;  %v548_v11 = vsub.f32 1.5, %v547_v8 }
 0x3c3   :  { %v576_v55 = vmul.f32 %v543_v10, %v4341_v53 }
 0x3c4   :  { %3698 = vrsqrt.f32 %v512_v38  ;;  %v549_v21 = vmul.f32 %v3695_v6, %v548_v11  ;;  %v3697_v53 = vpop.eup %3696  ;;  %vm560_vm3 = vweird.f32 %v512_v38 }
 0x3c5   :  { %v583_v37 = vmul.f32 %v4432_v19, %v576_v55  ;;  %v515_v35 = vmul.f32 %v3697_v53, %v4424_v4  ;;  %vm521_vm7 = vweird.f32 %v3697_v53 }
 0x3c6   :  { %v553_v22 = vsel %vm552_vm1, %v3695_v6, %v549_v21  ;;  %vm522_vm11 = vmor %vm520_vm10, %vm521_vm7  ;;  %vm739_vm1 = vcmask 392192  }
 0x3c7   :  { %v577_v24 = vmul.f32 %v553_v22, %v4348_v14  ;;  %v590_v20 = vadd.f32 %v4439_v26, %v583_v37  ;;  %v516_v62 = vmul.f32 %v3697_v53, %v515_v35 }
 0x3c8   :  { %v501_v23 = vpop.xlane.xlu0 %500 }
 0x3c9   :  { %v507_v27 = vmul.f32 %v501_v23, %v4194_v48  ;;  %v584_v31 = vmul.f32 %v4432_v19, %v577_v24  ;;  %v517_v56 = vmul.f32 0.5, %v516_v62 }
 0x3ca   :  { %v3699_v30 = vpop.eup %3698 }
 0x3cb   :  { %v555_v32 = vmul.f32 %v3699_v30, %v512_v38  ;;  %v513_v33 = vadd.f32 1e-05, %v507_v27  ;;  %v591_v14 = vadd.f32 %v4439_v26, %v584_v31  ;;  %vm561_vm2 = vweird.f32 %v3699_v30 }
 0x3cc   :  { %vm562_vm4 = vmor %vm560_vm3, %vm561_vm2  ;;  %v518_v57 = vsub.f32 1.5, %v517_v56 }
 0x3cd   :  { %v556_v18 = vmul.f32 %v3699_v30, %v555_v32  ;;  %3700 = vrsqrt.f32 %v513_v33  ;;  %v599_v36 = vpack.c.bf16 %v591_v14, %v590_v20  ;;  %vm570_vm8 = vweird.f32 %v513_v33 }
 0x3ce   :  { %v519_v6 = vmul.f32 %v3697_v53, %v518_v57 }
 0x3cf   :  { %v557_v40 = vmul.f32 0.5, %v556_v18  ;;  %3508 = vmatmul.msk.bf16.vlgmr.msra.gmra.mxu1 %vm250_vm5, %v599_v36  ;;  %3511 = vmatmul.msk.bf16.vlgmr.msra.gmra.mxu3 %vm250_vm5, %v599_v36 }
 0x3d0   :  { %v489_v45 = vpop.xlane.xlu1 %488  ;;  %v523_v7 = vsel %vm522_vm11, %v3697_v53, %v519_v6 }
 0x3d1   :  { %v558_v46 = vsub.f32 1.5, %v557_v40  ;;  %v503_v47 = vmul.f32 %v489_v45, %v4194_v48 }
 0x3d3   :  { %v3701_v50 = vpop.eup %3700  ;;  %v509_v51 = vadd.f32 1e-05, %v503_v47  ;;  %v559_v52 = vmul.f32 %v3699_v30, %v558_v46 }
 0x3d4   :  { %v565_v13 = vmul.f32 %v3701_v50, %v513_v33  ;;  %vm571_vm6 = vweird.f32 %v3701_v50 }
 0x3d5   :  { %3702 = vrsqrt.f32 %v509_v51  ;;  %v563_v58 = vsel %vm562_vm4, %v3699_v30, %v559_v52  ;;  %vm572_vm9 = vmor %vm570_vm8, %vm571_vm6  ;;  %vm530_vm13 = vweird.f32 %v509_v51 }
 0x3d6   :  { %v566_v25 = vmul.f32 %v3701_v50, %v565_v13  ;;  %v578_v0 = vmul.f32 %v563_v58, %v4362_v42  ;;  %v574_v42 = vmul.f32 %v523_v7, %v4355_v17 }
 0x3d8   :  { %v567_v59 = vmul.f32 0.5, %v566_v25  ;;  %v585_v5 = vmul.f32 %v4432_v19, %v578_v0  ;;  %v581_v23 = vmul.f32 %v4432_v19, %v574_v42 }
 0x3da   :  { %v568_v60 = vsub.f32 1.5, %v567_v59  ;;  %v592_v11 = vadd.f32 %v4439_v26, %v585_v5  ;;  %v588_v17 = vadd.f32 %v4439_v26, %v581_v23  ;;  %v4523_v5 = vld [vmem:[%s5901_s2 + $0x40] sm:$0xff]  ;;  %v4544_v23 = vld [vmem:[%s5901_s2 + $0x58] sm:$0xff] }
 0x3db   :  { %v3703_v63 = vpop.eup %3702 }
 0x3dc   :  { %v569_v15 = vmul.f32 %v3701_v50, %v568_v60  ;;  %v525_v9 = vmul.f32 %v3703_v63, %v509_v51  ;;  %vm531_vm12 = vweird.f32 %v3703_v63 }
 0x3dd   :  { %vm532_vm14 = vmor %vm530_vm13, %vm531_vm12 }
 0x3de   :  { %v573_v44 = vsel %vm572_vm9, %v3701_v50, %v569_v15  ;;  %v526_v3 = vmul.f32 %v3703_v63, %v525_v9 }
 0x3df   :  { %v579_v12 = vmul.f32 %v573_v44, %v4369_v29 }
 0x3e0   :  { %v527_v8 = vmul.f32 0.5, %v526_v3 }
 0x3e1   :  { %v586_v10 = vmul.f32 %v4432_v19, %v579_v12 }
 0x3e2   :  { %v528_v38 = vsub.f32 1.5, %v527_v8 }
 0x3e3   :  { %v593_v55 = vadd.f32 %v4439_v26, %v586_v10 }
 0x3e4   :  { %v529_v4 = vmul.f32 %v3703_v63, %v528_v38  ;;  %v4530_v38 = vld [vmem:[%s5901_s2 + $0x48] sm:$0xff] }
 0x3e5   :  { %v600_v21 = vpack.c.bf16 %v593_v55, %v592_v11 }
 0x3e6   :  { %v533_v22 = vsel %vm532_vm14, %v3703_v63, %v529_v4  ;;  %v4537_v4 = vld [vmem:[%s5901_s2 + $0x50] sm:$0xff] }
 0x3e7   :  { %v575_v29 = vmul.f32 %v533_v22, %v4376_v34  ;;  %3509 = vmatmul.msk.bf16.gmra.mxu1 %vm250_vm5, %v600_v21  ;;  %3512 = vmatmul.msk.bf16.gmra.mxu3 %vm250_vm5, %v600_v21 }
 0x3e9   :  { %v582_v24 = vmul.f32 %v4432_v19, %v575_v29 }
 0x3eb   :  { %v589_v37 = vadd.f32 %v4439_v26, %v582_v24 }
 0x3ed   :  { %v598_v53 = vpack.c.bf16 %v589_v37, %v588_v17 }
 0x3ef   :  { %3507 = vmatmul.msk.bf16.vlgmr.msrb.gmra.mxu0 %vm250_vm5, %v598_v53  ;;  %3510 = vmatmul.msk.bf16.vlgmr.msra.gmra.mxu2 %vm250_vm5, %v598_v53  ;;  %v4551_v53 = vld [vmem:[%s5901_s2 + $0x60] sm:$0xff] }
 0x44c   :  { %v644_v27 = vpop.f32.mrf.mxu1 }
 0x452   :  { %v668_v20 = vpop.f32.mrf.mxu3 }
 0x454   :  { %v646_v30 = vpop.f32.mrf.mxu1 }
 0x455   :  { %v4466_v34 = vpack.c.bf16 %v646_v30, %v644_v27 }
 0x457   :  { %817 = vrot.lane.b32.xlu2 %v4466_v34, %s4034_s27 }
 0x45a   :  { %v670_v14 = vpop.f32.mrf.mxu3 }
 0x45b   :  { %v4502_v59 = vpack.c.bf16 %v670_v14, %v668_v20 }
 0x45f   :  { %811 = vrot.lane.b32.xlu2 %v4466_v34, %s4035_s28 }
 0x464   :  { %v649_v19 = vpop.f32.mrf.mxu1 }
 0x467   :  { %692 = vrot.lane.b32.xlu2 %v4466_v34, %s4032_s20 }
 0x46a   :  { %v673_v62 = vpop.f32.mrf.mxu3 }
 0x46c   :  { %v639_v26 = vpop.f32.mrf.mxu0  ;;  %v651_v31 = vpop.f32.mrf.mxu1 }
 0x46d   :  { %v4474_v32 = vpack.c.bf16 %v651_v31, %v649_v19 }
 0x46f   :  { %819 = vrot.lane.b32.xlu0 %v4474_v32, %s4034_s27  ;;  %934 = vrot.lane.b32.xlu2 %v4466_v34, %s4036_s29 }
 0x472   :  { %v663_v51 = vpop.f32.mrf.mxu2  ;;  %v675_v56 = vpop.f32.mrf.mxu3 }
 0x473   :  { %v4498_v25 = vpack.c.bf16 %v675_v56, %v673_v62 }
 0x474   :  { %v641_v33 = vpop.f32.mrf.mxu0 }
 0x475   :  { %v4480_v35 = vpack.c.bf16 %v641_v33, %v639_v26  ;;  %v4564_v26 = vld [vmem:[%s5901_s2 + $0x68] sm:$0xff] }
 0x477   :  { %815 = vrot.lane.b32.xlu1 %v4480_v35, %s4034_s27  ;;  %809 = vrot.lane.b32.xlu0 %v4480_v35, %s4035_s28 }
 0x47a   :  { %v665_v60 = vpop.f32.mrf.mxu2 }
 0x47b   :  { %v4505_v6 = vpack.c.bf16 %v665_v60, %v663_v51 }
 0x47f   :  { %690 = vrot.lane.b32.xlu1 %v4480_v35, %s4032_s20  ;;  %813 = vrot.lane.b32.xlu0 %v4474_v32, %s4035_s28 }
 0x487   :  { %932 = vrot.lane.b32.xlu1 %v4480_v35, %s4036_s29  ;;  %936 = vrot.lane.b32.xlu0 %v4474_v32, %s4036_s29 }
 0x48f   :  { %694 = vrot.lane.b32.xlu1 %v4474_v32, %s4032_s20 }
 0x4b1   :  { %v818_v18 = vpop.permute.xlu2 %817 }
 0x4b2   :  { %v834_v50 = vsel %vm696_vm15, %v818_v18, 0 }
 0x4b9   :  { %v812_v45 = vpop.permute.xlu2 %811 }
 0x4c1   :  { %v693_v58 = vpop.permute.xlu2 %692 }
 0x4c2   :  { %v710_v3 = vsel %vm696_vm15, %v693_v58, 0 }
 0x4c9   :  { %v935_v15 = vpop.permute.xlu2 %934 }
 0x4e1   :  { %v820_v36 = vpop.permute.xlu0 %819 }
 0x4e2   :  { %v837_v40 = vsel %vm696_vm15, %v820_v36, 0 }
 0x4e3   :  { %844 = vmatpush.bf16.xpose.msrb.mxu1 %v837_v40 }
 0x4e9   :  { %v816_v46 = vpop.permute.xlu1 %815  ;;  %v810_v47 = vpop.permute.xlu0 %809 }
 0x4ea   :  { %v831_v57 = vsel %vm696_vm15, %v816_v46, 0 }
 0x4eb   :  { %845 = vmatpush.bf16.xpose.msrb.mxu1 %v834_v50 }
 0x4f1   :  { %v691_v52 = vpop.permute.xlu1 %690  ;;  %v814_v13 = vpop.permute.xlu0 %813 }
 0x4f2   :  { %v707_v12 = vsel %vm696_vm15, %v691_v52, 0 }
 0x4f3   :  { %846 = vmatpush.bf16.xpose.msrb.mxu1 %v831_v57 }
 0x4f9   :  { %v933_v63 = vpop.permute.xlu1 %932  ;;  %v937_v0 = vpop.permute.xlu0 %936 }
 0x4fa   :  { %3516 = vmatmul.msk.bf16.vlgmr.msrb.gmra.mxu1 %vm696_vm15, %v810_v47  ;;  %955 = vmatpush.bf16.msrb.mxu2 %v937_v0 }
 0x4fb   :  { %1156 = vmatpush.bf16.msra.mxu1 %v4498_v25 }
 0x4fe   :  { %956 = vmatpush.bf16.msrb.mxu2 %v935_v15 }
 0x4ff   :  { %1157 = vmatpush.bf16.msra.mxu1 %v4502_v59 }
 0x501   :  { %v695_v9 = vpop.permute.xlu1 %694 }
 0x502   :  { %957 = vmatpush.bf16.msrb.mxu2 %v933_v63  ;;  %v713_v44 = vsel %vm696_vm15, %v695_v9, 0 }
 0x503   :  { %1158 = vmatpush.bf16.msra.mxu1 %v4505_v6  ;;  %720 = vmatpush.bf16.xpose.msrb.mxu3 %v713_v44 }
 0x50a   :  { %3517 = vmatmul.msk.bf16.gmra.mxu1 %vm696_vm15, %v812_v45 }
 0x50b   :  { %721 = vmatpush.bf16.xpose.msrb.mxu3 %v710_v3 }
 0x513   :  { %722 = vmatpush.bf16.xpose.msrb.mxu3 %v707_v12 }
 0x51a   :  { %3513 = vmatmul.msk.bf16.vlgmr.msrb.gmra.mxu3 %vm696_vm15, %v4480_v35  ;;  %3518 = vmatmul.msk.bf16.gmra.mxu1 %vm696_vm15, %v814_v13 }
 0x52a   :  { %3514 = vmatmul.msk.bf16.gmra.mxu3 %vm696_vm15, %v4466_v34 }
 0x53a   :  { %3515 = vmatmul.msk.bf16.gmra.mxu3 %vm696_vm15, %v4474_v32 }
 0x577   :  { %v848_v7 = vpop.f32.mrf.mxu1 }
 0x578   :  { %v849_v8 = vadd.f32 %v848_v7, %v4523_v5 }
 0x57a   :  { %v863_v10 = vsel %vm739_vm1, %v849_v8, -inf }
 0x57b   :  { %864 = vmax.xlane.f32.xlu1 %v863_v10 }
 0x57f   :  { %v850_v42 = vpop.f32.mrf.mxu1 }
 0x580   :  { %v851_v11 = vadd.f32 %v850_v42, %v4530_v38 }
 0x582   :  { %v866_v55 = vsel %vm739_vm1, %v851_v11, -inf }
 0x583   :  { %867 = vmax.xlane.f32.xlu2 %v866_v55 }
 0x587   :  { %v853_v21 = vpop.f32.mrf.mxu1 }
 0x588   :  { %v854_v22 = vadd.f32 %v853_v21, %v4537_v4 }
 0x58a   :  { %v869_v29 = vsel %vm739_vm1, %v854_v22, -inf }
 0x58b   :  { %870 = vmax.xlane.f32.xlu0 %v869_v29 }
 0x58f   :  { %v855_v24 = vpop.f32.mrf.mxu1 }
 0x590   :  { %v856_v17 = vadd.f32 %v855_v24, %v4544_v23 }
 0x592   :  { %v872_v37 = vsel %vm739_vm1, %v856_v17, -inf }
 0x593   :  { %873 = vmax.xlane.f32.xlu1 %v872_v37 }
 0x597   :  { %v858_v27 = vpop.f32.mrf.mxu1 }
 0x598   :  { %v859_v30 = vadd.f32 %v858_v27, %v4551_v53 }
 0x59a   :  { %v875_v19 = vsel %vm739_vm1, %v859_v30, -inf }
 0x59b   :  { %876 = vmax.xlane.f32.xlu2 %v875_v19 }
 0x59d   :  { %v724_v24 = vpop.f32.mrf.mxu3 }
 0x59f   :  { %1191 = vrot.lane.b32.xlu0 %v4474_v32, %s4037_s13  ;;  %v860_v31 = vpop.f32.mrf.mxu1 }
 0x5a0   :  { %v861_v33 = vadd.f32 %v860_v31, %v4564_v26 }
 0x5a2   :  { %v878_v20 = vsel %vm739_vm1, %v861_v33, -inf }
 0x5ac   :  { %1026 = vrot.lane.b32.xlu1 %v4474_v32, %s4038_s14 }
 0x5b3   :  { %1024 = vrot.lane.b32.xlu2 %v4466_v34, %s4038_s14 }
 0x5c9   :  { %879 = vmax.xlane.f32.xlu0 %v878_v20 }
 0x5ee   :  { %v865_v14 = vpop.xlane.xlu1 %864 }
 0x5ef   :  { %v881_v18 = vsub.f32 %v849_v8, %v865_v14 }
 0x5f1   :  { %v887_v36 = vmul.f32 1.442695, %v881_v18 }
 0x5f3   :  { %3704 = vpow2.f32 %v887_v36 }
 0x5f6   :  { %v868_v40 = vpop.xlane.xlu2 %867 }
 0x5f7   :  { %v882_v62 = vsub.f32 %v851_v11, %v868_v40 }
 0x5f9   :  { %v4568_v45 = vpop.eup %3704  ;;  %v889_v46 = vmul.f32 1.442695, %v882_v62 }
 0x5fa   :  { %v899_v47 = vsel %vm739_vm1, %v4568_v45, 0.0 }
 0x5fb   :  { %3706 = vpow2.f32 %v889_v46  ;;  %900 = vadd.xlane.f32.xlu0 %v899_v47 }
 0x5fe   :  { %v871_v50 = vpop.xlane.xlu0 %870 }
 0x5ff   :  { %v883_v51 = vsub.f32 %v854_v22, %v871_v50 }
 0x601   :  { %v4572_v56 = vpop.eup %3706  ;;  %v891_v52 = vmul.f32 1.442695, %v883_v51 }
 0x602   :  { %v902_v13 = vsel %vm739_vm1, %v4572_v56, 0.0 }
 0x603   :  { %3708 = vpow2.f32 %v891_v52  ;;  %903 = vadd.xlane.f32.xlu0 %v902_v13 }
 0x606   :  { %v874_v57 = vpop.xlane.xlu1 %873 }
 0x607   :  { %v884_v58 = vsub.f32 %v856_v17, %v874_v57  ;;  %v4626_v57 = vadd.f32 %v724_v24, %v4523_v5 }
 0x609   :  { %v4576_v60 = vpop.eup %3708  ;;  %v893_v63 = vmul.f32 1.442695, %v884_v58 }
 0x60a   :  { %v905_v0 = vsel %vm739_vm1, %v4576_v60, 0.0 }
 0x60b   :  { %3710 = vpow2.f32 %v893_v63  ;;  %906 = vadd.xlane.f32.xlu2 %v905_v0  ;;  %v740_v0 = vsel %vm739_vm1, %v4626_v57, -inf }
 0x60e   :  { %v877_v12 = vpop.xlane.xlu2 %876 }
 0x60f   :  { %v885_v11 = vsub.f32 %v859_v30, %v877_v12  ;;  %v726_v30 = vpop.f32.mrf.mxu3 }
 0x611   :  { %v4580_v15 = vpop.eup %3710  ;;  %v1192_v9 = vpop.permute.xlu0 %1191  ;;  %v895_v55 = vmul.f32 1.442695, %v885_v11 }
 0x612   :  { %v1209_v44 = vsel %vm696_vm15, %v1192_v9, 0  ;;  %v908_v3 = vsel %vm739_vm1, %v4580_v15, 0.0 }
 0x613   :  { %909 = vadd.xlane.f32.xlu1 %v908_v3  ;;  %1216 = vmatpush.bf16.xpose.msra.mxu2 %v1209_v44  ;;  %3712 = vpow2.f32 %v895_v55 }
 0x616   :  { %v1025_v10 = vpop.permute.xlu2 %1024 }
 0x617   :  { %1189 = vrot.lane.b32.xlu0 %v4466_v34, %s4037_s13  ;;  %v1041_v42 = vsel %vm696_vm15, %v1025_v10, 0  ;;  %v729_v31 = vpop.f32.mrf.mxu3 }
 0x619   :  { %v4595_v22 = vpop.eup %3712 }
 0x61a   :  { %v911_v37 = vsel %vm739_vm1, %v4595_v22, 0.0 }
 0x61e   :  { %v1027_v7 = vpop.permute.xlu1 %1026 }
 0x61f   :  { %v1044_v8 = vsel %vm696_vm15, %v1027_v7, 0  ;;  %v731_v20 = vpop.f32.mrf.mxu3 }
 0x620   :  { %1051 = vmatpush.bf16.xpose.msra.mxu3 %v1044_v8  ;;  %v4632_v44 = vadd.f32 %v731_v20, %v4544_v23 }
 0x622   :  { %v749_v12 = vsel %vm739_vm1, %v4632_v44, -inf }
 0x627   :  { %v734_v18 = vpop.f32.mrf.mxu3 }
 0x628   :  { %1052 = vmatpush.bf16.xpose.msra.mxu3 %v1041_v42  ;;  %v4615_v36 = vadd.f32 %v734_v18, %v4551_v53  ;;  %v4641_v42 = vadd.f32 %v729_v31, %v4537_v4 }
 0x62a   :  { %v752_v40 = vsel %vm739_vm1, %v4615_v36, -inf  ;;  %v746_v11 = vsel %vm739_vm1, %v4641_v42, -inf }
 0x62c   :  { %1022 = vrot.lane.b32.xlu1 %v4480_v35, %s4038_s14 }
 0x62f   :  { %v736_v55 = vpop.f32.mrf.mxu3 }
 0x634   :  { %1181 = vrot.lane.b32.xlu1 %v4480_v35, %s4039_s17 }
 0x63c   :  { %1020 = vrot.lane.b32.xlu1 %v4474_v32, %s4040_s18  ;;  %v880_v21 = vpop.xlane.xlu0 %879 }
 0x63d   :  { %v886_v29 = vsub.f32 %v861_v33, %v880_v21  ;;  %v4608_v33 = vadd.f32 %v726_v30, %v4530_v38  ;;  %v4646_v21 = vadd.f32 %v736_v55, %v4564_v26 }
 0x63f   :  { %v897_v17 = vmul.f32 1.442695, %v886_v29  ;;  %v743_v14 = vsel %vm739_vm1, %v4608_v33, -inf }
 0x641   :  { %3714 = vpow2.f32 %v897_v17  ;;  %912 = vadd.xlane.f32.xlu0 %v911_v37 }
 0x647   :  { %v4599_v27 = vpop.eup %3714 }
 0x648   :  { %v914_v19 = vsel %vm739_vm1, %v4599_v27, 0.0 }
 0x649   :  { %915 = vadd.xlane.f32.xlu2 %v914_v19 }
 0x655   :  { %1016 = vrot.lane.b32.xlu0 %v4480_v35, %s4040_s18 }
 0x65d   :  { %1183 = vrot.lane.b32.xlu0 %v4466_v34, %s4039_s17 }
 0x661   :  { %1187 = vrot.lane.b32.xlu2 %v4480_v35, %s4037_s13 }
 0x666   :  { %744 = vmax.xlane.f32.xlu1 %v743_v14 }
 0x669   :  { %1018 = vrot.lane.b32.xlu2 %v4466_v34, %s4040_s18 }
 0x66e   :  { %753 = vmax.xlane.f32.xlu1 %v752_v40  ;;  %v901_v62 = vpop.xlane.xlu0 %900 }
 0x66f   :  { %3716 = vrcp.f32 %v901_v62 }
 0x671   :  { %1185 = vrot.lane.b32.xlu2 %v4474_v32, %s4039_s17 }
 0x675   :  { %v3717_v47 = vpop.eup %3716 }
 0x676   :  { %v904_v46 = vpop.xlane.xlu0 %903  ;;  %v923_v51 = vmul.f32 %v3717_v47, %v4568_v45 }
 0x677   :  { %3718 = vrcp.f32 %v904_v46 }
 0x67d   :  { %v3719_v50 = vpop.eup %3718 }
 0x67e   :  { %v924_v52 = vmul.f32 %v3719_v50, %v4572_v56  ;;  %v907_v58 = vpop.xlane.xlu2 %906 }
 0x67f   :  { %3720 = vrcp.f32 %v907_v58 }
 0x680   :  { %v929_v13 = vpack.c.bf16 %v924_v52, %v923_v51 }
 0x682   :  { %3519 = vmatmul.msk.bf16.vlgmr.msrb.gmra.mxu2 %vm739_vm1, %v929_v13 }
 0x685   :  { %v3721_v56 = vpop.eup %3720 }
 0x686   :  { %v910_v63 = vpop.xlane.xlu1 %909  ;;  %v925_v7 = vmul.f32 %v3721_v56, %v4576_v60 }
 0x687   :  { %3722 = vrcp.f32 %v910_v63  ;;  %741 = vmax.xlane.f32.xlu0 %v740_v0 }
 0x689   :  { %v1190_v9 = vpop.permute.xlu0 %1189 }
 0x68a   :  { %v1206_v45 = vsel %vm696_vm15, %v1190_v9, 0 }
 0x68b   :  { %1217 = vmatpush.bf16.xpose.msra.mxu2 %v1206_v45 }
 0x68d   :  { %v3723_v3 = vpop.eup %3722 }
 0x68e   :  { %v926_v8 = vmul.f32 %v3723_v3, %v4580_v15  ;;  %v755_v15 = vsel %vm739_vm1, %v4646_v21, -inf }
 0x68f   :  { %750 = vmax.xlane.f32.xlu0 %v749_v12 }
 0x690   :  { %v930_v10 = vpack.c.bf16 %v926_v8, %v925_v7 }
 0x692   :  { %3520 = vmatmul.msk.bf16.gmra.mxu2 %vm739_vm1, %v930_v10 }
 0x69a   :  { %747 = vmax.xlane.f32.xlu2 %v746_v11 }
 0x69e   :  { %v1023_v29 = vpop.permute.xlu1 %1022 }
 0x69f   :  { %v1038_v60 = vsel %vm696_vm15, %v1023_v29, 0 }
 0x6a0   :  { %1053 = vmatpush.bf16.xpose.msra.mxu3 %v1038_v60 }
 0x6a2   :  { %756 = vmax.xlane.f32.xlu2 %v755_v15 }
 0x6a6   :  { %v1182_v40 = vpop.permute.xlu1 %1181 }
 0x6ae   :  { %v1021_v46 = vpop.permute.xlu1 %1020 }
 0x6b4   :  { %v913_v24 = vpop.xlane.xlu0 %912 }
 0x6b5   :  { %3724 = vrcp.f32 %v913_v24 }
 0x6bb   :  { %v3725_v37 = vpop.eup %3724 }
 0x6bc   :  { %v916_v17 = vpop.xlane.xlu2 %915  ;;  %v927_v31 = vmul.f32 %v3725_v37, %v4595_v22 }
 0x6bd   :  { %3726 = vrcp.f32 %v916_v17 }
 0x6c3   :  { %v3727_v30 = vpop.eup %3726 }
 0x6c4   :  { %v1188_v19 = vpop.permute.xlu2 %1187  ;;  %v928_v20 = vmul.f32 %v3727_v30, %v4599_v27 }
 0x6c5   :  { %v1203_v14 = vsel %vm696_vm15, %v1188_v19, 0 }
 0x6c6   :  { %1218 = vmatpush.bf16.xpose.msra.mxu2 %v1203_v14  ;;  %v931_v18 = vpack.c.bf16 %v928_v20, %v927_v31 }
 0x6c7   :  { %v1017_v62 = vpop.permute.xlu0 %1016 }
 0x6c8   :  { %3521 = vmatmul.msk.bf16.gmra.mxu2 %vm739_vm1, %v931_v18  ;;  %3525 = vmatmul.msk.bf16.vlgmr.msra.gmra.mxu3 %vm696_vm15, %v1017_v62 }
 0x6cc   :  { %v1019_v47 = vpop.permute.xlu2 %1018 }
 0x6ce   :  { %2055 = vmatpush.bf16.msrb.mxu2 %v4390_v41 }
 0x6cf   :  { %v1184_v52 = vpop.permute.xlu0 %1183 }
 0x6d2   :  { %2056 = vmatpush.bf16.msrb.mxu2 %v4410_v49 }
 0x6d4   :  { %v1186_v49 = vpop.permute.xlu2 %1185 }
 0x6d8   :  { %3526 = vmatmul.msk.bf16.gmra.mxu3 %vm696_vm15, %v1019_v47  ;;  %3531 = vmatmul.msk.bf16.vlgmr.msra.gmra.mxu2 %vm696_vm15, %v1182_v40 }
 0x6d9   :  { %v745_v22 = vpop.xlane.xlu1 %744 }
 0x6da   :  { %v759_v27 = vsub.f32 %v4608_v33, %v745_v22 }
 0x6dc   :  { %v766_v50 = vmul.f32 1.442695, %v759_v27 }
 0x6de   :  { %3728 = vpow2.f32 %v766_v50 }
 0x6e4   :  { %v4661_v51 = vpop.eup %3728 }
 0x6e5   :  { %v779_v41 = vsel %vm739_vm1, %v4661_v51, 0.0 }
 0x6e6   :  { %780 = vadd.xlane.f32.xlu2 %v779_v41 }
 0x6e8   :  { %3527 = vmatmul.msk.bf16.gmra.mxu3 %vm696_vm15, %v1021_v46  ;;  %3532 = vmatmul.msk.bf16.gmra.mxu2 %vm696_vm15, %v1184_v52 }
 0x6f8   :  { %3533 = vmatmul.msk.bf16.gmra.mxu2 %vm696_vm15, %v1186_v49 }
 0x6fa   :  { %v742_v13 = vpop.xlane.xlu0 %741 }
 0x6fb   :  { %v758_v0 = vsub.f32 %v4626_v57, %v742_v13 }
 0x6fd   :  { %v764_v56 = vmul.f32 1.442695, %v758_v0 }
 0x6fe   :  { %974 = vrot.lane.b32.xlu2 %v4480_v35, %s4041_s19 }
 0x6ff   :  { %3730 = vpow2.f32 %v764_v56 }
 0x702   :  { %v751_v22 = vpop.xlane.xlu0 %750 }
 0x703   :  { %v761_v50 = vsub.f32 %v4632_v44, %v751_v22 }
 0x705   :  { %v4670_v33 = vpop.f32.mrf.mxu2  ;;  %v4687_v57 = vpop.eup %3730  ;;  %v770_v52 = vmul.f32 1.442695, %v761_v50 }
 0x706   :  { %v776_v55 = vsel %vm739_vm1, %v4687_v57, 0.0 }
 0x70d   :  { %v4678_v45 = vpop.f32.mrf.mxu2  ;;  %v748_v8 = vpop.xlane.xlu2 %747 }
 0x70e   :  { %v760_v11 = vsub.f32 %v4641_v42, %v748_v8  ;;  %v754_v42 = vpop.xlane.xlu1 %753 }
 0x70f   :  { %v762_v31 = vsub.f32 %v4615_v36, %v754_v42 }
 0x710   :  { %v768_v29 = vmul.f32 1.442695, %v760_v11 }
 0x712   :  { %3732 = vpow2.f32 %v768_v29 }
 0x715   :  { %v4685_v7 = vpop.f32.mrf.mxu2  ;;  %v757_v49 = vpop.xlane.xlu2 %756 }
 0x716   :  { %v763_v13 = vsub.f32 %v4646_v21, %v757_v49 }
 0x718   :  { %v4701_v37 = vpop.eup %3732 }
 0x719   :  { %v782_v20 = vsel %vm739_vm1, %v4701_v37, 0.0 }
 0x71d   :  { %v4692_v60 = vpop.f32.mrf.mxu2 }
 0x74b   :  { %v1055_v58 = vpop.f32.mrf.mxu3  ;;  %v4703_v30 = vpop.f32.mrf.mxu2 }
 0x74c   :  { %v4673_v63 = vadd.f32 %v1055_v58, %v4523_v5 }
 0x74e   :  { %v1070_v9 = vsel %vm739_vm1, %v4673_v63, -inf }
 0x74f   :  { %1071 = vmax.xlane.f32.xlu0 %v1070_v9 }
 0x753   :  { %v1057_v3 = vpop.f32.mrf.mxu3  ;;  %v4711_v40 = vpop.f32.mrf.mxu2 }
 0x754   :  { %v4681_v12 = vadd.f32 %v1057_v3, %v4530_v38 }
 0x756   :  { %v1073_v35 = vsel %vm739_vm1, %v4681_v12, -inf }
 0x757   :  { %1074 = vmax.xlane.f32.xlu1 %v1073_v35 }
 0x75b   :  { %v1060_v10 = vpop.f32.mrf.mxu3  ;;  %v1220_v47 = vpop.f32.mrf.mxu2 }
 0x75c   :  { %v4722_v27 = vadd.f32 %v1220_v47, %v4523_v5  ;;  %v774_v5 = vmul.f32 1.442695, %v763_v13 }
 0x75e   :  { %v1235_v41 = vsel %vm739_vm1, %v4722_v27, -inf }
 0x75f   :  { %777 = vadd.xlane.f32.xlu1 %v776_v55 }
 0x763   :  { %v1062_v15 = vpop.f32.mrf.mxu3  ;;  %978 = vrot.lane.b32.xlu0 %v4474_v32, %s4041_s19  ;;  %v772_v32 = vmul.f32 1.442695, %v762_v31  ;;  %v1222_v0 = vpop.f32.mrf.mxu2 }
 0x764   :  { %v4697_v24 = vadd.f32 %v1062_v15, %v4544_v23  ;;  %v4745_v8 = vadd.f32 %v1222_v0, %v4530_v38 }
 0x765   :  { %3734 = vpow2.f32 %v772_v32  ;;  %v781_v32 = vpop.xlane.xlu2 %780 }
 0x766   :  { %v1079_v17 = vsel %vm739_vm1, %v4697_v24, -inf  ;;  %3736 = vpow2.f32 %v770_v52  ;;  %v1238_v55 = vsel %vm739_vm1, %v4745_v8, -inf }
 0x767   :  { %1080 = vmax.xlane.f32.xlu2 %v1079_v17  ;;  %3738 = vpow2.f32 %v774_v5 }
 0x76b   :  { %v1065_v19 = vpop.f32.mrf.mxu3  ;;  %v4717_v36 = vpop.eup %3734 }
 0x76c   :  { %v788_v46 = vsel %vm739_vm1, %v4717_v36, 0.0  ;;  %v4733_v9 = vpop.eup %3736  ;;  %v1225_v3 = vpop.f32.mrf.mxu2  ;;  %v4742_v21 = vadd.f32 %v1065_v19, %v4551_v53 }
 0x76d   :  { %v785_v44 = vsel %vm739_vm1, %v4733_v9, 0.0  ;;  %v4737_v56 = vpop.eup %3738  ;;  %v975_v47 = vpop.permute.xlu2 %974 }
 0x76e   :  { %v791_v35 = vsel %vm739_vm1, %v4737_v56, 0.0 }
 0x76f   :  { %783 = vadd.xlane.f32.xlu2 %v782_v20 }
 0x773   :  { %v1067_v14 = vpop.f32.mrf.mxu3 }
 0x774   :  { %v4709_v18 = vadd.f32 %v1067_v14, %v4564_v26  ;;  %v1227_v11 = vpop.f32.mrf.mxu2 }
 0x775   :  { %v4752_v29 = vadd.f32 %v1227_v11, %v4544_v23 }
 0x776   :  { %v1085_v62 = vsel %vm739_vm1, %v4709_v18, -inf }
 0x777   :  { %1086 = vmax.xlane.f32.xlu2 %v1085_v62  ;;  %v1244_v15 = vsel %vm739_vm1, %v4752_v29, -inf }
 0x778   :  { %976 = vrot.lane.b32.xlu1 %v4466_v34, %s4041_s19  ;;  %v4728_v34 = vadd.f32 %v1060_v10, %v4537_v4  ;;  %v1082_v10 = vsel %vm739_vm1, %v4742_v21, -inf }
 0x77a   :  { %v1076_v58 = vsel %vm739_vm1, %v4728_v34, -inf }
 0x77c   :  { %v1230_v17 = vpop.f32.mrf.mxu2 }
 0x77d   :  { %v4757_v38 = vadd.f32 %v1230_v17, %v4551_v53 }
 0x77f   :  { %789 = vadd.xlane.f32.xlu2 %v788_v46  ;;  %v1247_v42 = vsel %vm739_vm1, %v4757_v38, -inf }
 0x787   :  { %1236 = vmax.xlane.f32.xlu2 %v1235_v41  ;;  %v1232_v41 = vpop.f32.mrf.mxu2 }
 0x788   :  { %v4779_v52 = vadd.f32 %v1232_v41, %v4564_v26 }
 0x78d   :  { %1077 = vmax.xlane.f32.xlu0 %v1076_v58 }
 0x795   :  { %786 = vadd.xlane.f32.xlu0 %v785_v44 }
 0x79d   :  { %792 = vadd.xlane.f32.xlu0 %v791_v35 }
 0x7a2   :  { %1083 = vmax.xlane.f32.xlu1 %v1082_v10 }
 0x7a5   :  { %1239 = vmax.xlane.f32.xlu0 %v1238_v55 }
 0x7ad   :  { %1245 = vmax.xlane.f32.xlu0 %v1244_v15 }
 0x7b5   :  { %1248 = vmax.xlane.f32.xlu0 %v1247_v42 }
 0x7c2   :  { %v1072_v19 = vpop.xlane.xlu0 %1071 }
 0x7c3   :  { %v1088_v31 = vsub.f32 %v4673_v63, %v1072_v19  ;;  %v4770_v63 = vadd.f32 %v1225_v3, %v4537_v4  ;;  %v1250_v4 = vsel %vm739_vm1, %v4779_v52, -inf }
 0x7c5   :  { %v1094_v20 = vmul.f32 1.442695, %v1088_v31 }
 0x7c7   :  { %3740 = vpow2.f32 %v1094_v20 }
 0x7c9   :  { %1309 = vrot.lane.b32.xlu0 %v4502_v59, %s4032_s20 }
 0x7ca   :  { %v1075_v23 = vpop.xlane.xlu1 %1074 }
 0x7cb   :  { %v1089_v14 = vsub.f32 %v4681_v12, %v1075_v23  ;;  %v1241_v12 = vsel %vm739_vm1, %v4770_v63, -inf }
 0x7cd   :  { %v4765_v62 = vpop.eup %3740  ;;  %v1096_v53 = vmul.f32 1.442695, %v1089_v14 }
 0x7ce   :  { %v1106_v46 = vsel %vm739_vm1, %v4765_v62, 0.0 }
 0x7cf   :  { %3742 = vpow2.f32 %v1096_v53  ;;  %1107 = vadd.xlane.f32.xlu1 %v1106_v46 }
 0x7d2   :  { %v778_v13 = vpop.xlane.xlu1 %777 }
 0x7d3   :  { %3744 = vrcp.f32 %v778_v13 }
 0x7d4   :  { %3746 = vrcp.f32 %v781_v32 }
 0x7d5   :  { %v4772_v22 = vpop.eup %3742  ;;  %v979_v50 = vpop.permute.xlu0 %978 }
 0x7d6   :  { %997 = vmatpush.bf16.msra.mxu0 %v979_v50  ;;  %v1109_v59 = vsel %vm739_vm1, %v4772_v22, 0.0 }
 0x7d7   :  { %1110 = vadd.xlane.f32.xlu2 %v1109_v59  ;;  %1242 = vmax.xlane.f32.xlu1 %v1241_v12 }
 0x7d9   :  { %v3745_v5 = vpop.eup %3744 }
 0x7da   :  { %v1081_v49 = vpop.xlane.xlu2 %1080  ;;  %v3747_v3 = vpop.eup %3746  ;;  %v800_v35 = vmul.f32 %v3745_v5, %v4687_v57 }
 0x7db   :  { %v801_v26 = vmul.f32 %v3747_v3, %v4661_v51  ;;  %v1091_v51 = vsub.f32 %v4697_v24, %v1081_v49 }
 0x7dd   :  { %v806_v10 = vpack.c.bf16 %v801_v26, %v800_v35  ;;  %v1100_v32 = vmul.f32 1.442695, %v1091_v51 }
 0x7df   :  { %1251 = vmax.xlane.f32.xlu1 %v1250_v4 }
 0x7e2   :  { %v784_v58 = vpop.xlane.xlu2 %783 }
 0x7ea   :  { %v4783_v0 = vpop.xlane.xlu2 %1086  ;;  %v977_v44 = vpop.permute.xlu1 %976 }
 0x7eb   :  { %998 = vmatpush.bf16.msra.mxu0 %v977_v44 }
 0x7ef   :  { %1311 = vrot.lane.b32.xlu2 %v4498_v25, %s4032_s20  ;;  %999 = vmatpush.bf16.msra.mxu0 %v975_v47 }
 0x7f2   :  { %v790_v11 = vpop.xlane.xlu2 %789  ;;  %3522 = vmatmul.msk.bf16.vlgmr.msra.gmra.mxu0 %vm739_vm1, %v806_v10 }
 0x7fa   :  { %v1237_v55 = vpop.xlane.xlu2 %1236 }
 0x7fb   :  { %v1253_v15 = vsub.f32 %v4722_v27, %v1237_v55 }
 0x7fd   :  { %v1259_v17 = vmul.f32 1.442695, %v1253_v15 }
 0x7ff   :  { %3748 = vpow2.f32 %v1259_v17 }
 0x800   :  { %v1078_v42 = vpop.xlane.xlu0 %1077 }
 0x801   :  { %v1090_v19 = vsub.f32 %v4728_v34, %v1078_v42 }
 0x803   :  { %v1098_v31 = vmul.f32 1.442695, %v1090_v19 }
 0x805   :  { %v4792_v57 = vpop.eup %3748  ;;  %3750 = vpow2.f32 %v1098_v31 }
 0x806   :  { %v1271_v25 = vsel %vm739_vm1, %v4792_v57, 0.0  ;;  %3752 = vrcp.f32 %v784_v58 }
 0x807   :  { %1272 = vadd.xlane.f32.xlu0 %v1271_v25 }
 0x808   :  { %v787_v20 = vpop.xlane.xlu0 %786 }
 0x809   :  { %3754 = vrcp.f32 %v787_v20 }
 0x80a   :  { %3756 = vpow2.f32 %v1100_v32 }
 0x80b   :  { %v4797_v27 = vpop.eup %3750 }
 0x80c   :  { %v3753_v23 = vpop.eup %3752  ;;  %v1112_v34 = vsel %vm739_vm1, %v4797_v27, 0.0 }
 0x80d   :  { %v802_v24 = vmul.f32 %v3753_v23, %v4701_v37 }
 0x80f   :  { %v3755_v14 = vpop.eup %3754  ;;  %1113 = vadd.xlane.f32.xlu0 %v1112_v34 }
 0x810   :  { %v793_v53 = vpop.xlane.xlu0 %792  ;;  %v803_v46 = vmul.f32 %v3755_v14, %v4733_v9  ;;  %v4803_v50 = vpop.eup %3756 }
 0x811   :  { %3758 = vrcp.f32 %v793_v53  ;;  %v1115_v41 = vsel %vm739_vm1, %v4803_v50, 0.0 }
 0x812   :  { %v807_v47 = vpack.c.bf16 %v803_v46, %v802_v24  ;;  %3760 = vrcp.f32 %v790_v11 }
 0x814   :  { %3523 = vmatmul.msk.bf16.gmra.mxu0 %vm739_vm1, %v807_v47 }
 0x815   :  { %v1084_v59 = vpop.xlane.xlu1 %1083 }
 0x816   :  { %v1092_v12 = vsub.f32 %v4742_v21, %v1084_v59 }
 0x817   :  { %v3759_v9 = vpop.eup %3758 }
 0x818   :  { %v1102_v49 = vmul.f32 1.442695, %v1092_v12  ;;  %1116 = vadd.xlane.f32.xlu2 %v1115_v41  ;;  %v1240_v4 = vpop.xlane.xlu0 %1239  ;;  %v3761_v58 = vpop.eup %3760  ;;  %v805_v5 = vmul.f32 %v3759_v9, %v4737_v56 }
 0x819   :  { %v1254_v37 = vsub.f32 %v4745_v8, %v1240_v4  ;;  %v804_v21 = vmul.f32 %v3761_v58, %v4717_v36 }
 0x81a   :  { %3762 = vpow2.f32 %v1102_v49 }
 0x81b   :  { %v1261_v13 = vmul.f32 1.442695, %v1254_v37  ;;  %v808_v10 = vpack.c.bf16 %v805_v5, %v804_v21 }
 0x81d   :  { %3764 = vpow2.f32 %v1261_v13 }
 0x820   :  { %v4811_v44 = vpop.eup %3762  ;;  %v1246_v3 = vpop.xlane.xlu0 %1245 }
 0x821   :  { %v1256_v35 = vsub.f32 %v4752_v29, %v1246_v3  ;;  %v1118_v26 = vsel %vm739_vm1, %v4811_v44, 0.0 }
 0x822   :  { %1119 = vadd.xlane.f32.xlu2 %v1118_v26 }
 0x823   :  { %v4817_v8 = vpop.eup %3764  ;;  %v1265_v11 = vmul.f32 1.442695, %v1256_v35 }
 0x824   :  { %3524 = vmatmul.msk.bf16.gmra.mxu0 %vm739_vm1, %v808_v10  ;;  %v1274_v56 = vsel %vm739_vm1, %v4817_v8, 0.0 }
 0x825   :  { %3766 = vpow2.f32 %v1265_v11  ;;  %1275 = vadd.xlane.f32.xlu1 %v1274_v56 }
 0x828   :  { %v1249_v55 = vpop.xlane.xlu0 %1248 }
 0x829   :  { %v1257_v36 = vsub.f32 %v4757_v38, %v1249_v55 }
 0x82b   :  { %v4823_v15 = vpop.eup %3766  ;;  %v1267_v29 = vmul.f32 1.442695, %v1257_v36 }
 0x82c   :  { %v1280_v17 = vsel %vm739_vm1, %v4823_v15, 0.0 }
 0x82d   :  { %3768 = vpow2.f32 %v1267_v29  ;;  %1281 = vadd.xlane.f32.xlu0 %v1280_v17 }
 0x833   :  { %v4827_v42 = vpop.eup %3768 }
 0x834   :  { %v1283_v19 = vsel %vm739_vm1, %v4827_v42, 0.0 }
 0x835   :  { %1284 = vadd.xlane.f32.xlu0 %v1283_v19 }
 0x83b   :  { %v1310_v47 = vpop.permute.xlu0 %1309 }
 0x83e   :  { %1307 = vrot.lane.b32.xlu1 %v4505_v6, %s4032_s20 }
 0x842   :  { %v1108_v31 = vpop.xlane.xlu1 %1107 }
 0x843   :  { %3770 = vrcp.f32 %v1108_v31 }
 0x849   :  { %v3771_v25 = vpop.eup %3770 }
 0x84a   :  { %v1111_v38 = vpop.xlane.xlu2 %1110  ;;  %v1243_v51 = vpop.xlane.xlu1 %1242  ;;  %v1130_v32 = vmul.f32 %v3771_v25, %v4765_v62  ;;  %v1093_v62 = vsub.f32 %v4709_v18, %v4783_v0 }
 0x84b   :  { %3772 = vrcp.f32 %v1111_v38  ;;  %v1255_v6 = vsub.f32 %v4770_v63, %v1243_v51 }
 0x84d   :  { %v1263_v59 = vmul.f32 1.442695, %v1255_v6 }
 0x851   :  { %v3773_v20 = vpop.eup %3772 }
 0x852   :  { %v1131_v23 = vmul.f32 %v3773_v20, %v4772_v22  ;;  %v1312_v34 = vpop.permute.xlu2 %1311  ;;  %v1252_v14 = vpop.xlane.xlu1 %1251 }
 0x853   :  { %v1258_v53 = vsub.f32 %v4779_v52, %v1252_v14  ;;  %1330 = vmatpush.bf16.msrb.mxu0 %v1312_v34  ;;  %v1104_v52 = vmul.f32 1.442695, %v1093_v62 }
 0x854   :  { %v1136_v24 = vpack.c.bf16 %v1131_v23, %v1130_v32 }
 0x855   :  { %v1269_v46 = vmul.f32 1.442695, %v1258_v53 }
 0x856   :  { %3528 = vmatmul.msk.bf16.vlgmr.msra.gmra.mxu1 %vm739_vm1, %v1136_v24 }
 0x857   :  { %3774 = vpow2.f32 %v1269_v46  ;;  %1331 = vmatpush.bf16.msrb.mxu0 %v1310_v47 }
 0x858   :  { %3776 = vpow2.f32 %v1263_v59 }
 0x859   :  { %3778 = vpow2.f32 %v1104_v52 }
 0x85d   :  { %v4838_v12 = vpop.eup %3774 }
 0x85e   :  { %v1286_v22 = vsel %vm739_vm1, %v4838_v12, 0.0  ;;  %v3777_v41 = vpop.eup %3776 }
 0x85f   :  { %1287 = vadd.xlane.f32.xlu2 %v1286_v22  ;;  %v1277_v63 = vsel %vm739_vm1, %v3777_v41, 0.0  ;;  %v3779_v49 = vpop.eup %3778 }
 0x860   :  { %v1121_v4 = vsel %vm739_vm1, %v3779_v49, 0.0 }
 0x868   :  { %1278 = vadd.xlane.f32.xlu1 %v1277_v63 }
 0x86f   :  { %v1001_v24 = vpop.f32.mrf.mxu0 }
 0x870   :  { %1122 = vadd.xlane.f32.xlu1 %v1121_v4  ;;  %v1002_v22 = vadd.f32 %v1001_v24, %v4670_v33 }
 0x877   :  { %v1003_v46 = vpop.f32.mrf.mxu0 }
 0x878   :  { %v1004_v4 = vadd.f32 %v1003_v46, %v4678_v45 }
 0x87a   :  { %v1273_v37 = vpop.xlane.xlu0 %1272 }
 0x882   :  { %v1114_v9 = vpop.xlane.xlu0 %1113 }
 0x883   :  { %3780 = vrcp.f32 %v1114_v9 }
 0x889   :  { %v3781_v18 = vpop.eup %3780 }
 0x88a   :  { %v1132_v58 = vmul.f32 %v3781_v18, %v4797_v27 }
 0x88b   :  { %v1117_v13 = vpop.xlane.xlu2 %1116 }
 0x88c   :  { %3782 = vrcp.f32 %v1117_v13 }
 0x891   :  { %v1006_v47 = vpop.f32.mrf.mxu0 }
 0x892   :  { %v3783_v0 = vpop.eup %3782  ;;  %v1007_v45 = vadd.f32 %v1006_v47, %v4685_v7 }
 0x893   :  { %v1133_v5 = vmul.f32 %v3783_v0, %v4803_v50 }
 0x895   :  { %v1137_v3 = vpack.c.bf16 %v1133_v5, %v1132_v58  ;;  %v1120_v36 = vpop.xlane.xlu2 %1119 }
 0x897   :  { %3529 = vmatmul.msk.bf16.gmra.mxu1 %vm739_vm1, %v1137_v3 }
 0x898   :  { %v1276_v21 = vpop.xlane.xlu1 %1275 }
 0x899   :  { %3784 = vrcp.f32 %v1276_v21  ;;  %v1008_v6 = vpop.f32.mrf.mxu0 }
 0x89a   :  { %3786 = vrcp.f32 %v1273_v37 }
 0x89f   :  { %v3785_v35 = vpop.eup %3784 }
 0x8a0   :  { %v3787_v26 = vpop.eup %3786  ;;  %v1296_v10 = vmul.f32 %v3785_v35, %v4817_v8  ;;  %v1282_v27 = vpop.xlane.xlu0 %1281 }
 0x8a1   :  { %v1295_v11 = vmul.f32 %v3787_v26, %v4792_v57  ;;  %3788 = vrcp.f32 %v1282_v27  ;;  %v1011_v59 = vpop.f32.mrf.mxu0 }
 0x8a3   :  { %v1301_v55 = vpack.c.bf16 %v1296_v10, %v1295_v11  ;;  %v1009_v11 = vadd.f32 %v1008_v6, %v4692_v60 }
 0x8a7   :  { %v3789_v29 = vpop.eup %3788 }
 0x8a8   :  { %v1298_v57 = vmul.f32 %v3789_v29, %v4823_v15  ;;  %v1012_v29 = vadd.f32 %v1011_v59, %v4703_v30 }
 0x8a9   :  { %v1013_v62 = vpop.f32.mrf.mxu0 }
 0x8b0   :  { %v1308_v56 = vpop.permute.xlu1 %1307 }
 0x8b1   :  { %1332 = vmatpush.bf16.msrb.mxu0 %v1308_v56 }
 0x8b4   :  { %3534 = vmatmul.msk.bf16.vlgmr.msrb.gmra.mxu0 %vm739_vm1, %v1301_v55 }
 0x8b5   :  { %2079 = vmatpush.bf16.msra.mxu0 %v4395_v61  ;;  %v1285_v61 = vpop.xlane.xlu0 %1284 }
 0x8b9   :  { %2080 = vmatpush.bf16.msra.mxu0 %v4415_v54 }
 0x8d2   :  { %v1288_v31 = vpop.xlane.xlu2 %1287 }
 0x8db   :  { %v1279_v50 = vpop.xlane.xlu1 %1278 }
 0x8dc   :  { %3790 = vrcp.f32 %v1279_v50 }
 0x8dd   :  { %3792 = vrcp.f32 %v1120_v36 }
 0x8e2   :  { %v3791_v17 = vpop.eup %3790 }
 0x8e3   :  { %v1123_v8 = vpop.xlane.xlu1 %1122  ;;  %v1297_v19 = vmul.f32 %v3791_v17, %v3777_v41  ;;  %v3793_v51 = vpop.eup %3792 }
 0x8e4   :  { %3794 = vrcp.f32 %v1123_v8  ;;  %v1134_v25 = vmul.f32 %v3793_v51, %v4811_v44  ;;  %v1160_v44 = vpop.f32.mrf.mxu1 }
 0x8e5   :  { %v1302_v38 = vpack.c.bf16 %v1298_v57, %v1297_v19  ;;  %3796 = vrcp.f32 %v1288_v31  ;;  %v1175_v52 = vadd.f32 %v1160_v44, %v1002_v22 }
 0x8e6   :  { %3798 = vrcp.f32 %v1285_v61 }
 0x8e7   :  { %3535 = vmatmul.msk.bf16.gmra.mxu0 %vm739_vm1, %v1302_v38  ;;  %v1014_v38 = vadd.f32 %v1013_v62, %v4711_v40 }
 0x8ea   :  { %v3795_v54 = vpop.eup %3794 }
 0x8eb   :  { %v1135_v20 = vmul.f32 %v3795_v54, %v3779_v49  ;;  %v3797_v23 = vpop.eup %3796 }
 0x8ec   :  { %v3799_v34 = vpop.eup %3798  ;;  %v1300_v15 = vmul.f32 %v3797_v23, %v4838_v12  ;;  %v3656_v12 = vld [vmem:[%s5901_s2 + $0x7] ss:$0 sm:$0xff]  ;;  %v1162_v49 = vpop.f32.mrf.mxu1 }
 0x8ed   :  { %v1138_v32 = vpack.c.bf16 %v1135_v20, %v1134_v25  ;;  %v1299_v14 = vmul.f32 %v3799_v34, %v4827_v42  ;;  %v1176_v9 = vadd.f32 %v1162_v49, %v1004_v4 }
 0x8ef   :  { %3530 = vmatmul.msk.bf16.gmra.mxu1 %vm739_vm1, %v1138_v32  ;;  %v1303_v53 = vpack.c.bf16 %v1300_v15, %v1299_v14 }
 0x8f7   :  { %3536 = vmatmul.msk.bf16.gmra.mxu0 %vm739_vm1, %v1303_v53 }
 0x931   :  { %v1334_v41 = vpop.f32.mrf.mxu0 }
 0x932   :  { %v1349_v63 = vadd.f32 %v1334_v41, %v1175_v52 }
 0x934   :  { %v1355_v42 = vadd.f32 %v1349_v63, %v4313_v43  ;;  %v1165_v43 = vpop.f32.mrf.mxu1 }
 0x935   :  { %v1177_v3 = vadd.f32 %v1165_v43, %v1007_v45  ;;  %v3543_v45 = vld [vmem:[%s5900_s1 + $0x70] sm:$0xf] }
 0x936   :  { %v4867_v37 = vadd.f32 %v3656_v12, %v1355_v42 }
 0x938   :  { %v1371_v13 = vsel %vm250_vm5, %v4867_v37, 0.0 }
 0x939   :  { %1372 = vadd.xlane.f32.xlu1 %v1371_v13  ;;  %v1336_v33 = vpop.f32.mrf.mxu0 }
 0x93a   :  { %v1350_v18 = vadd.f32 %v1336_v33, %v1176_v9 }
 0x93c   :  { %v1356_v0 = vadd.f32 %v1350_v18, %v4335_v2  ;;  %v1167_v26 = vpop.f32.mrf.mxu1 }
 0x93d   :  { %v1178_v2 = vadd.f32 %v1167_v26, %v1009_v11  ;;  %v3622_v11 = vld [vmem:[%s5900_s1 + $0x64] sm:$0xf0] }
 0x93e   :  { %v4872_v58 = vadd.f32 %v3656_v12, %v1356_v0 }
 0x940   :  { %v1374_v5 = vsel %vm250_vm5, %v4872_v58, 0.0 }
 0x941   :  { %1375 = vadd.xlane.f32.xlu0 %v1374_v5 }
 0x964   :  { %v1339_v21 = vpop.f32.mrf.mxu0 }
 0x965   :  { %v1351_v35 = vadd.f32 %v1339_v21, %v1177_v3  ;;  %v3623_v3 = vld [vmem:[%s5900_s1 + $0x74] sm:$0xf0] }
 0x966   :  { %v4948_v21 = vor.u32 %v3623_v3, %v3543_v45 }
 0x967   :  { %v1357_v10 = vadd.f32 %v1351_v35, %v4294_v16 }
 0x968   :  { %1553 = vmatpush.bf16.msrb.mxu3 %v4948_v21 }
 0x969   :  { %v4879_v56 = vadd.f32 %v3656_v12, %v1357_v10  ;;  %v3539_v10 = vld [vmem:[%s5900_s1 + $0x60] sm:$0xf] }
 0x96b   :  { %v1377_v55 = vsel %vm250_vm5, %v4879_v56, 0.0 }
 0x96c   :  { %1378 = vadd.xlane.f32.xlu2 %v1377_v55  ;;  %v1341_v27 = vpop.f32.mrf.mxu0  ;;  %v1170_v36 = vpop.f32.mrf.mxu1  ;;  %v4958_v55 = vor.u32 %v3622_v11, %v3539_v10 }
 0x96d   :  { %v1352_v50 = vadd.f32 %v1341_v27, %v1178_v2  ;;  %v1179_v8 = vadd.f32 %v1170_v36, %v1012_v29 }
 0x96e   :  { %1554 = vmatpush.bf16.msrb.mxu3 %v4958_v55 }
 0x96f   :  { %v1358_v7 = vadd.f32 %v1352_v50, %v4302_v28 }
 0x971   :  { %v4885_v17 = vadd.f32 %v3656_v12, %v1358_v7 }
 0x973   :  { %v1380_v16 = vsel %vm250_vm5, %v4885_v17, 0.0 }
 0x974   :  { %1381 = vadd.xlane.f32.xlu1 %v1380_v16  ;;  %v1344_v60 = vpop.f32.mrf.mxu0  ;;  %v1172_v31 = vpop.f32.mrf.mxu1 }
 0x975   :  { %v1353_v19 = vadd.f32 %v1344_v60, %v1179_v8  ;;  %v1180_v51 = vadd.f32 %v1172_v31, %v1014_v38 }
 0x977   :  { %v1359_v57 = vadd.f32 %v1353_v19, %v4320_v39 }
 0x979   :  { %v4891_v61 = vadd.f32 %v3656_v12, %v1359_v57 }
 0x97b   :  { %v1383_v28 = vsel %vm250_vm5, %v4891_v61, 0.0 }
 0x97c   :  { %1384 = vadd.xlane.f32.xlu0 %v1383_v28  ;;  %v1346_v30 = vpop.f32.mrf.mxu0 }
 0x97d   :  { %v1354_v54 = vadd.f32 %v1346_v30, %v1180_v51 }
 0x97f   :  { %v1360_v25 = vadd.f32 %v1354_v54, %v4330_v1  ;;  %v4965_v54 = vld [vmem:[%s5901_s2 + $0x8] ss:$0 sm:$0xff] }
 0x981   :  { %v4896_v20 = vadd.f32 %v3656_v12, %v1360_v25 }
 0x983   :  { %v1386_v32 = vsel %vm250_vm5, %v4896_v20, 0.0 }
 0x984   :  { %1387 = vadd.xlane.f32.xlu2 %v1386_v32 }
 0x9ac   :  { %v1373_v39 = vpop.xlane.xlu1 %1372 }
 0x9ad   :  { %v1389_v40 = vmul.f32 %v1373_v39, %v4194_v48 }
 0x9af   :  { %v4902_v23 = vsub.f32 %v4867_v37, %v1389_v40  ;;  %v4971_v40 = vld [vmem:[%s5901_s2 + $0x9] ss:$0 sm:$0xff] }
 0x9b1   :  { %v1401_v34 = vmul.f32 %v4902_v23, %v4902_v23 }
 0x9b3   :  { %v1407_v15 = vsel %vm250_vm5, %v1401_v34, 0.0 }
 0x9b4   :  { %1408 = vadd.xlane.f32.xlu1 %v1407_v15  ;;  %v1376_v14 = vpop.xlane.xlu0 %1375 }
 0x9b5   :  { %v1390_v1 = vmul.f32 %v1376_v14, %v4194_v48 }
 0x9b7   :  { %v4909_v53 = vsub.f32 %v4872_v58, %v1390_v1 }
 0x9b9   :  { %v1402_v24 = vmul.f32 %v4909_v53, %v4909_v53 }
 0x9bb   :  { %v1410_v46 = vsel %vm250_vm5, %v1402_v24, 0.0 }
 0x9bc   :  { %1411 = vadd.xlane.f32.xlu0 %v1410_v46 }
 0x9df   :  { %v1379_v47 = vpop.xlane.xlu2 %1378 }
 0x9e0   :  { %v1391_v6 = vmul.f32 %v1379_v47, %v4194_v48 }
 0x9e2   :  { %v4916_v59 = vsub.f32 %v4879_v56, %v1391_v6 }
 0x9e4   :  { %v1403_v62 = vmul.f32 %v4916_v59, %v4916_v59 }
 0x9e6   :  { %v1413_v44 = vsel %vm250_vm5, %v1403_v62, 0.0 }
 0x9e7   :  { %v1382_v22 = vpop.xlane.xlu1 %1381  ;;  %1414 = vadd.xlane.f32.xlu2 %v1413_v44 }
 0x9e8   :  { %v1392_v52 = vmul.f32 %v1382_v22, %v4194_v48 }
 0x9ea   :  { %v4923_v41 = vsub.f32 %v4885_v17, %v1392_v52 }
 0x9ec   :  { %v1404_v63 = vmul.f32 %v4923_v41, %v4923_v41 }
 0x9ee   :  { %v1416_v12 = vsel %vm250_vm5, %v1404_v63, 0.0 }
 0x9ef   :  { %1417 = vadd.xlane.f32.xlu1 %v1416_v12  ;;  %v1385_v42 = vpop.xlane.xlu0 %1384 }
 0x9f0   :  { %v1393_v49 = vmul.f32 %v1385_v42, %v4194_v48 }
 0x9f2   :  { %v4930_v4 = vsub.f32 %v4891_v61, %v1393_v49 }
 0x9f4   :  { %v1405_v9 = vmul.f32 %v4930_v4, %v4930_v4 }
 0x9f6   :  { %v1419_v13 = vsel %vm250_vm5, %v1405_v9, 0.0 }
 0x9f7   :  { %v1388_v33 = vpop.xlane.xlu2 %1387  ;;  %1420 = vadd.xlane.f32.xlu0 %v1419_v13 }
 0x9f8   :  { %v1394_v18 = vmul.f32 %v1388_v33, %v4194_v48 }
 0x9fa   :  { %v4937_v0 = vsub.f32 %v4896_v20, %v1394_v18 }
 0x9fc   :  { %v1406_v5 = vmul.f32 %v4937_v0, %v4937_v0 }
 0x9fe   :  { %v1422_v43 = vsel %vm250_vm5, %v1406_v5, 0.0 }
 0x9ff   :  { %1423 = vadd.xlane.f32.xlu2 %v1422_v43 }
 0xa27   :  { %v1409_v35 = vpop.xlane.xlu1 %1408 }
 0xa28   :  { %v1425_v26 = vmul.f32 %v1409_v35, %v4194_v48 }
 0xa2a   :  { %v1431_v2 = vadd.f32 1e-05, %v1425_v26 }
 0xa2c   :  { %3800 = vrsqrt.f32 %v1431_v2  ;;  %vm1443_vm3 = vweird.f32 %v1431_v2 }
 0xa2f   :  { %v1412_v27 = vpop.xlane.xlu0 %1411 }
 0xa30   :  { %v1426_v50 = vmul.f32 %v1412_v27, %v4194_v48 }
 0xa32   :  { %v3801_v36 = vpop.eup %3800  ;;  %v1432_v7 = vadd.f32 1e-05, %v1426_v50 }
 0xa33   :  { %v1438_v29 = vmul.f32 %v3801_v36, %v1431_v2  ;;  %vm1444_vm2 = vweird.f32 %v3801_v36 }
 0xa34   :  { %3802 = vrsqrt.f32 %v1432_v7  ;;  %vm1445_vm4 = vmor %vm1443_vm3, %vm1444_vm2  ;;  %vm1453_vm7 = vweird.f32 %v1432_v7 }
 0xa35   :  { %v1439_v8 = vmul.f32 %v3801_v36, %v1438_v29 }
 0xa37   :  { %v1440_v16 = vmul.f32 0.5, %v1439_v8 }
 0xa39   :  { %v1441_v60 = vsub.f32 1.5, %v1440_v16 }
 0xa3a   :  { %v3803_v19 = vpop.eup %3802 }
 0xa3b   :  { %v1442_v57 = vmul.f32 %v3801_v36, %v1441_v60  ;;  %v1448_v31 = vmul.f32 %v3803_v19, %v1432_v7  ;;  %vm1454_vm6 = vweird.f32 %v3803_v19 }
 0xa3c   :  { %vm1455_vm8 = vmor %vm1453_vm7, %vm1454_vm6 }
 0xa3d   :  { %v1449_v38 = vmul.f32 %v3803_v19, %v1448_v31  ;;  %v1446_v51 = vsel %vm1445_vm4, %v3801_v36, %v1442_v57 }
 0xa3e   :  { %v1497_v25 = vmul.f32 %v1446_v51, %v4902_v23 }
 0xa3f   :  { %v1450_v28 = vmul.f32 0.5, %v1449_v38 }
 0xa40   :  { %v1504_v34 = vmul.f32 %v4965_v54, %v1497_v25 }
 0xa41   :  { %v1451_v30 = vsub.f32 1.5, %v1450_v28 }
 0xa42   :  { %v1511_v1 = vadd.f32 %v4971_v40, %v1504_v34 }
 0xa43   :  { %v1452_v32 = vmul.f32 %v3803_v19, %v1451_v30 }
 0xa45   :  { %v1456_v39 = vsel %vm1455_vm8, %v3803_v19, %v1452_v32 }
 0xa46   :  { %v1498_v15 = vmul.f32 %v1456_v39, %v4909_v53 }
 0xa48   :  { %v1505_v14 = vmul.f32 %v4965_v54, %v1498_v15 }
 0xa4a   :  { %v1512_v24 = vadd.f32 %v4971_v40, %v1505_v14 }
 0xa4c   :  { %v1521_v23 = vpack.c.bf16 %v1512_v24, %v1511_v1 }
 0xa4e   :  { %3545 = vmatmul.msk.bf16.vlgmr.msrb.gmra.mxu3 %vm250_vm5, %v1521_v23 }
 0xa5a   :  { %v1415_v46 = vpop.xlane.xlu2 %1414 }
 0xa5b   :  { %v1427_v47 = vmul.f32 %v1415_v46, %v4194_v48 }
 0xa5d   :  { %v1433_v6 = vadd.f32 1e-05, %v1427_v47 }
 0xa5f   :  { %3804 = vrsqrt.f32 %v1433_v6  ;;  %vm1463_vm10 = vweird.f32 %v1433_v6 }
 0xa62   :  { %v1418_v62 = vpop.xlane.xlu1 %1417 }
 0xa63   :  { %v1428_v44 = vmul.f32 %v1418_v62, %v4194_v48 }
 0xa65   :  { %v3805_v22 = vpop.eup %3804  ;;  %v1434_v52 = vadd.f32 1e-05, %v1428_v44 }
 0xa66   :  { %v1458_v53 = vmul.f32 %v3805_v22, %v1433_v6  ;;  %vm1464_vm9 = vweird.f32 %v3805_v22 }
 0xa67   :  { %3806 = vrsqrt.f32 %v1434_v52  ;;  %vm1465_vm11 = vmor %vm1463_vm10, %vm1464_vm9  ;;  %vm1473_vm13 = vweird.f32 %v1434_v52 }
 0xa68   :  { %v1459_v63 = vmul.f32 %v3805_v22, %v1458_v53 }
 0xa6a   :  { %v1460_v12 = vmul.f32 0.5, %v1459_v63  ;;  %v1421_v42 = vpop.xlane.xlu0 %1420 }
 0xa6b   :  { %v1429_v49 = vmul.f32 %v1421_v42, %v4194_v48 }
 0xa6c   :  { %v1461_v9 = vsub.f32 1.5, %v1460_v12 }
 0xa6d   :  { %v3807_v13 = vpop.eup %3806  ;;  %v1435_v33 = vadd.f32 1e-05, %v1429_v49 }
 0xa6e   :  { %v1462_v18 = vmul.f32 %v3805_v22, %v1461_v9  ;;  %v1468_v5 = vmul.f32 %v3807_v13, %v1434_v52  ;;  %vm1474_vm12 = vweird.f32 %v3807_v13 }
 0xa6f   :  { %3808 = vrsqrt.f32 %v1435_v33  ;;  %vm1475_vm14 = vmor %vm1473_vm13, %vm1474_vm12  ;;  %vm1483_vm3 = vweird.f32 %v1435_v33 }
 0xa70   :  { %v1469_v43 = vmul.f32 %v3807_v13, %v1468_v5  ;;  %v1466_v45 = vsel %vm1465_vm11, %v3805_v22, %v1462_v18  ;;  %v3627_v18 = vld [vmem:[%s5900_s1 + $0xb4] sm:$0xf0] }
 0xa71   :  { %v1499_v2 = vmul.f32 %v1466_v45, %v4916_v59 }
 0xa72   :  { %v1470_v3 = vmul.f32 0.5, %v1469_v43  ;;  %v1424_v35 = vpop.xlane.xlu2 %1423 }
 0xa73   :  { %v1430_v26 = vmul.f32 %v1424_v35, %v4194_v48  ;;  %v1506_v16 = vmul.f32 %v4965_v54, %v1499_v2 }
 0xa74   :  { %v1471_v10 = vsub.f32 1.5, %v1470_v3 }
 0xa75   :  { %v3809_v11 = vpop.eup %3808  ;;  %v1436_v27 = vadd.f32 1e-05, %v1430_v26  ;;  %v1513_v38 = vadd.f32 %v4971_v40, %v1506_v16  ;;  %v3558_v26 = vld [vmem:[%s5900_s1 + $0xa0] sm:$0xf] }
 0xa76   :  { %v1472_v50 = vmul.f32 %v3807_v13, %v1471_v10  ;;  %v1478_v36 = vmul.f32 %v3809_v11, %v1435_v33  ;;  %vm1484_vm2 = vweird.f32 %v3809_v11  ;;  %v3562_v33 = vld [vmem:[%s5900_s1 + $0xb0] sm:$0xf]  ;;  %v3626_v10 = vld [vmem:[%s5900_s1 + $0xa4] sm:$0xf0] }
 0xa77   :  { %3810 = vrsqrt.f32 %v1436_v27  ;;  %vm1485_vm4 = vmor %vm1483_vm3, %vm1484_vm2  ;;  %vm1493_vm7 = vweird.f32 %v1436_v27  ;;  %v5022_v5 = vor.u32 %v3627_v18, %v3562_v33 }
 0xa78   :  { %v1476_v7 = vsel %vm1475_vm14, %v3807_v13, %v1472_v50  ;;  %v1479_v29 = vmul.f32 %v3809_v11, %v1478_v36 }
 0xa79   :  { %v1500_v8 = vmul.f32 %v1476_v7, %v4923_v41  ;;  %1859 = vmatpush.bf16.msrb.mxu1 %v5022_v5  ;;  %v3554_v7 = vld [vmem:[%s5900_s1 + $0x90] sm:$0xf] }
 0xa7a   :  { %v1480_v60 = vmul.f32 0.5, %v1479_v29  ;;  %v3625_v29 = vld [vmem:[%s5900_s1 + $0x94] sm:$0xf0] }
 0xa7b   :  { %v1507_v19 = vmul.f32 %v4965_v54, %v1500_v8 }
 0xa7c   :  { %v1481_v57 = vsub.f32 1.5, %v1480_v60  ;;  %v5040_v60 = vor.u32 %v3625_v29, %v3554_v7 }
 0xa7d   :  { %v3811_v31 = vpop.eup %3810  ;;  %v1514_v59 = vadd.f32 %v4971_v40, %v1507_v19 }
 0xa7e   :  { %v1482_v51 = vmul.f32 %v3809_v11, %v1481_v57  ;;  %v1488_v28 = vmul.f32 %v3811_v31, %v1436_v27  ;;  %vm1494_vm6 = vweird.f32 %v3811_v31 }
 0xa7f   :  { %v1522_v30 = vpack.c.bf16 %v1514_v59, %v1513_v38  ;;  %vm1495_vm8 = vmor %vm1493_vm7, %vm1494_vm6 }
 0xa80   :  { %v1489_v25 = vmul.f32 %v3811_v31, %v1488_v28  ;;  %v1486_v41 = vsel %vm1485_vm4, %v3809_v11, %v1482_v51  ;;  %v5031_v11 = vor.u32 %v3626_v10, %v3558_v26  ;;  %v3550_v51 = vld [vmem:[%s5900_s1 + $0x80] sm:$0xf]  ;;  %v3624_v28 = vld [vmem:[%s5900_s1 + $0x84] sm:$0xf0] }
 0xa81   :  { %3546 = vmatmul.msk.bf16.gmra.mxu3 %vm250_vm5, %v1522_v30  ;;  %v1501_v34 = vmul.f32 %v1486_v41, %v4930_v4  ;;  %v5000_v4 = vld [vmem:[%s5901_s2 + $0xa] ss:$0 sm:$0xff]  ;;  %v5049_v41 = vor.u32 %v3624_v28, %v3550_v51 }
 0xa82   :  { %v1490_v32 = vmul.f32 0.5, %v1489_v25  ;;  %1860 = vmatpush.bf16.msrb.mxu1 %v5031_v11 }
 0xa83   :  { %v1508_v24 = vmul.f32 %v4965_v54, %v1501_v34 }
 0xa84   :  { %v1491_v39 = vsub.f32 1.5, %v1490_v32 }
 0xa85   :  { %v1515_v46 = vadd.f32 %v4971_v40, %v1508_v24 }
 0xa86   :  { %v1492_v15 = vmul.f32 %v3811_v31, %v1491_v39  ;;  %1861 = vmatpush.bf16.msrb.mxu1 %v5040_v60 }
 0xa88   :  { %v1496_v14 = vsel %vm1495_vm8, %v3811_v31, %v1492_v15 }
 0xa89   :  { %v1502_v1 = vmul.f32 %v1496_v14, %v4937_v0 }
 0xa8a   :  { %1862 = vmatpush.bf16.msrb.mxu1 %v5049_v41 }
 0xa8b   :  { %v1509_v23 = vmul.f32 %v4965_v54, %v1502_v1 }
 0xa8d   :  { %v1516_v47 = vadd.f32 %v4971_v40, %v1509_v23 }
 0xa8f   :  { %v1523_v6 = vpack.c.bf16 %v1516_v47, %v1515_v46 }
 0xa91   :  { %3547 = vmatmul.msk.bf16.gmra.mxu3 %vm250_vm5, %v1523_v6 }
 0xad1   :  { %v1556_v62 = vpop.f32.mrf.mxu3 }
 0xad2   :  { %v5003_v44 = vadd.f32 %v5000_v4, %v1556_v62 }
 0xad4   :  { %v5006_v0 = vmul.f32 0.70710677, %v5003_v44 }
 0xad6   :  { %v1595_v54 = vand.u32 2147483647, %v5006_v0  ;;  %vm1583_vm4 = vcmp.ge.f32.partialorder %v5006_v0, 0.0 }
 0xad8   :  { %v1601_v22 = vmul.f32 0.3275911, %v1595_v54  ;;  %v1757_v57 = vsub.f32 0.0, %v1595_v54 }
 0xad9   :  { %v1558_v52 = vpop.f32.mrf.mxu3 }
 0xada   :  { %v1607_v40 = vadd.f32 1.0, %v1601_v22  ;;  %v5010_v53 = vadd.f32 %v5000_v4, %v1558_v52  ;;  %v1763_v39 = vmul.f32 %v1757_v57, %v1595_v54 }
 0xadc   :  { %3812 = vrcp.f32 %v1607_v40  ;;  %v5013_v63 = vmul.f32 0.70710677, %v5010_v53  ;;  %v1624_v45 = vand.u32 2147483648, %v1607_v40  ;;  %v1622_v35 = vand.u32 2147483647, %v1607_v40 }
 0xadd   :  { %vm1618_vm10 = vweird.f32 %v1607_v40  ;;  %v1769_v23 = vmul.f32 1.442695, %v1763_v39 }
 0xade   :  { %v1596_v12 = vand.u32 2147483647, %v5013_v63  ;;  %v1625_v27 = vor.u32 1.1754944e-38, %v1624_v45  ;;  %vm1623_vm12 = vcmp.eq.f32.partialorder %v1622_v35, 8.507059e+37  ;;  %vm1584_vm6 = vcmp.ge.f32.partialorder %v5013_v63, 0.0 }
 0xae0   :  { %v1602_v42 = vmul.f32 0.3275911, %v1596_v12  ;;  %v1758_v47 = vsub.f32 0.0, %v1596_v12 }
 0xae2   :  { %v3813_v49 = vpop.eup %3812  ;;  %v1608_v13 = vadd.f32 1.0, %v1602_v42 }
 0xae3   :  { %v1614_v9 = vmul.f32 %v3813_v49, %v1607_v40  ;;  %vm1619_vm9 = vweird.f32 %v3813_v49  ;;  %v1764_v40 = vmul.f32 %v1758_v47, %v1596_v12 }
 0xae4   :  { %3814 = vrcp.f32 %v1608_v13  ;;  %vm1620_vm11 = vmor %vm1618_vm10, %vm1619_vm9  ;;  %v1639_v38 = vand.u32 2147483648, %v1608_v13  ;;  %v1637_v25 = vand.u32 2147483647, %v1608_v13  ;;  %vm1633_vm14 = vweird.f32 %v1608_v13 }
 0xae5   :  { %v1615_v43 = vsub.f32 1.0, %v1614_v9  ;;  %3816 = vpow2.f32 %v1769_v23 }
 0xae6   :  { %v1640_v14 = vor.u32 1.1754944e-38, %v1639_v38  ;;  %vm1638_vm3 = vcmp.eq.f32.partialorder %v1637_v25, 8.507059e+37  ;;  %v1572_v25 = vmul.f32 0.5, %v5010_v53 }
 0xae7   :  { %v1616_v3 = vmul.f32 %v3813_v49, %v1615_v43 }
 0xae9   :  { %v1617_v2 = vadd.f32 %v3813_v49, %v1616_v3 }
 0xaea   :  { %v3815_v50 = vpop.eup %3814 }
 0xaeb   :  { %v1621_v36 = vsel %vm1620_vm11, %v3813_v49, %v1617_v2  ;;  %v1629_v16 = vmul.f32 %v3815_v50, %v1608_v13  ;;  %vm1634_vm13 = vweird.f32 %v3815_v50  ;;  %v1771_v13 = vmul.f32 1.442695, %v1764_v40  ;;  %v3817_v18 = vpop.eup %3816 }
 0xaec   :  { %v1626_v8 = vsel %vm1623_vm12, %v1625_v27, %v1621_v36  ;;  %vm1635_vm2 = vmor %vm1633_vm14, %vm1634_vm13 }
 0xaed   :  { %v1703_v19 = vmul.f32 1.0614054, %v1626_v8  ;;  %v1630_v31 = vsub.f32 1.0, %v1629_v16  ;;  %3818 = vpow2.f32 %v1771_v13 }
 0xaef   :  { %v1709_v59 = vadd.f32 -1.4531521, %v1703_v19  ;;  %v1631_v30 = vmul.f32 %v3815_v50, %v1630_v31 }
 0xaf1   :  { %v1715_v32 = vmul.f32 %v1709_v59, %v1626_v8  ;;  %v1632_v34 = vadd.f32 %v3815_v50, %v1631_v30  ;;  %v1571_v30 = vmul.f32 0.5, %v5003_v44 }
 0xaf3   :  { %v1721_v15 = vadd.f32 1.4214138, %v1715_v32  ;;  %v1636_v1 = vsel %vm1635_vm2, %v3815_v50, %v1632_v34  ;;  %v3819_v27 = vpop.eup %3818  ;;  %v4042_v50 = vmov -1.0  }
 0xaf4   :  { %v1641_v46 = vsel %vm1638_vm3, %v1640_v14, %v1636_v1  ;;  %v1589_v36 = vsel %vm1583_vm4, 1.0, %v4042_v50  ;;  %v1590_v19 = vsel %vm1584_vm6, 1.0, %v4042_v50 }
 0xaf5   :  { %v1727_v24 = vmul.f32 %v1721_v15, %v1626_v8  ;;  %v1704_v6 = vmul.f32 1.0614054, %v1641_v46 }
 0xaf7   :  { %v1733_v62 = vadd.f32 -0.28449672, %v1727_v24  ;;  %v1710_v22 = vadd.f32 -1.4531521, %v1704_v6 }
 0xaf9   :  { %v1739_v52 = vmul.f32 %v1733_v62, %v1626_v8  ;;  %v1716_v54 = vmul.f32 %v1710_v22, %v1641_v46 }
 0xafb   :  { %v1745_v42 = vadd.f32 0.2548296, %v1739_v52  ;;  %v1722_v49 = vadd.f32 1.4214138, %v1716_v54 }
 0xafd   :  { %v1751_v9 = vmul.f32 %v1745_v42, %v1626_v8  ;;  %v1728_v33 = vmul.f32 %v1722_v49, %v1641_v46 }
 0xaff   :  { %v1781_v43 = vmul.f32 %v3817_v18, %v1751_v9  ;;  %v1734_v45 = vadd.f32 -0.28449672, %v1728_v33 }
 0xb01   :  { %v1740_v3 = vmul.f32 %v1734_v45, %v1641_v46  ;;  %v1787_v35 = vsub.f32 1.0, %v1781_v43 }
 0xb03   :  { %v1746_v26 = vadd.f32 0.2548296, %v1740_v3  ;;  %v1793_v29 = vmul.f32 %v1787_v35, %v1589_v36 }
 0xb04   :  { %v1561_v10 = vpop.f32.mrf.mxu3 }
 0xb05   :  { %v5054_v2 = vadd.f32 %v5000_v4, %v1561_v10  ;;  %v1752_v12 = vmul.f32 %v1746_v26, %v1641_v46  ;;  %v1799_v31 = vadd.f32 1.0, %v1793_v29 }
 0xb07   :  { %v5058_v7 = vmul.f32 0.70710677, %v5054_v2  ;;  %v1782_v8 = vmul.f32 %v3819_v27, %v1752_v12  ;;  %v1805_v63 = vmul.f32 %v1799_v31, %v1571_v30 }
 0xb09   :  { %v1597_v0 = vand.u32 2147483647, %v5058_v7  ;;  %v1788_v16 = vsub.f32 1.0, %v1782_v8 }
 0xb0b   :  { %v1603_v57 = vmul.f32 0.3275911, %v1597_v0  ;;  %v1794_v38 = vmul.f32 %v1788_v16, %v1590_v19  ;;  %v1759_v26 = vsub.f32 0.0, %v1597_v0 }
 0xb0c   :  { %v1563_v59 = vpop.f32.mrf.mxu3 }
 0xb0d   :  { %v1609_v51 = vadd.f32 1.0, %v1603_v57  ;;  %v5064_v28 = vadd.f32 %v5000_v4, %v1563_v59  ;;  %v1800_v32 = vadd.f32 1.0, %v1794_v38  ;;  %v1765_v19 = vmul.f32 %v1759_v26, %v1597_v0 }
 0xb0f   :  { %3820 = vrcp.f32 %v1609_v51  ;;  %v1806_v39 = vmul.f32 %v1800_v32, %v1572_v25  ;;  %v5069_v34 = vmul.f32 0.70710677, %v5064_v28  ;;  %v1654_v62 = vand.u32 2147483648, %v1609_v51 }
 0xb10   :  { %v1652_v40 = vand.u32 2147483647, %v1609_v51  ;;  %vm1648_vm8 = vweird.f32 %v1609_v51 }
 0xb11   :  { %v1819_v15 = vpack.c.bf16 %v1806_v39, %v1805_v63  ;;  %v5072_v14 = vand.u32 2147483647, %v5069_v34  ;;  %v1655_v9 = vor.u32 1.1754944e-38, %v1654_v62 }
 0xb12   :  { %vm1653_vm10 = vcmp.eq.f32.partialorder %v1652_v40, 8.507059e+37 }
 0xb13   :  { %v1604_v1 = vmul.f32 0.3275911, %v5072_v14  ;;  %3564 = vmatmul.msk.bf16.vlgmr.msrb.gmra.mxu1 %vm24_vm0, %v1819_v15  ;;  %v1760_v32 = vsub.f32 0.0, %v5072_v14  ;;  %v1773_v15 = vmul.f32 1.442695, %v1765_v19 }
 0xb14   :  { %v1566_v24 = vpop.f32.mrf.mxu3 }
 0xb15   :  { %v3821_v23 = vpop.eup %3820  ;;  %v5077_v44 = vadd.f32 %v5000_v4, %v1566_v24  ;;  %v1610_v46 = vadd.f32 1.0, %v1604_v1 }
 0xb16   :  { %v1644_v53 = vmul.f32 %v3821_v23, %v1609_v51  ;;  %vm1649_vm7 = vweird.f32 %v3821_v23 }
 0xb17   :  { %v5080_v47 = vmul.f32 0.70710677, %v5077_v44  ;;  %3822 = vrcp.f32 %v1610_v46  ;;  %vm1650_vm9 = vmor %vm1648_vm8, %vm1649_vm7  ;;  %v1669_v36 = vand.u32 2147483648, %v1610_v46  ;;  %v1667_v8 = vand.u32 2147483647, %v1610_v46 }
 0xb18   :  { %v1645_v6 = vsub.f32 1.0, %v1644_v53  ;;  %vm1663_vm12 = vweird.f32 %v1610_v46 }
 0xb19   :  { %v5083_v22 = vand.u32 2147483647, %v5080_v47  ;;  %v1670_v51 = vor.u32 1.1754944e-38, %v1669_v36  ;;  %vm1668_vm14 = vcmp.eq.f32.partialorder %v1667_v8, 8.507059e+37 }
 0xb1a   :  { %v1646_v52 = vmul.f32 %v3821_v23, %v1645_v6 }
 0xb1b   :  { %v1605_v54 = vmul.f32 0.3275911, %v5083_v22 }
 0xb1c   :  { %v1647_v42 = vadd.f32 %v3821_v23, %v1646_v52  ;;  %v1568_v49 = vpop.f32.mrf.mxu3  ;;  %v1766_v52 = vmul.f32 %v1760_v32, %v5072_v14  ;;  %v1761_v14 = vsub.f32 0.0, %v5083_v22 }
 0xb1d   :  { %v1611_v13 = vadd.f32 1.0, %v1605_v54  ;;  %v5087_v33 = vadd.f32 %v5000_v4, %v1568_v49  ;;  %v3823_v18 = vpop.eup %3822 }
 0xb1e   :  { %v1651_v43 = vsel %vm1650_vm9, %v3821_v23, %v1647_v42  ;;  %v1659_v3 = vmul.f32 %v3823_v18, %v1610_v46  ;;  %vm1664_vm11 = vweird.f32 %v3823_v18  ;;  %vm1585_vm9 = vcmp.ge.f32.partialorder %v5058_v7, 0.0 }
 0xb1f   :  { %v1656_v45 = vsel %vm1653_vm10, %v1655_v9, %v1651_v43  ;;  %3824 = vrcp.f32 %v1611_v13  ;;  %v5090_v12 = vmul.f32 0.70710677, %v5087_v33  ;;  %vm1665_vm13 = vmor %vm1663_vm12, %vm1664_vm11  ;;  %v1684_v0 = vand.u32 2147483648, %v1611_v13 }
 0xb20   :  { %v1705_v35 = vmul.f32 1.0614054, %v1656_v45  ;;  %v1660_v10 = vsub.f32 1.0, %v1659_v3  ;;  %v1682_v6 = vand.u32 2147483647, %v1611_v13  ;;  %vm1678_vm3 = vweird.f32 %v1611_v13 }
 0xb21   :  { %v5093_v4 = vand.u32 2147483647, %v5090_v12  ;;  %v1685_v49 = vor.u32 1.1754944e-38, %v1684_v0  ;;  %vm1586_vm12 = vcmp.ge.f32.partialorder %v5069_v34, 0.0 }
 0xb22   :  { %v1711_v27 = vadd.f32 -1.4531521, %v1705_v35  ;;  %v1661_v29 = vmul.f32 %v3823_v18, %v1660_v10  ;;  %vm1683_vm6 = vcmp.eq.f32.partialorder %v1682_v6, 8.507059e+37  ;;  %v1775_v35 = vmul.f32 1.442695, %v1766_v52 }
 0xb23   :  { %v1606_v38 = vmul.f32 0.3275911, %v5093_v4  ;;  %v1762_v52 = vsub.f32 0.0, %v5093_v4 }
 0xb24   :  { %v1717_v16 = vmul.f32 %v1711_v27, %v1656_v45  ;;  %v1662_v31 = vadd.f32 %v3823_v18, %v1661_v29 }
 0xb25   :  { %v3825_v57 = vpop.eup %3824  ;;  %v1612_v63 = vadd.f32 1.0, %v1606_v38 }
 0xb26   :  { %v1723_v59 = vadd.f32 1.4214138, %v1717_v16  ;;  %v1674_v30 = vmul.f32 %v3825_v57, %v1611_v13  ;;  %v1666_v25 = vsel %vm1665_vm13, %v3823_v18, %v1662_v31  ;;  %vm1679_vm2 = vweird.f32 %v3825_v57 }
 0xb27   :  { %v1671_v1 = vsel %vm1668_vm14, %v1670_v51, %v1666_v25  ;;  %3826 = vrcp.f32 %v1612_v63  ;;  %vm1680_vm4 = vmor %vm1678_vm3, %vm1679_vm2  ;;  %v1699_v38 = vand.u32 2147483648, %v1612_v63  ;;  %v1697_v51 = vand.u32 2147483647, %v1612_v63 }
 0xb28   :  { %v1729_v39 = vmul.f32 %v1723_v59, %v1656_v45  ;;  %v1675_v24 = vsub.f32 1.0, %v1674_v30  ;;  %v1706_v23 = vmul.f32 1.0614054, %v1671_v1  ;;  %3828 = vpow2.f32 %v1773_v15 }
 0xb29   :  { %3830 = vpow2.f32 %v1775_v35  ;;  %v1767_v25 = vmul.f32 %v1761_v14, %v5083_v22  ;;  %vm1693_vm8 = vweird.f32 %v1612_v63  ;;  %vm1698_vm11 = vcmp.eq.f32.partialorder %v1697_v51, 8.507059e+37 }
 0xb2a   :  { %v1735_v53 = vadd.f32 -0.28449672, %v1729_v39  ;;  %v1676_v46 = vmul.f32 %v3825_v57, %v1675_v24  ;;  %v1712_v62 = vadd.f32 -1.4531521, %v1706_v23  ;;  %v1700_v24 = vor.u32 1.1754944e-38, %v1699_v38 }
 0xb2b   :  { %v1777_v6 = vmul.f32 1.442695, %v1767_v25  ;;  %v1591_v22 = vsel %vm1585_vm9, 1.0, %v4042_v50  ;;  %v1574_v14 = vmul.f32 0.5, %v5064_v28  ;;  %vm1587_vm13 = vcmp.ge.f32.partialorder %v5080_v47, 0.0 }
 0xb2c   :  { %v1741_v40 = vmul.f32 %v1735_v53, %v1656_v45  ;;  %v1677_v54 = vadd.f32 %v3825_v57, %v1676_v46  ;;  %v1718_v42 = vmul.f32 %v1712_v62, %v1671_v1  ;;  %v1593_v28 = vsel %vm1587_vm13, 1.0, %v4042_v50 }
 0xb2d   :  { %v3827_v43 = vpop.eup %3826  ;;  %3832 = vpow2.f32 %v1777_v6  ;;  %vm1588_vm14 = vcmp.ge.f32.partialorder %v5090_v12, 0.0  ;;  %v3660_v12 = vld [vmem:[%s5901_s2 + $0xb] ss:$0 sm:$0xff] }
 0xb2e   :  { %v1747_v9 = vadd.f32 0.2548296, %v1741_v40  ;;  %v1681_v18 = vsel %vm1680_vm4, %v3825_v57, %v1677_v54  ;;  %v1724_v3 = vadd.f32 1.4214138, %v1718_v42  ;;  %v1689_v36 = vmul.f32 %v3827_v43, %v1612_v63  ;;  %v3829_v8 = vpop.eup %3828 }
 0xb2f   :  { %v1686_v26 = vsel %vm1683_vm6, %v1685_v49, %v1681_v18  ;;  %vm1694_vm7 = vweird.f32 %v3827_v43  ;;  %v3831_v53 = vpop.eup %3830  ;;  %v1768_v18 = vmul.f32 %v1762_v52, %v5093_v4 }
 0xb30   :  { %v1753_v10 = vmul.f32 %v1747_v9, %v1656_v45  ;;  %v1707_v27 = vmul.f32 1.0614054, %v1686_v26  ;;  %v1730_v29 = vmul.f32 %v1724_v3, %v1671_v1  ;;  %v1690_v19 = vsub.f32 1.0, %v1689_v36  ;;  %vm1695_vm10 = vmor %vm1693_vm8, %vm1694_vm7 }
 0xb32   :  { %v1713_v16 = vadd.f32 -1.4531521, %v1707_v27  ;;  %v1783_v13 = vmul.f32 %v3829_v8, %v1753_v10  ;;  %v1736_v31 = vadd.f32 -0.28449672, %v1730_v29  ;;  %v1691_v57 = vmul.f32 %v3827_v43, %v1690_v19 }
 0xb33   :  { %v1573_v29 = vmul.f32 0.5, %v5054_v2  ;;  %v1779_v8 = vmul.f32 1.442695, %v1768_v18  ;;  %v3833_v19 = vpop.eup %3832 }
 0xb34   :  { %v1719_v59 = vmul.f32 %v1713_v16, %v1686_v26  ;;  %v1742_v30 = vmul.f32 %v1736_v31, %v1671_v1  ;;  %v1692_v32 = vadd.f32 %v3827_v43, %v1691_v57  ;;  %v1789_v39 = vsub.f32 1.0, %v1783_v13 }
 0xb35   :  { %3834 = vpow2.f32 %v1779_v8 }
 0xb36   :  { %v1725_v45 = vadd.f32 1.4214138, %v1719_v59  ;;  %v1748_v15 = vadd.f32 0.2548296, %v1742_v30  ;;  %v1696_v0 = vsel %vm1695_vm10, %v3827_v43, %v1692_v32  ;;  %v1795_v63 = vmul.f32 %v1789_v39, %v1591_v22 }
 0xb37   :  { %v1701_v62 = vsel %vm1698_vm11, %v1700_v24, %v1696_v0  ;;  %v1594_v39 = vsel %vm1588_vm14, 1.0, %v4042_v50  ;;  %v1576_v0 = vmul.f32 0.5, %v5087_v33 }
 0xb38   :  { %v1731_v23 = vmul.f32 %v1725_v45, %v1686_v26  ;;  %v1754_v46 = vmul.f32 %v1748_v15, %v1671_v1  ;;  %v1708_v54 = vmul.f32 1.0614054, %v1701_v62  ;;  %v1592_v1 = vsel %vm1586_vm12, 1.0, %v4042_v50 }
 0xb39   :  { %v1801_v35 = vadd.f32 1.0, %v1795_v63 }
 0xb3a   :  { %v1737_v40 = vadd.f32 -0.28449672, %v1731_v23  ;;  %v1784_v7 = vmul.f32 %v3831_v53, %v1754_v46  ;;  %v1714_v49 = vadd.f32 -1.4531521, %v1708_v54  ;;  %v1575_v23 = vmul.f32 0.5, %v5077_v44 }
 0xb3b   :  { %v1807_v13 = vmul.f32 %v1801_v35, %v1573_v29  ;;  %v3835_v30 = vpop.eup %3834 }
 0xb3c   :  { %v1743_v42 = vmul.f32 %v1737_v40, %v1686_v26  ;;  %v1790_v9 = vsub.f32 1.0, %v1784_v7  ;;  %v1720_v3 = vmul.f32 %v1714_v49, %v1701_v62 }
 0xb3e   :  { %v1749_v43 = vadd.f32 0.2548296, %v1743_v42  ;;  %v1796_v10 = vmul.f32 %v1790_v9, %v1592_v1  ;;  %v1726_v36 = vadd.f32 1.4214138, %v1720_v3 }
 0xb40   :  { %v1755_v27 = vmul.f32 %v1749_v43, %v1686_v26  ;;  %v1802_v34 = vadd.f32 1.0, %v1796_v10  ;;  %v1732_v16 = vmul.f32 %v1726_v36, %v1701_v62 }
 0xb42   :  { %v1808_v31 = vmul.f32 %v1802_v34, %v1574_v14  ;;  %v1785_v38 = vmul.f32 %v3833_v19, %v1755_v27  ;;  %v1738_v4 = vadd.f32 -0.28449672, %v1732_v16 }
 0xb44   :  { %v1820_v59 = vpack.c.bf16 %v1808_v31, %v1807_v13  ;;  %v1744_v57 = vmul.f32 %v1738_v4, %v1701_v62  ;;  %v1791_v26 = vsub.f32 1.0, %v1785_v38 }
 0xb46   :  { %3565 = vmatmul.msk.bf16.gmra.mxu1 %vm24_vm0, %v1820_v59  ;;  %v1750_v51 = vadd.f32 0.2548296, %v1744_v57  ;;  %v1797_v25 = vmul.f32 %v1791_v26, %v1593_v28 }
 0xb48   :  { %v1756_v2 = vmul.f32 %v1750_v51, %v1701_v62  ;;  %v1803_v15 = vadd.f32 1.0, %v1797_v25 }
 0xb4a   :  { %v1786_v45 = vmul.f32 %v3835_v30, %v1756_v2  ;;  %v1809_v53 = vmul.f32 %v1803_v15, %v1575_v23 }
 0xb4c   :  { %v1792_v32 = vsub.f32 1.0, %v1786_v45 }
 0xb4e   :  { %v1798_v24 = vmul.f32 %v1792_v32, %v1594_v39 }
 0xb50   :  { %v1804_v47 = vadd.f32 1.0, %v1798_v24 }
 0xb52   :  { %v1810_v46 = vmul.f32 %v1804_v47, %v1576_v0 }
 0xb54   :  { %v1821_v6 = vpack.c.bf16 %v1810_v46, %v1809_v53 }
 0xb56   :  { %3566 = vmatmul.msk.bf16.gmra.mxu1 %vm24_vm0, %v1821_v6 }
 0xb90   :  { %v1864_v62 = vpop.f32.mrf.mxu1 }
 0xb91   :  { %v1879_v52 = vadd.f32 %v1864_v62, %v4867_v37 }
 0xb93   :  { %v5120_v22 = vadd.f32 %v3660_v12, %v1879_v52 }
 0xb95   :  { %v1893_v44 = vsel %vm250_vm5, %v5120_v22, 0.0 }
 0xb96   :  { %1894 = vadd.xlane.f32.xlu1 %v1893_v44 }
 0xb98   :  { %v1866_v33 = vpop.f32.mrf.mxu1 }
 0xb99   :  { %v1880_v40 = vadd.f32 %v1866_v33, %v4872_v58 }
 0xb9b   :  { %v5125_v54 = vadd.f32 %v3660_v12, %v1880_v40 }
 0xb9d   :  { %v1896_v63 = vsel %vm250_vm5, %v5125_v54, 0.0 }
 0xb9e   :  { %1897 = vadd.xlane.f32.xlu0 %v1896_v63 }
 0xbc3   :  { %v1869_v7 = vpop.f32.mrf.mxu1 }
 0xbc4   :  { %v1881_v42 = vadd.f32 %v1869_v7, %v4879_v56 }
 0xbc6   :  { %v5130_v49 = vadd.f32 %v3660_v12, %v1881_v42 }
 0xbc8   :  { %v1899_v37 = vsel %vm250_vm5, %v5130_v49, 0.0 }
 0xbc9   :  { %1900 = vadd.xlane.f32.xlu2 %v1899_v37 }
 0xbcb   :  { %v1871_v9 = vpop.f32.mrf.mxu1 }
 0xbcc   :  { %v1882_v18 = vadd.f32 %v1871_v9, %v4885_v17 }
 0xbce   :  { %v5135_v1 = vadd.f32 %v3660_v12, %v1882_v18 }
 0xbd0   :  { %v1902_v58 = vsel %vm250_vm5, %v5135_v1, 0.0 }
 0xbd1   :  { %1903 = vadd.xlane.f32.xlu1 %v1902_v58 }
 0xbd3   :  { %v1874_v43 = vpop.f32.mrf.mxu1 }
 0xbd4   :  { %v1883_v3 = vadd.f32 %v1874_v43, %v4891_v61 }
 0xbd6   :  { %v5140_v35 = vadd.f32 %v3660_v12, %v1883_v3 }
 0xbd8   :  { %v1905_v56 = vsel %vm250_vm5, %v5140_v35, 0.0 }
 0xbd9   :  { %1906 = vadd.xlane.f32.xlu0 %v1905_v56 }
 0xbdb   :  { %v1876_v10 = vpop.f32.mrf.mxu1 }
 0xbdc   :  { %v1884_v27 = vadd.f32 %v1876_v10, %v4896_v20 }
 0xbde   :  { %v5145_v36 = vadd.f32 %v3660_v12, %v1884_v27 }
 0xbe0   :  { %v1908_v17 = vsel %vm250_vm5, %v5145_v36, 0.0 }
 0xbe1   :  { %1909 = vadd.xlane.f32.xlu2 %v1908_v17 }
 0xc09   :  { %v1895_v29 = vpop.xlane.xlu1 %1894 }
 0xc0a   :  { %v1911_v14 = vmul.f32 %v1895_v29, %v4194_v48 }
 0xc0c   :  { %v1917_v61 = vsub.f32 %v5120_v22, %v1911_v14  ;;  %v5188_v14 = vld [vmem:[%s5901_s2 + $0x5] ss:$0 sm:$0xff] }
 0xc0e   :  { %v1923_v34 = vmul.f32 %v1917_v61, %v1917_v61 }
 0xc10   :  { %v1929_v8 = vsel %vm250_vm5, %v1923_v34, 0.0 }
 0xc11   :  { %1930 = vadd.xlane.f32.xlu1 %v1929_v8  ;;  %v1898_v16 = vpop.xlane.xlu0 %1897 }
 0xc12   :  { %v1912_v19 = vmul.f32 %v1898_v16, %v4194_v48 }
 0xc14   :  { %v1918_v20 = vsub.f32 %v5125_v54, %v1912_v19  ;;  %v5195_v19 = vld [vmem:[%s5901_s2 + $0x6] ss:$0 sm:$0xff] }
 0xc16   :  { %v1924_v13 = vmul.f32 %v1918_v20, %v1918_v20 }
 0xc18   :  { %v1932_v31 = vsel %vm250_vm5, %v1924_v13, 0.0 }
 0xc19   :  { %1933 = vadd.xlane.f32.xlu0 %v1932_v31 }
 0xc3c   :  { %v1901_v38 = vpop.xlane.xlu2 %1900 }
 0xc3d   :  { %v1913_v4 = vmul.f32 %v1901_v38, %v4194_v48 }
 0xc3f   :  { %v5157_v59 = vsub.f32 %v5130_v49, %v1913_v4 }
 0xc41   :  { %v1925_v57 = vmul.f32 %v5157_v59, %v5157_v59 }
 0xc43   :  { %v1935_v26 = vsel %vm250_vm5, %v1925_v57, 0.0 }
 0xc44   :  { %v1904_v51 = vpop.xlane.xlu1 %1903  ;;  %1936 = vadd.xlane.f32.xlu2 %v1935_v26 }
 0xc45   :  { %v1914_v2 = vmul.f32 %v1904_v51, %v4194_v48 }
 0xc47   :  { %v5164_v30 = vsub.f32 %v5135_v1, %v1914_v2 }
 0xc49   :  { %v1926_v28 = vmul.f32 %v5164_v30, %v5164_v30 }
 0xc4b   :  { %v1938_v25 = vsel %vm250_vm5, %v1926_v28, 0.0 }
 0xc4c   :  { %1939 = vadd.xlane.f32.xlu1 %v1938_v25  ;;  %v1907_v45 = vpop.xlane.xlu0 %1906 }
 0xc4d   :  { %v1915_v32 = vmul.f32 %v1907_v45, %v4194_v48 }
 0xc4f   :  { %v5171_v39 = vsub.f32 %v5140_v35, %v1915_v32 }
 0xc51   :  { %v1927_v15 = vmul.f32 %v5171_v39, %v5171_v39 }
 0xc53   :  { %v1941_v24 = vsel %vm250_vm5, %v1927_v15, 0.0 }
 0xc54   :  { %v1910_v23 = vpop.xlane.xlu2 %1909  ;;  %1942 = vadd.xlane.f32.xlu0 %v1941_v24 }
 0xc55   :  { %v1916_v0 = vmul.f32 %v1910_v23, %v4194_v48 }
 0xc57   :  { %v5178_v47 = vsub.f32 %v5145_v36, %v1916_v0 }
 0xc59   :  { %v1928_v53 = vmul.f32 %v5178_v47, %v5178_v47 }
 0xc5b   :  { %v1944_v46 = vsel %vm250_vm5, %v1928_v53, 0.0 }
 0xc5c   :  { %1945 = vadd.xlane.f32.xlu2 %v1944_v46 }
 0xc84   :  { %v1931_v6 = vpop.xlane.xlu1 %1930 }
 0xc85   :  { %v1947_v12 = vmul.f32 %v1931_v6, %v4194_v48 }
 0xc87   :  { %v1953_v62 = vadd.f32 1e-05, %v1947_v12 }
 0xc89   :  { %3836 = vrsqrt.f32 %v1953_v62  ;;  %vm1965_vm3 = vweird.f32 %v1953_v62 }
 0xc8c   :  { %v1934_v52 = vpop.xlane.xlu0 %1933 }
 0xc8d   :  { %v1948_v44 = vmul.f32 %v1934_v52, %v4194_v48 }
 0xc8f   :  { %v3837_v33 = vpop.eup %3836  ;;  %v1954_v40 = vadd.f32 1e-05, %v1948_v44 }
 0xc90   :  { %v1960_v63 = vmul.f32 %v3837_v33, %v1953_v62  ;;  %vm1966_vm2 = vweird.f32 %v3837_v33 }
 0xc91   :  { %3838 = vrsqrt.f32 %v1954_v40  ;;  %vm1967_vm4 = vmor %vm1965_vm3, %vm1966_vm2  ;;  %vm1975_vm7 = vweird.f32 %v1954_v40 }
 0xc92   :  { %v1961_v7 = vmul.f32 %v3837_v33, %v1960_v63 }
 0xc94   :  { %v1962_v42 = vmul.f32 0.5, %v1961_v7 }
 0xc96   :  { %v1963_v37 = vsub.f32 1.5, %v1962_v42 }
 0xc97   :  { %v3839_v9 = vpop.eup %3838 }
 0xc98   :  { %v1964_v18 = vmul.f32 %v3837_v33, %v1963_v37  ;;  %v1970_v58 = vmul.f32 %v3839_v9, %v1954_v40  ;;  %vm1976_vm6 = vweird.f32 %v3839_v9 }
 0xc99   :  { %vm1977_vm8 = vmor %vm1975_vm7, %vm1976_vm6 }
 0xc9a   :  { %v1971_v43 = vmul.f32 %v3839_v9, %v1970_v58  ;;  %v1968_v3 = vsel %vm1967_vm4, %v3837_v33, %v1964_v18 }
 0xc9b   :  { %v2019_v27 = vmul.f32 %v1968_v3, %v1917_v61 }
 0xc9c   :  { %v1972_v56 = vmul.f32 0.5, %v1971_v43 }
 0xc9d   :  { %v2025_v34 = vmul.f32 %v5188_v14, %v2019_v27 }
 0xc9e   :  { %v1973_v10 = vsub.f32 1.5, %v1972_v56 }
 0xc9f   :  { %v2031_v61 = vadd.f32 %v5195_v19, %v2025_v34 }
 0xca0   :  { %v1974_v17 = vmul.f32 %v3839_v9, %v1973_v10 }
 0xca2   :  { %v1978_v29 = vsel %vm1977_vm8, %v3839_v9, %v1974_v17 }
 0xca3   :  { %v2020_v8 = vmul.f32 %v1978_v29, %v1918_v20 }
 0xca5   :  { %v2026_v16 = vmul.f32 %v5188_v14, %v2020_v8 }
 0xca7   :  { %v2032_v13 = vadd.f32 %v5195_v19, %v2026_v16 }
 0xca9   :  { %v2037_v31 = vpack.c.bf16 %v2032_v13, %v2031_v61 }
 0xcab   :  { %3567 = vmatmul.msk.bf16.vlgmr.msrb.gmra.mxu2 %vm250_vm5, %v2037_v31  ;;  %3570 = vmatmul.msk.bf16.vlgmr.msra.gmra.mxu0 %vm250_vm5, %v2037_v31 }
 0xcb7   :  { %v1937_v38 = vpop.xlane.xlu2 %1936 }
 0xcb8   :  { %v1949_v4 = vmul.f32 %v1937_v38, %v4194_v48 }
 0xcba   :  { %v1955_v20 = vadd.f32 1e-05, %v1949_v4 }
 0xcbc   :  { %3840 = vrsqrt.f32 %v1955_v20  ;;  %vm1985_vm10 = vweird.f32 %v1955_v20 }
 0xcbf   :  { %v1940_v57 = vpop.xlane.xlu1 %1939 }
 0xcc0   :  { %v1950_v26 = vmul.f32 %v1940_v57, %v4194_v48 }
 0xcc2   :  { %v3841_v51 = vpop.eup %3840  ;;  %v1956_v2 = vadd.f32 1e-05, %v1950_v26 }
 0xcc3   :  { %v1980_v28 = vmul.f32 %v3841_v51, %v1955_v20  ;;  %vm1986_vm9 = vweird.f32 %v3841_v51 }
 0xcc4   :  { %3842 = vrsqrt.f32 %v1956_v2  ;;  %vm1987_vm11 = vmor %vm1985_vm10, %vm1986_vm9  ;;  %vm1995_vm13 = vweird.f32 %v1956_v2 }
 0xcc5   :  { %v1981_v25 = vmul.f32 %v3841_v51, %v1980_v28 }
 0xcc7   :  { %v1982_v45 = vmul.f32 0.5, %v1981_v25  ;;  %v1943_v32 = vpop.xlane.xlu0 %1942 }
 0xcc8   :  { %v1951_v24 = vmul.f32 %v1943_v32, %v4194_v48 }
 0xcc9   :  { %v1983_v15 = vsub.f32 1.5, %v1982_v45 }
 0xcca   :  { %v3843_v23 = vpop.eup %3842  ;;  %v1957_v46 = vadd.f32 1e-05, %v1951_v24 }
 0xccb   :  { %v1984_v0 = vmul.f32 %v3841_v51, %v1983_v15  ;;  %v1990_v53 = vmul.f32 %v3843_v23, %v1956_v2  ;;  %vm1996_vm12 = vweird.f32 %v3843_v23 }
 0xccc   :  { %3844 = vrsqrt.f32 %v1957_v46  ;;  %vm1997_vm14 = vmor %vm1995_vm13, %vm1996_vm12  ;;  %vm2005_vm3 = vweird.f32 %v1957_v46 }
 0xccd   :  { %v1991_v6 = vmul.f32 %v3843_v23, %v1990_v53  ;;  %v1988_v12 = vsel %vm1987_vm11, %v3841_v51, %v1984_v0 }
 0xcce   :  { %v2021_v40 = vmul.f32 %v1988_v12, %v5157_v59 }
 0xccf   :  { %v1992_v62 = vmul.f32 0.5, %v1991_v6  ;;  %v1946_v52 = vpop.xlane.xlu2 %1945 }
 0xcd0   :  { %v1952_v33 = vmul.f32 %v1946_v52, %v4194_v48  ;;  %v2027_v43 = vmul.f32 %v5188_v14, %v2021_v40 }
 0xcd1   :  { %v1993_v44 = vsub.f32 1.5, %v1992_v62 }
 0xcd2   :  { %v3845_v63 = vpop.eup %3844  ;;  %v1958_v42 = vadd.f32 1e-05, %v1952_v33  ;;  %v2033_v27 = vadd.f32 %v5195_v19, %v2027_v43 }
 0xcd3   :  { %v1994_v7 = vmul.f32 %v3843_v23, %v1993_v44  ;;  %v2000_v37 = vmul.f32 %v3845_v63, %v1957_v46  ;;  %vm2006_vm2 = vweird.f32 %v3845_v63 }
 0xcd4   :  { %3846 = vrsqrt.f32 %v1958_v42  ;;  %vm2007_vm4 = vmor %vm2005_vm3, %vm2006_vm2  ;;  %vm2015_vm7 = vweird.f32 %v1958_v42 }
 0xcd5   :  { %v1998_v9 = vsel %vm1997_vm14, %v3843_v23, %v1994_v7  ;;  %v2001_v58 = vmul.f32 %v3845_v63, %v2000_v37 }
 0xcd6   :  { %v2022_v18 = vmul.f32 %v1998_v9, %v5164_v30 }
 0xcd7   :  { %v2002_v3 = vmul.f32 0.5, %v2001_v58 }
 0xcd8   :  { %v2028_v56 = vmul.f32 %v5188_v14, %v2022_v18 }
 0xcd9   :  { %v2003_v10 = vsub.f32 1.5, %v2002_v3 }
 0xcda   :  { %v2034_v59 = vadd.f32 %v5195_v19, %v2028_v56  ;;  %v3847_v17 = vpop.eup %3846 }
 0xcdb   :  { %v2004_v29 = vmul.f32 %v3845_v63, %v2003_v10  ;;  %v2010_v34 = vmul.f32 %v3847_v17, %v1958_v42  ;;  %vm2016_vm6 = vweird.f32 %v3847_v17 }
 0xcdc   :  { %v2038_v8 = vpack.c.bf16 %v2034_v59, %v2033_v27  ;;  %vm2017_vm8 = vmor %vm2015_vm7, %vm2016_vm6 }
 0xcdd   :  { %v2011_v16 = vmul.f32 %v3847_v17, %v2010_v34  ;;  %v2008_v30 = vsel %vm2007_vm4, %v3845_v63, %v2004_v29 }
 0xcde   :  { %3568 = vmatmul.msk.bf16.gmra.mxu2 %vm250_vm5, %v2038_v8  ;;  %3571 = vmatmul.msk.bf16.gmra.mxu0 %vm250_vm5, %v2038_v8  ;;  %v2023_v31 = vmul.f32 %v2008_v30, %v5171_v39 }
 0xcdf   :  { %v2012_v61 = vmul.f32 0.5, %v2011_v16 }
 0xce0   :  { %v2029_v57 = vmul.f32 %v5188_v14, %v2023_v31  ;;  %v5295_v31 = vld [vmem:[%s5901_s2 + $0x48] sm:$0xff] }
 0xce1   :  { %v2013_v13 = vsub.f32 1.5, %v2012_v61 }
 0xce2   :  { %v2035_v51 = vadd.f32 %v5195_v19, %v2029_v57  ;;  %v5302_v57 = vld [vmem:[%s5901_s2 + $0x50] sm:$0xff] }
 0xce3   :  { %v2014_v38 = vmul.f32 %v3847_v17, %v2013_v13 }
 0xce5   :  { %v2018_v4 = vsel %vm2017_vm8, %v3847_v17, %v2014_v38 }
 0xce6   :  { %v2024_v20 = vmul.f32 %v2018_v4, %v5178_v47 }
 0xce8   :  { %v2030_v26 = vmul.f32 %v5188_v14, %v2024_v20 }
 0xcea   :  { %v2036_v2 = vadd.f32 %v5195_v19, %v2030_v26 }
 0xcec   :  { %v2039_v28 = vpack.c.bf16 %v2036_v2, %v2035_v51 }
 0xcee   :  { %3569 = vmatmul.msk.bf16.gmra.mxu2 %vm250_vm5, %v2039_v28  ;;  %3572 = vmatmul.msk.bf16.gmra.mxu0 %vm250_vm5, %v2039_v28  ;;  %v5309_v28 = vld [vmem:[%s5901_s2 + $0x58] sm:$0xff] }
 0xd28   :  { %v2082_v23 = vpop.f32.mrf.mxu0 }
 0xd2e   :  { %v2058_v39 = vpop.f32.mrf.mxu2 }
 0xd30   :  { %v2084_v0 = vpop.f32.mrf.mxu0 }
 0xd31   :  { %v5267_v8 = vpack.c.bf16 %v2084_v0, %v2082_v23  ;;  %v5323_v0 = vld [vmem:[%s5901_s2 + $0x68] sm:$0xff] }
 0xd36   :  { %v2060_v25 = vpop.f32.mrf.mxu2 }
 0xd37   :  { %v5221_v45 = vpack.c.bf16 %v2060_v25, %v2058_v39 }
 0xd39   :  { %2226 = vrot.lane.b32.xlu2 %v5221_v45, %s4034_s27 }
 0xd5b   :  { %v2087_v46 = vpop.f32.mrf.mxu0 }
 0xd61   :  { %v2063_v47 = vpop.f32.mrf.mxu2 }
 0xd63   :  { %v2089_v12 = vpop.f32.mrf.mxu0 }
 0xd64   :  { %v5263_v27 = vpack.c.bf16 %v2089_v12, %v2087_v46 }
 0xd69   :  { %v2065_v32 = vpop.f32.mrf.mxu2 }
 0xd6a   :  { %v5225_v15 = vpack.c.bf16 %v2065_v32, %v2063_v47  ;;  %v5316_v32 = vld [vmem:[%s5901_s2 + $0x60] sm:$0xff] }
 0xd6b   :  { %v2092_v33 = vpop.f32.mrf.mxu0 }
 0xd6c   :  { %2228 = vrot.lane.b32.xlu0 %v5225_v15, %s4034_s27 }
 0xd71   :  { %v2068_v14 = vpop.f32.mrf.mxu2 }
 0xd73   :  { %v2094_v18 = vpop.f32.mrf.mxu0 }
 0xd74   :  { %2220 = vrot.lane.b32.xlu0 %v5221_v45, %s4035_s28  ;;  %v5258_v3 = vpack.c.bf16 %v2094_v18, %v2092_v33 }
 0xd79   :  { %v2070_v19 = vpop.f32.mrf.mxu2 }
 0xd7a   :  { %v5231_v24 = vpack.c.bf16 %v2070_v19, %v2068_v14 }
 0xd7c   :  { %2345 = vrot.lane.b32.xlu0 %v5225_v15, %s4036_s29  ;;  %2224 = vrot.lane.b32.xlu2 %v5231_v24, %s4035_s28 }
 0xd7d   :  { %2230 = vrot.lane.b32.xlu1 %v5231_v24, %s4034_s27 }
 0xd84   :  { %2107 = vrot.lane.b32.xlu0 %v5231_v24, %s4032_s20  ;;  %2103 = vrot.lane.b32.xlu2 %v5221_v45, %s4032_s20 }
 0xd85   :  { %2222 = vrot.lane.b32.xlu1 %v5225_v15, %s4035_s28 }
 0xd8c   :  { %2347 = vrot.lane.b32.xlu0 %v5231_v24, %s4036_s29 }
 0xd8d   :  { %2105 = vrot.lane.b32.xlu1 %v5225_v15, %s4032_s20 }
 0xd93   :  { %v2227_v40 = vpop.permute.xlu2 %2226 }
 0xd94   :  { %2602 = vrot.lane.b32.xlu0 %v5231_v24, %s4037_s13  ;;  %v2242_v56 = vsel %vm696_vm15, %v2227_v40, 0 }
 0xd95   :  { %2343 = vrot.lane.b32.xlu1 %v5221_v45, %s4036_s29 }
 0xd9d   :  { %2437 = vrot.lane.b32.xlu1 %v5231_v24, %s4038_s14 }
 0xdd6   :  { %v2225_v9 = vpop.permute.xlu2 %2224 }
 0xdde   :  { %v2229_v53 = vpop.permute.xlu0 %2228  ;;  %v2104_v59 = vpop.permute.xlu2 %2103 }
 0xddf   :  { %v2245_v37 = vsel %vm696_vm15, %v2229_v53, 0  ;;  %v2119_v16 = vsel %vm696_vm15, %v2104_v59, 0 }
 0xde6   :  { %v2221_v6 = vpop.permute.xlu0 %2220 }
 0xdee   :  { %v2346_v62 = vpop.permute.xlu0 %2345 }
 0xdef   :  { %v2231_v52 = vpop.permute.xlu1 %2230 }
 0xdf0   :  { %v2248_v44 = vsel %vm696_vm15, %v2231_v52, 0 }
 0xdf1   :  { %2255 = vmatpush.bf16.xpose.msra.mxu1 %v2248_v44 }
 0xdf6   :  { %v2108_v63 = vpop.permute.xlu0 %2107 }
 0xdf7   :  { %v2223_v7 = vpop.permute.xlu1 %2222  ;;  %v2125_v42 = vsel %vm696_vm15, %v2108_v63, 0 }
 0xdf8   :  { %2132 = vmatpush.bf16.xpose.msra.mxu3 %v2125_v42 }
 0xdf9   :  { %2256 = vmatpush.bf16.xpose.msra.mxu1 %v2245_v37 }
 0xdfe   :  { %v2348_v58 = vpop.permute.xlu0 %2347 }
 0xdff   :  { %v2106_v43 = vpop.permute.xlu1 %2105  ;;  %2366 = vmatpush.bf16.msra.mxu2 %v2348_v58 }
 0xe00   :  { %v2122_v10 = vsel %vm696_vm15, %v2106_v43, 0 }
 0xe01   :  { %2133 = vmatpush.bf16.xpose.msra.mxu3 %v2122_v10  ;;  %2257 = vmatpush.bf16.xpose.msra.mxu1 %v2242_v56 }
 0xe03   :  { %2367 = vmatpush.bf16.msra.mxu2 %v2346_v62 }
 0xe06   :  { %v2603_v17 = vpop.permute.xlu0 %2602 }
 0xe07   :  { %v2344_v29 = vpop.permute.xlu1 %2343  ;;  %v2620_v34 = vsel %vm696_vm15, %v2603_v17, 0 }
 0xe08   :  { %3576 = vmatmul.msk.bf16.vlgmr.msra.gmra.mxu1 %vm696_vm15, %v2221_v6  ;;  %2368 = vmatpush.bf16.msra.mxu2 %v2344_v29 }
 0xe09   :  { %2567 = vmatpush.bf16.msrb.mxu1 %v5258_v3  ;;  %2134 = vmatpush.bf16.xpose.msra.mxu3 %v2119_v16 }
 0xe0c   :  { %2627 = vmatpush.bf16.xpose.msrb.mxu2 %v2620_v34 }
 0xe0d   :  { %2568 = vmatpush.bf16.msrb.mxu1 %v5263_v27 }
 0xe0f   :  { %v2438_v30 = vpop.permute.xlu1 %2437 }
 0xe10   :  { %v2455_v61 = vsel %vm696_vm15, %v2438_v30, 0  ;;  %3573 = vmatmul.msk.bf16.vlgmr.msra.gmra.mxu3 %vm696_vm15, %v5221_v45 }
 0xe11   :  { %2569 = vmatpush.bf16.msrb.mxu1 %v5267_v8  ;;  %2462 = vmatpush.bf16.xpose.msrb.mxu3 %v2455_v61 }
 0xe15   :  { %3214 = vmatpush.bf16.msra.mxu1 %v5022_v5 }
 0xe18   :  { %3577 = vmatmul.msk.bf16.gmra.mxu1 %vm696_vm15, %v2223_v7 }
 0xe19   :  { %3215 = vmatpush.bf16.msra.mxu1 %v5031_v11  ;;  %v5288_v11 = vld [vmem:[%s5901_s2 + $0x40] sm:$0xff] }
 0xe1d   :  { %3216 = vmatpush.bf16.msra.mxu1 %v5040_v60 }
 0xe20   :  { %3574 = vmatmul.msk.bf16.gmra.mxu3 %vm696_vm15, %v5225_v15 }
 0xe21   :  { %3217 = vmatpush.bf16.msra.mxu1 %v5049_v41 }
 0xe28   :  { %3578 = vmatmul.msk.bf16.gmra.mxu1 %vm696_vm15, %v2225_v9 }
 0xe30   :  { %3575 = vmatmul.msk.bf16.gmra.mxu3 %vm696_vm15, %v5231_v24 }
 0xe85   :  { %v2259_v5 = vpop.f32.mrf.mxu1 }
 0xe86   :  { %v2260_v60 = vadd.f32 %v5288_v11, %v2259_v5 }
 0xe88   :  { %v2274_v41 = vsel %vm739_vm1, %v2260_v60, -inf }
 0xe89   :  { %2275 = vmax.xlane.f32.xlu0 %v2274_v41 }
 0xe8d   :  { %v2261_v13 = vpop.f32.mrf.mxu1 }
 0xe8e   :  { %v2262_v38 = vadd.f32 %v5295_v31, %v2261_v13 }
 0xe90   :  { %v2277_v4 = vsel %vm739_vm1, %v2262_v38, -inf }
 0xe91   :  { %2278 = vmax.xlane.f32.xlu1 %v2277_v4 }
 0xe95   :  { %v2264_v20 = vpop.f32.mrf.mxu1 }
 0xe96   :  { %v2265_v26 = vadd.f32 %v5302_v57, %v2264_v20 }
 0xe98   :  { %v2280_v51 = vsel %vm739_vm1, %v2265_v26, -inf }
 0xe99   :  { %2281 = vmax.xlane.f32.xlu2 %v2280_v51 }
 0xe9d   :  { %v2266_v2 = vpop.f32.mrf.mxu1 }
 0xe9e   :  { %v2267_v39 = vadd.f32 %v5309_v28, %v2266_v2 }
 0xea0   :  { %v2283_v25 = vsel %vm739_vm1, %v2267_v39, -inf }
 0xea1   :  { %2284 = vmax.xlane.f32.xlu0 %v2283_v25 }
 0xea5   :  { %v2269_v47 = vpop.f32.mrf.mxu1 }
 0xea6   :  { %v2270_v14 = vadd.f32 %v5316_v32, %v2269_v47 }
 0xea8   :  { %v2286_v19 = vsel %vm739_vm1, %v2270_v14, -inf }
 0xea9   :  { %2287 = vmax.xlane.f32.xlu1 %v2286_v19 }
 0xead   :  { %v2271_v23 = vpop.f32.mrf.mxu1 }
 0xeae   :  { %v2272_v53 = vadd.f32 %v5323_v0, %v2271_v23 }
 0xeb0   :  { %v2289_v46 = vsel %vm739_vm1, %v2272_v53, -inf }
 0xeb1   :  { %2290 = vmax.xlane.f32.xlu2 %v2289_v46 }
 0xeb5   :  { %2433 = vrot.lane.b32.xlu0 %v5221_v45, %s4038_s14 }
 0xec2   :  { %2600 = vrot.lane.b32.xlu1 %v5225_v15, %s4037_s13 }
 0xefc   :  { %v2276_v6 = vpop.xlane.xlu0 %2275 }
 0xefd   :  { %v2292_v12 = vsub.f32 %v2260_v60, %v2276_v6 }
 0xeff   :  { %v2298_v62 = vmul.f32 1.442695, %v2292_v12 }
 0xf01   :  { %3848 = vpow2.f32 %v2298_v62 }
 0xf04   :  { %v2279_v52 = vpop.xlane.xlu1 %2278 }
 0xf05   :  { %v2293_v44 = vsub.f32 %v2262_v38, %v2279_v52 }
 0xf07   :  { %v5331_v33 = vpop.eup %3848  ;;  %v2300_v40 = vmul.f32 1.442695, %v2293_v44 }
 0xf08   :  { %v2310_v63 = vsel %vm739_vm1, %v5331_v33, 0.0 }
 0xf09   :  { %3850 = vpow2.f32 %v2300_v40  ;;  %2311 = vadd.xlane.f32.xlu2 %v2310_v63 }
 0xf0c   :  { %v2282_v7 = vpop.xlane.xlu2 %2281 }
 0xf0d   :  { %v2294_v42 = vsub.f32 %v2265_v26, %v2282_v7  ;;  %v2136_v26 = vpop.f32.mrf.mxu3 }
 0xf0e   :  { %v5367_v25 = vadd.f32 %v5288_v11, %v2136_v26 }
 0xf0f   :  { %v5335_v37 = vpop.eup %3850  ;;  %v2302_v9 = vmul.f32 1.442695, %v2294_v42 }
 0xf10   :  { %v2313_v18 = vsel %vm739_vm1, %v5335_v37, 0.0  ;;  %v2151_v47 = vsel %vm739_vm1, %v5367_v25, -inf }
 0xf11   :  { %3852 = vpow2.f32 %v2302_v9  ;;  %2314 = vadd.xlane.f32.xlu2 %v2313_v18 }
 0xf14   :  { %v2285_v58 = vpop.xlane.xlu0 %2284 }
 0xf15   :  { %v2295_v43 = vsub.f32 %v2267_v39, %v2285_v58  ;;  %v2138_v2 = vpop.f32.mrf.mxu3 }
 0xf16   :  { %v5377_v23 = vadd.f32 %v5295_v31, %v2138_v2 }
 0xf17   :  { %v5339_v56 = vpop.eup %3852  ;;  %v2304_v10 = vmul.f32 1.442695, %v2295_v43 }
 0xf18   :  { %v2316_v59 = vsel %vm739_vm1, %v5339_v56, 0.0  ;;  %v2154_v46 = vsel %vm739_vm1, %v5377_v23, -inf }
 0xf19   :  { %3854 = vpow2.f32 %v2304_v10  ;;  %2317 = vadd.xlane.f32.xlu0 %v2316_v59 }
 0xf1c   :  { %v2288_v61 = vpop.xlane.xlu1 %2287 }
 0xf1d   :  { %v2296_v38 = vsub.f32 %v2270_v14, %v2288_v61  ;;  %v2141_v39 = vpop.f32.mrf.mxu3 }
 0xf1f   :  { %v5343_v17 = vpop.eup %3854  ;;  %v2306_v4 = vmul.f32 1.442695, %v2296_v38 }
 0xf20   :  { %v2319_v29 = vsel %vm739_vm1, %v5343_v17, 0.0 }
 0xf21   :  { %2320 = vadd.xlane.f32.xlu1 %v2319_v29 }
 0xf24   :  { %v2291_v34 = vpop.xlane.xlu2 %2290 }
 0xf25   :  { %v2297_v16 = vsub.f32 %v2272_v53, %v2291_v34  ;;  %v2143_v14 = vpop.f32.mrf.mxu3 }
 0xf26   :  { %v5374_v19 = vadd.f32 %v5309_v28, %v2143_v14 }
 0xf27   :  { %v2308_v30 = vmul.f32 1.442695, %v2297_v16  ;;  %v2434_v40 = vpop.permute.xlu0 %2433 }
 0xf28   :  { %v2160_v53 = vsel %vm739_vm1, %v5374_v19, -inf  ;;  %v2449_v29 = vsel %vm696_vm15, %v2434_v40, 0 }
 0xf29   :  { %3856 = vpow2.f32 %v2308_v30  ;;  %2435 = vrot.lane.b32.xlu2 %v5225_v15, %s4038_s14  ;;  %v5402_v30 = vadd.f32 %v5302_v57, %v2141_v39 }
 0xf2a   :  { %3858 = vpow2.f32 %v2306_v4 }
 0xf2d   :  { %v2146_v6 = vpop.f32.mrf.mxu3 }
 0xf2e   :  { %v5386_v12 = vadd.f32 %v5316_v32, %v2146_v6 }
 0xf2f   :  { %v5349_v5 = vpop.eup %3856 }
 0xf30   :  { %v2325_v60 = vsel %vm739_vm1, %v5349_v5, 0.0  ;;  %v5362_v20 = vpop.eup %3858  ;;  %v2163_v52 = vsel %vm739_vm1, %v5386_v12, -inf }
 0xf31   :  { %2326 = vadd.xlane.f32.xlu0 %v2325_v60  ;;  %v2322_v51 = vsel %vm739_vm1, %v5362_v20, 0.0  ;;  %v2157_v60 = vsel %vm739_vm1, %v5402_v30, -inf }
 0xf34   :  { %v2601_v41 = vpop.permute.xlu1 %2600 }
 0xf35   :  { %v2617_v13 = vsel %vm696_vm15, %v2601_v41, 0  ;;  %v2148_v41 = vpop.f32.mrf.mxu3 }
 0xf36   :  { %2628 = vmatpush.bf16.xpose.msrb.mxu2 %v2617_v13 }
 0xf3a   :  { %2427 = vrot.lane.b32.xlu1 %v5221_v45, %s4040_s18 }
 0xf42   :  { %2594 = vrot.lane.b32.xlu1 %v5225_v15, %s4039_s17 }
 0xf45   :  { %2592 = vrot.lane.b32.xlu0 %v5221_v45, %s4039_s17 }
 0xf4d   :  { %2431 = vrot.lane.b32.xlu0 %v5231_v24, %s4040_s18 }
 0xf52   :  { %2323 = vadd.xlane.f32.xlu2 %v2322_v51 }
 0xf6a   :  { %2598 = vrot.lane.b32.xlu2 %v5221_v45, %s4037_s13 }
 0xf6c   :  { %2152 = vmax.xlane.f32.xlu1 %v2151_v47 }
 0xf72   :  { %2429 = vrot.lane.b32.xlu2 %v5225_v15, %s4040_s18 }
 0xf74   :  { %2161 = vmax.xlane.f32.xlu1 %v2160_v53 }
 0xf77   :  { %2155 = vmax.xlane.f32.xlu0 %v2154_v46 }
 0xf7a   :  { %2596 = vrot.lane.b32.xlu2 %v5231_v24, %s4039_s17 }
 0xf7c   :  { %v2312_v62 = vpop.xlane.xlu2 %2311 }
 0xf7d   :  { %3860 = vrcp.f32 %v2312_v62 }
 0xf7f   :  { %2164 = vmax.xlane.f32.xlu0 %v2163_v52 }
 0xf83   :  { %v3861_v63 = vpop.eup %3860 }
 0xf84   :  { %v2315_v44 = vpop.xlane.xlu2 %2314  ;;  %v2334_v42 = vmul.f32 %v3861_v63, %v5331_v33 }
 0xf85   :  { %3862 = vrcp.f32 %v2315_v44 }
 0xf8b   :  { %v3863_v7 = vpop.eup %3862 }
 0xf8c   :  { %v2335_v9 = vmul.f32 %v3863_v7, %v5335_v37  ;;  %v2436_v18 = vpop.permute.xlu2 %2435  ;;  %v2318_v10 = vpop.xlane.xlu0 %2317 }
 0xf8d   :  { %v2452_v58 = vsel %vm696_vm15, %v2436_v18, 0  ;;  %3864 = vrcp.f32 %v2318_v10 }
 0xf8e   :  { %v2340_v43 = vpack.c.bf16 %v2335_v9, %v2334_v42  ;;  %2463 = vmatpush.bf16.xpose.msrb.mxu3 %v2452_v58 }
 0xf90   :  { %3579 = vmatmul.msk.bf16.vlgmr.msra.gmra.mxu2 %vm739_vm1, %v2340_v43 }
 0xf93   :  { %v3865_v34 = vpop.eup %3864 }
 0xf94   :  { %v2321_v59 = vpop.xlane.xlu1 %2320  ;;  %v2336_v37 = vmul.f32 %v3865_v34, %v5339_v56 }
 0xf95   :  { %3866 = vrcp.f32 %v2321_v59 }
 0xf96   :  { %2464 = vmatpush.bf16.xpose.msrb.mxu3 %v2449_v29 }
 0xf9b   :  { %v3867_v33 = vpop.eup %3866 }
 0xf9c   :  { %v2337_v16 = vmul.f32 %v3867_v33, %v5343_v17 }
 0xf9e   :  { %2940 = vmatpush.bf16.msra.mxu3 %v4948_v21  ;;  %v2341_v61 = vpack.c.bf16 %v2337_v16, %v2336_v37  ;;  %v2149_v21 = vadd.f32 %v5323_v0, %v2148_v41 }
 0xfa0   :  { %3580 = vmatmul.msk.bf16.gmra.mxu2 %vm739_vm1, %v2341_v61  ;;  %v2166_v13 = vsel %vm739_vm1, %v2149_v21, -inf }
 0xfa2   :  { %2941 = vmatpush.bf16.msra.mxu3 %v4958_v55 }
 0xfa3   :  { %2158 = vmax.xlane.f32.xlu2 %v2157_v60 }
 0xfa4   :  { %v2327_v56 = vpop.xlane.xlu0 %2326 }
 0xfa5   :  { %3868 = vrcp.f32 %v2327_v56 }
 0xfab   :  { %2167 = vmax.xlane.f32.xlu2 %v2166_v13  ;;  %v3869_v38 = vpop.eup %3868 }
 0xfac   :  { %v2428_v55 = vpop.permute.xlu1 %2427  ;;  %v2339_v26 = vmul.f32 %v3869_v38, %v5349_v5 }
 0xfad   :  { %3585 = vmatmul.msk.bf16.vlgmr.msrb.gmra.mxu3 %vm696_vm15, %v2428_v55 }
 0xfb4   :  { %v2595_v62 = vpop.permute.xlu1 %2594 }
 0xfb7   :  { %v2593_v53 = vpop.permute.xlu0 %2592 }
 0xfbf   :  { %v2432_v46 = vpop.permute.xlu0 %2431 }
 0xfc5   :  { %v2324_v17 = vpop.xlane.xlu2 %2323 }
 0xfc6   :  { %3870 = vrcp.f32 %v2324_v17 }
 0xfcc   :  { %v3871_v4 = vpop.eup %3870 }
 0xfcd   :  { %v2338_v51 = vmul.f32 %v3871_v4, %v5362_v20  ;;  %v2599_v2 = vpop.permute.xlu2 %2598 }
 0xfce   :  { %v2614_v39 = vsel %vm696_vm15, %v2599_v2, 0 }
 0xfcf   :  { %2629 = vmatpush.bf16.xpose.msrb.mxu2 %v2614_v39  ;;  %v2342_v47 = vpack.c.bf16 %v2339_v26, %v2338_v51 }
 0xfd1   :  { %3581 = vmatmul.msk.bf16.gmra.mxu2 %vm739_vm1, %v2342_v47 }
 0xfd5   :  { %v2430_v14 = vpop.permute.xlu2 %2429 }
 0xfd6   :  { %3586 = vmatmul.msk.bf16.gmra.mxu3 %vm696_vm15, %v2430_v14 }
 0xfdd   :  { %v2597_v40 = vpop.permute.xlu2 %2596 }
 0xfdf   :  { %v2153_v63 = vpop.xlane.xlu1 %2152 }
 0xfe0   :  { %v2169_v29 = vsub.f32 %v5367_v25, %v2153_v63 }
 0xfe1   :  { %3591 = vmatmul.msk.bf16.vlgmr.msrb.gmra.mxu2 %vm696_vm15, %v2593_v53 }
 0xfe6   :  { %3587 = vmatmul.msk.bf16.gmra.mxu3 %vm696_vm15, %v2432_v46 }
 0xfea   :  { %v2156_v6 = vpop.xlane.xlu0 %2155 }
 0xfeb   :  { %v2170_v5 = vsub.f32 %v5377_v23, %v2156_v6  ;;  %v2162_v23 = vpop.xlane.xlu1 %2161 }
 0xfec   :  { %v2172_v42 = vsub.f32 %v5374_v19, %v2162_v23  ;;  %v2175_v19 = vmul.f32 1.442695, %v2169_v29 }
 0xfed   :  { %v2177_v20 = vmul.f32 1.442695, %v2170_v5 }
 0xfee   :  { %v2181_v9 = vmul.f32 1.442695, %v2172_v42 }
 0xfef   :  { %3872 = vpow2.f32 %v2177_v20 }
 0xff0   :  { %3874 = vpow2.f32 %v2181_v9 }
 0xff1   :  { %3592 = vmatmul.msk.bf16.gmra.mxu2 %vm696_vm15, %v2595_v62 }
 0xff2   :  { %v2165_v62 = vpop.xlane.xlu0 %2164 }
 0xff5   :  { %v5419_v52 = vpop.eup %3872 }
 0xff6   :  { %v2190_v44 = vsel %vm739_vm1, %v5419_v52, 0.0  ;;  %v5435_v33 = vpop.eup %3874 }
 0xff7   :  { %2191 = vadd.xlane.f32.xlu2 %v2190_v44  ;;  %v2196_v37 = vsel %vm739_vm1, %v5435_v33, 0.0 }
0x1001   :  { %3593 = vmatmul.msk.bf16.gmra.mxu2 %vm696_vm15, %v2597_v40  ;;  %v2173_v40 = vsub.f32 %v5386_v12, %v2165_v62 }
0x1003   :  { %v2183_v42 = vmul.f32 1.442695, %v2173_v40 }
0x100f   :  { %2385 = vrot.lane.b32.xlu2 %v5221_v45, %s4041_s19 }
0x1013   :  { %v5427_v58 = vpop.f32.mrf.mxu2 }
0x1016   :  { %v2159_v7 = vpop.xlane.xlu2 %2158 }
0x101b   :  { %v5439_v16 = vpop.f32.mrf.mxu2 }
0x101e   :  { %v2168_v18 = vpop.xlane.xlu2 %2167 }
0x101f   :  { %v2174_v43 = vsub.f32 %v2149_v21, %v2168_v18 }
0x1021   :  { %v2185_v34 = vmul.f32 1.442695, %v2174_v43 }
0x1023   :  { %3876 = vpow2.f32 %v2185_v34  ;;  %v5452_v55 = vpop.f32.mrf.mxu2 }
0x1024   :  { %3878 = vpow2.f32 %v2175_v19 }
0x1029   :  { %v5446_v41 = vpop.eup %3876 }
0x102a   :  { %v2202_v21 = vsel %vm739_vm1, %v5446_v41, 0.0  ;;  %v5450_v13 = vpop.eup %3878 }
0x102b   :  { %v2187_v56 = vsel %vm739_vm1, %v5450_v13, 0.0  ;;  %v5456_v17 = vpop.f32.mrf.mxu2 }
0x1030   :  { %v2466_v10 = vpop.f32.mrf.mxu3 }
0x1031   :  { %v5430_v59 = vadd.f32 %v5288_v11, %v2466_v10 }
0x1033   :  { %v2481_v45 = vsel %vm739_vm1, %v5430_v59, -inf }
0x1034   :  { %2482 = vmax.xlane.f32.xlu1 %v2481_v45 }
0x1038   :  { %v2468_v61 = vpop.f32.mrf.mxu3  ;;  %2197 = vadd.xlane.f32.xlu2 %v2196_v37 }
0x1039   :  { %v5442_v60 = vadd.f32 %v5295_v31, %v2468_v61 }
0x103b   :  { %v2484_v25 = vsel %vm739_vm1, %v5442_v60, -inf }
0x103c   :  { %2485 = vmax.xlane.f32.xlu0 %v2484_v25 }
0x1040   :  { %2203 = vadd.xlane.f32.xlu2 %v2202_v21 }
0x1044   :  { %2188 = vadd.xlane.f32.xlu0 %v2187_v56 }
0x104d   :  { %2389 = vrot.lane.b32.xlu1 %v5231_v24, %s4041_s19  ;;  %v2171_v24 = vsub.f32 %v5402_v30, %v2159_v7 }
0x104f   :  { %v2179_v53 = vmul.f32 1.442695, %v2171_v24 }
0x1051   :  { %3880 = vpow2.f32 %v2179_v53 }
0x1052   :  { %3882 = vpow2.f32 %v2183_v42 }
0x1054   :  { %v5460_v38 = vpop.f32.mrf.mxu2 }
0x1057   :  { %v5482_v30 = vpop.eup %3880 }
0x1058   :  { %2387 = vrot.lane.b32.xlu0 %v5225_v15, %s4041_s19  ;;  %v2193_v7 = vsel %vm739_vm1, %v5482_v30, 0.0  ;;  %v5507_v45 = vpop.eup %3882 }
0x1059   :  { %v2471_v26 = vpop.f32.mrf.mxu3  ;;  %v2199_v19 = vsel %vm739_vm1, %v5507_v45, 0.0 }
0x105a   :  { %v5486_v63 = vadd.f32 %v5302_v57, %v2471_v26 }
0x105c   :  { %v5464_v4 = vpop.f32.mrf.mxu2  ;;  %v2487_v9 = vsel %vm739_vm1, %v5486_v63, -inf }
0x1061   :  { %v2473_v47 = vpop.f32.mrf.mxu3 }
0x1062   :  { %v5473_v46 = vadd.f32 %v5309_v28, %v2473_v47 }
0x1064   :  { %v2631_v51 = vpop.f32.mrf.mxu2 }
0x1065   :  { %v5467_v2 = vadd.f32 %v5288_v11, %v2631_v51  ;;  %v2490_v11 = vsel %vm739_vm1, %v5473_v46, -inf }
0x1067   :  { %v2646_v39 = vsel %vm739_vm1, %v5467_v2, -inf }
0x1068   :  { %2647 = vmax.xlane.f32.xlu2 %v2646_v39 }
0x1069   :  { %v2476_v6 = vpop.f32.mrf.mxu3 }
0x106a   :  { %v5496_v12 = vadd.f32 %v5316_v32, %v2476_v6  ;;  %v2192_v39 = vpop.xlane.xlu2 %2191 }
0x106c   :  { %v2633_v14 = vpop.f32.mrf.mxu2  ;;  %v2493_v34 = vsel %vm739_vm1, %v5496_v12, -inf }
0x1071   :  { %v2478_v23 = vpop.f32.mrf.mxu3 }
0x1072   :  { %v5493_v18 = vadd.f32 %v5323_v0, %v2478_v23 }
0x1074   :  { %v2636_v15 = vpop.f32.mrf.mxu2  ;;  %v2496_v10 = vsel %vm739_vm1, %v5493_v18, -inf }
0x1075   :  { %v5476_v5 = vadd.f32 %v5302_v57, %v2636_v15  ;;  %v5527_v15 = vadd.f32 %v5295_v31, %v2633_v14 }
0x1077   :  { %2491 = vmax.xlane.f32.xlu1 %v2490_v11  ;;  %v2652_v20 = vsel %vm739_vm1, %v5476_v5, -inf }
0x1078   :  { %2653 = vmax.xlane.f32.xlu2 %v2652_v20  ;;  %v2386_v20 = vpop.permute.xlu2 %2385 }
0x107c   :  { %v2638_v44 = vpop.f32.mrf.mxu2 }
0x107d   :  { %v5518_v47 = vadd.f32 %v5309_v28, %v2638_v44  ;;  %v2649_v44 = vsel %vm739_vm1, %v5527_v15, -inf }
0x107f   :  { %2194 = vadd.xlane.f32.xlu1 %v2193_v7 }
0x1082   :  { %2488 = vmax.xlane.f32.xlu0 %v2487_v9 }
0x1084   :  { %v2641_v43 = vpop.f32.mrf.mxu2 }
0x1085   :  { %v5499_v57 = vadd.f32 %v5316_v32, %v2641_v43 }
0x1087   :  { %2497 = vmax.xlane.f32.xlu1 %v2496_v10  ;;  %v2658_v29 = vsel %vm739_vm1, %v5499_v57, -inf }
0x1088   :  { %2659 = vmax.xlane.f32.xlu2 %v2658_v29 }
0x108a   :  { %2494 = vmax.xlane.f32.xlu0 %v2493_v34 }
0x108c   :  { %v2643_v53 = vpop.f32.mrf.mxu2 }
0x108d   :  { %v5530_v6 = vadd.f32 %v5323_v0, %v2643_v53 }
0x108f   :  { %2200 = vadd.xlane.f32.xlu1 %v2199_v19  ;;  %v2661_v62 = vsel %vm739_vm1, %v5530_v6, -inf }
0x10a7   :  { %v2483_v32 = vpop.xlane.xlu1 %2482 }
0x10a8   :  { %v2499_v37 = vsub.f32 %v5430_v59, %v2483_v32  ;;  %v2655_v59 = vsel %vm739_vm1, %v5518_v47, -inf }
0x10aa   :  { %v2505_v61 = vmul.f32 1.442695, %v2499_v37 }
0x10ab   :  { %v2198_v31 = vpop.xlane.xlu2 %2197 }
0x10ac   :  { %3884 = vpow2.f32 %v2505_v61 }
0x10af   :  { %v2486_v25 = vpop.xlane.xlu0 %2485 }
0x10b0   :  { %v2500_v21 = vsub.f32 %v5442_v60, %v2486_v25 }
0x10b2   :  { %v5513_v56 = vpop.eup %3884  ;;  %v2507_v26 = vmul.f32 1.442695, %v2500_v21 }
0x10b3   :  { %v2517_v51 = vsel %vm739_vm1, %v5513_v56, 0.0  ;;  %v2204_v9 = vpop.xlane.xlu2 %2203 }
0x10b4   :  { %3886 = vpow2.f32 %v2507_v26  ;;  %2518 = vadd.xlane.f32.xlu0 %v2517_v51 }
0x10b7   :  { %v2189_v28 = vpop.xlane.xlu0 %2188 }
0x10b8   :  { %3888 = vrcp.f32 %v2189_v28 }
0x10b9   :  { %3890 = vrcp.f32 %v2192_v39 }
0x10ba   :  { %v5520_v24 = vpop.eup %3886 }
0x10bb   :  { %v2520_v60 = vsel %vm739_vm1, %v5520_v24, 0.0 }
0x10bc   :  { %2656 = vmax.xlane.f32.xlu0 %v2655_v59  ;;  %2521 = vadd.xlane.f32.xlu1 %v2520_v60 }
0x10be   :  { %v3889_v40 = vpop.eup %3888 }
0x10bf   :  { %v2390_v11 = vpop.permute.xlu1 %2389  ;;  %v3891_v7 = vpop.eup %3890  ;;  %v2211_v0 = vmul.f32 %v3889_v40, %v5450_v13 }
0x10c0   :  { %2408 = vmatpush.bf16.msrb.mxu0 %v2390_v11  ;;  %v2212_v23 = vmul.f32 %v3891_v7, %v5419_v52 }
0x10c2   :  { %v2217_v42 = vpack.c.bf16 %v2212_v23, %v2211_v0 }
0x10c4   :  { %2662 = vmax.xlane.f32.xlu0 %v2661_v62  ;;  %2650 = vmax.xlane.f32.xlu1 %v2649_v44 }
0x10ca   :  { %v2388_v14 = vpop.permute.xlu0 %2387 }
0x10cb   :  { %2409 = vmatpush.bf16.msrb.mxu0 %v2388_v14 }
0x10cf   :  { %2410 = vmatpush.bf16.msrb.mxu0 %v2386_v20 }
0x10d2   :  { %3582 = vmatmul.msk.bf16.vlgmr.msrb.gmra.mxu0 %vm739_vm1, %v2217_v42 }
0x10db   :  { %v2648_v43 = vpop.xlane.xlu2 %2647 }
0x10dc   :  { %v2664_v10 = vsub.f32 %v5467_v2, %v2648_v43 }
0x10dd   :  { %2722 = vrot.lane.b32.xlu1 %v5258_v3, %s4032_s20 }
0x10de   :  { %v2670_v29 = vmul.f32 1.442695, %v2664_v10 }
0x10e0   :  { %3892 = vpow2.f32 %v2670_v29 }
0x10e1   :  { %3894 = vrcp.f32 %v2198_v31 }
0x10e6   :  { %v5542_v34 = vpop.eup %3892 }
0x10e7   :  { %v2682_v13 = vsel %vm739_vm1, %v5542_v34, 0.0  ;;  %v3895_v2 = vpop.eup %3894 }
0x10e8   :  { %2683 = vadd.xlane.f32.xlu2 %v2682_v13  ;;  %v2214_v3 = vmul.f32 %v3895_v2, %v5435_v33 }
0x10ea   :  { %v5546_v52 = vpop.xlane.xlu1 %2491 }
0x10eb   :  { %v2654_v28 = vpop.xlane.xlu2 %2653 }
0x10f2   :  { %v2195_v19 = vpop.xlane.xlu1 %2194 }
0x10f3   :  { %3896 = vrcp.f32 %v2195_v19 }
0x10f5   :  { %v2489_v32 = vpop.xlane.xlu0 %2488 }
0x10f6   :  { %v2501_v37 = vsub.f32 %v5486_v63, %v2489_v32 }
0x10f8   :  { %v2509_v25 = vmul.f32 1.442695, %v2501_v37 }
0x10f9   :  { %v3897_v61 = vpop.eup %3896 }
0x10fa   :  { %v2213_v21 = vmul.f32 %v3897_v61, %v5482_v30  ;;  %v2498_v26 = vpop.xlane.xlu1 %2497  ;;  %3898 = vpow2.f32 %v2509_v25 }
0x10fb   :  { %3900 = vrcp.f32 %v2204_v9  ;;  %v2504_v62 = vsub.f32 %v5493_v18, %v2498_v26  ;;  %v2660_v7 = vpop.xlane.xlu2 %2659 }
0x10fc   :  { %v2218_v51 = vpack.c.bf16 %v2214_v3, %v2213_v21  ;;  %v2668_v42 = vsub.f32 %v5499_v57, %v2660_v7 }
0x10fd   :  { %v2495_v44 = vpop.xlane.xlu0 %2494  ;;  %v2515_v40 = vmul.f32 1.442695, %v2504_v62 }
0x10fe   :  { %3583 = vmatmul.msk.bf16.gmra.mxu0 %vm739_vm1, %v2218_v51  ;;  %v2678_v29 = vmul.f32 1.442695, %v2668_v42  ;;  %v2502_v51 = vsub.f32 %v5473_v46, %v5546_v52 }
0x1100   :  { %2720 = vrot.lane.b32.xlu2 %v5263_v27, %s4032_s20  ;;  %v5554_v59 = vpop.eup %3898  ;;  %v2666_v27 = vsub.f32 %v5476_v5, %v2654_v28 }
0x1101   :  { %v2523_v63 = vsel %vm739_vm1, %v5554_v59, 0.0  ;;  %v3901_v60 = vpop.eup %3900 }
0x1102   :  { %v2201_v39 = vpop.xlane.xlu1 %2200  ;;  %v2216_v30 = vmul.f32 %v3901_v60, %v5446_v41  ;;  %v2674_v20 = vmul.f32 1.442695, %v2666_v27 }
0x1103   :  { %3902 = vrcp.f32 %v2201_v39  ;;  %v2511_v39 = vmul.f32 1.442695, %v2502_v51 }
0x1104   :  { %3904 = vpow2.f32 %v2674_v20 }
0x1105   :  { %3906 = vpow2.f32 %v2515_v40 }
0x1107   :  { %2524 = vadd.xlane.f32.xlu1 %v2523_v63  ;;  %v2503_v63 = vsub.f32 %v5496_v12, %v2495_v44 }
0x1109   :  { %v3903_v33 = vpop.eup %3902  ;;  %v2513_v60 = vmul.f32 1.442695, %v2503_v63 }
0x110a   :  { %v2215_v53 = vmul.f32 %v3903_v33, %v5507_v45  ;;  %v5563_v31 = vpop.eup %3904 }
0x110b   :  { %v2688_v41 = vsel %vm739_vm1, %v5563_v31, 0.0  ;;  %v5567_v45 = vpop.eup %3906 }
0x110c   :  { %v2219_v11 = vpack.c.bf16 %v2216_v30, %v2215_v53  ;;  %v2532_v18 = vsel %vm739_vm1, %v5567_v45, 0.0 }
0x110e   :  { %3584 = vmatmul.msk.bf16.gmra.mxu0 %vm739_vm1, %v2219_v11 }
0x1127   :  { %v2519_v14 = vpop.xlane.xlu0 %2518 }
0x1128   :  { %3908 = vrcp.f32 %v2519_v14 }
0x1129   :  { %2689 = vadd.xlane.f32.xlu2 %v2688_v41 }
0x112e   :  { %v3909_v43 = vpop.eup %3908 }
0x112f   :  { %v2522_v0 = vpop.xlane.xlu1 %2521  ;;  %v2657_v5 = vpop.xlane.xlu0 %2656  ;;  %v2541_v13 = vmul.f32 %v3909_v43, %v5513_v56 }
0x1130   :  { %3910 = vrcp.f32 %v2522_v0  ;;  %v2667_v23 = vsub.f32 %v5518_v47, %v2657_v5 }
0x1131   :  { %2533 = vadd.xlane.f32.xlu2 %v2532_v18 }
0x1132   :  { %v2676_v9 = vmul.f32 1.442695, %v2667_v23 }
0x1134   :  { %3912 = vpow2.f32 %v2676_v9 }
0x1135   :  { %3914 = vpow2.f32 %v2678_v29 }
0x1136   :  { %v3911_v10 = vpop.eup %3910 }
0x1137   :  { %v2542_v19 = vmul.f32 %v3911_v10, %v5520_v24  ;;  %v2651_v32 = vpop.xlane.xlu1 %2650  ;;  %v2663_v33 = vpop.xlane.xlu0 %2662 }
0x1138   :  { %v2665_v37 = vsub.f32 %v5527_v15, %v2651_v32  ;;  %v2669_v53 = vsub.f32 %v5530_v6, %v2663_v33 }
0x1139   :  { %v2547_v2 = vpack.c.bf16 %v2542_v19, %v2541_v13 }
0x113a   :  { %v3913_v47 = vpop.eup %3912  ;;  %v2672_v61 = vmul.f32 1.442695, %v2665_v37 }
0x113b   :  { %3588 = vmatmul.msk.bf16.vlgmr.msrb.gmra.mxu1 %vm739_vm1, %v2547_v2  ;;  %v2691_v57 = vsel %vm739_vm1, %v3913_v47, 0.0  ;;  %v5578_v25 = vpop.eup %3914 }
0x113c   :  { %3916 = vpow2.f32 %v2672_v61  ;;  %2692 = vadd.xlane.f32.xlu1 %v2691_v57  ;;  %v2694_v24 = vsel %vm739_vm1, %v5578_v25, 0.0 }
0x113d   :  { %3918 = vpow2.f32 %v2511_v39 }
0x113e   :  { %3920 = vpow2.f32 %v2513_v60 }
0x1142   :  { %v3917_v3 = vpop.eup %3916 }
0x1143   :  { %v2685_v56 = vsel %vm739_vm1, %v3917_v3, 0.0  ;;  %v3919_v30 = vpop.eup %3918 }
0x1144   :  { %2686 = vadd.xlane.f32.xlu0 %v2685_v56  ;;  %2695 = vadd.xlane.f32.xlu1 %v2694_v24  ;;  %v2526_v11 = vsel %vm739_vm1, %v3919_v30, 0.0  ;;  %v3921_v28 = vpop.eup %3920 }
0x1145   :  { %v2529_v27 = vsel %vm739_vm1, %v3921_v28, 0.0 }
0x114f   :  { %v2723_v15 = vpop.permute.xlu1 %2722  ;;  %v2412_v51 = vpop.f32.mrf.mxu0 }
0x1150   :  { %2741 = vmatpush.bf16.msra.mxu0 %v2723_v15 }
0x1157   :  { %v2414_v39 = vpop.f32.mrf.mxu0 }
0x1158   :  { %2718 = vrot.lane.b32.xlu0 %v5267_v8, %s4032_s20  ;;  %v2680_v8 = vmul.f32 1.442695, %v2669_v53  ;;  %s4045_s20 = smov 8  }
0x115a   :  { %3922 = vpow2.f32 %v2680_v8 }
0x115b   :  { %v2684_v21 = vpop.xlane.xlu2 %2683 }
0x1160   :  { %v3923_v46 = vpop.eup %3922 }
0x1161   :  { %v2697_v52 = vsel %vm739_vm1, %v3923_v46, 0.0 }
0x1163   :  { %v2721_v26 = vpop.permute.xlu2 %2720 }
0x1164   :  { %2742 = vmatpush.bf16.msra.mxu0 %v2721_v26 }
0x117a   :  { %v2525_v20 = vpop.xlane.xlu1 %2524 }
0x117b   :  { %v2417_v63 = vpop.f32.mrf.mxu0 }
0x1182   :  { %2527 = vadd.xlane.f32.xlu0 %v2526_v11  ;;  %v2413_v11 = vadd.f32 %v2412_v51, %v5427_v58 }
0x1183   :  { %v2419_v60 = vpop.f32.mrf.mxu0 }
0x118a   :  { %2530 = vadd.xlane.f32.xlu0 %v2529_v27 }
0x118b   :  { %v2422_v33 = vpop.f32.mrf.mxu0 }
0x1192   :  { %2698 = vadd.xlane.f32.xlu0 %v2697_v52  ;;  %v4000_v52 = vld [vmem:[%s5901_s2 + $0x7] ss:$0 sm:$0xff] }
0x119c   :  { %v2690_v0 = vpop.xlane.xlu2 %2689 }
0x11a4   :  { %v2534_v37 = vpop.xlane.xlu2 %2533 }
0x11af   :  { %v2693_v41 = vpop.xlane.xlu1 %2692 }
0x11b7   :  { %v2687_v12 = vpop.xlane.xlu0 %2686  ;;  %v2696_v2 = vpop.xlane.xlu1 %2695 }
0x11b8   :  { %3924 = vrcp.f32 %v2687_v12  ;;  %v2571_v53 = vpop.f32.mrf.mxu1 }
0x11b9   :  { %3926 = vrcp.f32 %v2684_v21  ;;  %v2586_v8 = vadd.f32 %v2571_v53, %v2413_v11 }
0x11ba   :  { %3928 = vrcp.f32 %v2693_v41 }
0x11bb   :  { %3930 = vrcp.f32 %v2690_v0 }
0x11bc   :  { %3932 = vrcp.f32 %v2525_v20 }
0x11be   :  { %v3925_v62 = vpop.eup %3924 }
0x11bf   :  { %v3927_v44 = vpop.eup %3926  ;;  %v2707_v6 = vmul.f32 %v3925_v62, %v3917_v3 }
0x11c0   :  { %v2706_v40 = vmul.f32 %v3927_v44, %v5542_v34  ;;  %v3929_v5 = vpop.eup %3928  ;;  %v2573_v27 = vpop.f32.mrf.mxu1 }
0x11c1   :  { %v3931_v23 = vpop.eup %3930  ;;  %v2709_v18 = vmul.f32 %v3929_v5, %v3913_v47 }
0x11c2   :  { %v2712_v7 = vpack.c.bf16 %v2707_v6, %v2706_v40  ;;  %v2708_v42 = vmul.f32 %v3931_v23, %v5563_v31  ;;  %v3933_v34 = vpop.eup %3932  ;;  %v2420_v23 = vadd.f32 %v2419_v60, %v5456_v17 }
0x11c3   :  { %v2543_v29 = vmul.f32 %v3933_v34, %v5554_v59 }
0x11c4   :  { %v2713_v9 = vpack.c.bf16 %v2709_v18, %v2708_v42 }
0x11ca   :  { %v2719_v14 = vpop.permute.xlu0 %2718 }
0x11cb   :  { %2743 = vmatpush.bf16.msra.mxu0 %v2719_v14  ;;  %v2418_v14 = vadd.f32 %v2417_v63, %v5452_v55  ;;  %v2423_v55 = vadd.f32 %v2422_v33, %v5460_v38 }
0x11ce   :  { %3594 = vmatmul.msk.bf16.vlgmr.msra.gmra.mxu0 %vm739_vm1, %v2712_v7 }
0x11de   :  { %3595 = vmatmul.msk.bf16.gmra.mxu0 %vm739_vm1, %v2713_v9 }
0x11f5   :  { %v2528_v43 = vpop.xlane.xlu0 %2527 }
0x11f6   :  { %3934 = vrcp.f32 %v2528_v43 }
0x11fc   :  { %v3935_v10 = vpop.eup %3934 }
0x11fd   :  { %v2544_v13 = vmul.f32 %v3935_v10, %v3919_v30  ;;  %v2531_v19 = vpop.xlane.xlu0 %2530  ;;  %v2424_v30 = vpop.f32.mrf.mxu0 }
0x11fe   :  { %3936 = vrcp.f32 %v2531_v19 }
0x11ff   :  { %v2548_v32 = vpack.c.bf16 %v2544_v13, %v2543_v29  ;;  %3938 = vrcp.f32 %v2534_v37 }
0x1200   :  { %3940 = vrcp.f32 %v2696_v2  ;;  %v2425_v2 = vadd.f32 %v2424_v30, %v5464_v4 }
0x1201   :  { %3589 = vmatmul.msk.bf16.gmra.mxu1 %vm739_vm1, %v2548_v32 }
0x1204   :  { %v3937_v47 = vpop.eup %3936 }
0x1205   :  { %v2699_v31 = vpop.xlane.xlu0 %2698  ;;  %v3939_v61 = vpop.eup %3938  ;;  %v2545_v3 = vmul.f32 %v3937_v47, %v3921_v28 }
0x1206   :  { %3942 = vrcp.f32 %v2699_v31  ;;  %v3941_v57 = vpop.eup %3940  ;;  %v2546_v24 = vmul.f32 %v3939_v61, %v5567_v45 }
0x1207   :  { %v2710_v59 = vmul.f32 %v3941_v57, %v5578_v25 }
0x1208   :  { %v2549_v21 = vpack.c.bf16 %v2546_v24, %v2545_v3 }
0x120c   :  { %v3943_v56 = vpop.eup %3942 }
0x120d   :  { %v2711_v15 = vmul.f32 %v3943_v56, %v3923_v46  ;;  %v2415_v46 = vadd.f32 %v2414_v39, %v5439_v16 }
0x120f   :  { %v2714_v26 = vpack.c.bf16 %v2711_v15, %v2710_v59  ;;  %v2587_v20 = vadd.f32 %v2573_v27, %v2415_v46 }
0x1211   :  { %3590 = vmatmul.msk.bf16.gmra.mxu1 %vm739_vm1, %v2549_v21  ;;  %3596 = vmatmul.msk.bf16.gmra.mxu0 %vm739_vm1, %v2714_v26 }
0x124b   :  { %v2745_v45 = vpop.f32.mrf.mxu0 }
0x124c   :  { %v2760_v28 = vadd.f32 %v2745_v45, %v2586_v8 }
0x124e   :  { %v2766_v25 = vadd.f32 %v2760_v28, %v5120_v22 }
0x1250   :  { %v5608_v12 = vadd.f32 %v4000_v52, %v2766_v25 }
0x1252   :  { %v2778_v62 = vsel %vm250_vm5, %v5608_v12, 0.0 }
0x1253   :  { %2779 = vadd.xlane.f32.xlu2 %v2778_v62  ;;  %v2747_v58 = vpop.f32.mrf.mxu0 }
0x1254   :  { %v2761_v44 = vadd.f32 %v2747_v58, %v2587_v20 }
0x1256   :  { %v2767_v6 = vadd.f32 %v2761_v44, %v5125_v54 }
0x1258   :  { %v5613_v40 = vadd.f32 %v4000_v52, %v2767_v6 }
0x125a   :  { %v2781_v22 = vsel %vm250_vm5, %v5613_v40, 0.0 }
0x125b   :  { %2782 = vadd.xlane.f32.xlu1 %v2781_v22  ;;  %v2750_v16 = vpop.f32.mrf.mxu0 }
0x1263   :  { %v2752_v42 = vpop.f32.mrf.mxu0 }
0x127e   :  { %v2576_v41 = vpop.f32.mrf.mxu1 }
0x127f   :  { %v2588_v7 = vadd.f32 %v2576_v41, %v2418_v14 }
0x1281   :  { %v2762_v0 = vadd.f32 %v2750_v16, %v2588_v7 }
0x1283   :  { %v2768_v5 = vadd.f32 %v2762_v0, %v5130_v49 }
0x1285   :  { %v5620_v18 = vadd.f32 %v4000_v52, %v2768_v5 }
0x1286   :  { %v2578_v54 = vpop.f32.mrf.mxu1 }
0x1287   :  { %v2589_v9 = vadd.f32 %v2578_v54, %v2420_v23  ;;  %v2784_v43 = vsel %vm250_vm5, %v5620_v18, 0.0 }
0x1288   :  { %2785 = vadd.xlane.f32.xlu0 %v2784_v43 }
0x1289   :  { %v2763_v34 = vadd.f32 %v2752_v42, %v2589_v9 }
0x128b   :  { %v2769_v10 = vadd.f32 %v2763_v34, %v5135_v1 }
0x128d   :  { %v5626_v29 = vadd.f32 %v4000_v52, %v2769_v10 }
0x128e   :  { %v2581_v13 = vpop.f32.mrf.mxu1  ;;  %v2755_v49 = vpop.f32.mrf.mxu0 }
0x128f   :  { %v2590_v19 = vadd.f32 %v2581_v13, %v2423_v55  ;;  %v2787_v17 = vsel %vm250_vm5, %v5626_v29, 0.0 }
0x1290   :  { %2788 = vadd.xlane.f32.xlu2 %v2787_v17 }
0x1291   :  { %v2764_v32 = vadd.f32 %v2755_v49, %v2590_v19 }
0x1293   :  { %v2770_v37 = vadd.f32 %v2764_v32, %v5140_v35 }
0x1295   :  { %v5632_v31 = vadd.f32 %v4000_v52, %v2770_v37 }
0x1296   :  { %v2583_v47 = vpop.f32.mrf.mxu1  ;;  %v2757_v61 = vpop.f32.mrf.mxu0 }
0x1297   :  { %v2591_v1 = vadd.f32 %v2583_v47, %v2425_v2  ;;  %v2790_v38 = vsel %vm250_vm5, %v5632_v31, 0.0 }
0x1298   :  { %2791 = vadd.xlane.f32.xlu1 %v2790_v38  ;;  %v5680_v38 = vld [vmem:[%s5901_s2 + $0x8] ss:$0 sm:$0xff] }
0x1299   :  { %v2765_v57 = vadd.f32 %v2757_v61, %v2591_v1 }
0x129b   :  { %v2771_v3 = vadd.f32 %v2765_v57, %v5145_v36 }
0x129d   :  { %v5637_v56 = vadd.f32 %v4000_v52, %v2771_v3 }
0x129f   :  { %v2793_v24 = vsel %vm250_vm5, %v5637_v56, 0.0 }
0x12a0   :  { %2794 = vadd.xlane.f32.xlu0 %v2793_v24  ;;  %v5687_v24 = vld [vmem:[%s5901_s2 + $0x9] ss:$0 sm:$0xff] }
0x12c6   :  { %v2780_v35 = vpop.xlane.xlu2 %2779 }
0x12c7   :  { %v2796_v4 = vmul.f32 %v2780_v35, %v4194_v48 }
0x12c9   :  { %v2802_v59 = vsub.f32 %v5608_v12, %v2796_v4 }
0x12cb   :  { %v2808_v15 = vmul.f32 %v2802_v59, %v2802_v59 }
0x12cd   :  { %v2814_v21 = vsel %vm250_vm5, %v2808_v15, 0.0 }
0x12ce   :  { %v2783_v26 = vpop.xlane.xlu1 %2782  ;;  %2815 = vadd.xlane.f32.xlu2 %v2814_v21 }
0x12cf   :  { %v2797_v51 = vmul.f32 %v2783_v26, %v4194_v48 }
0x12d1   :  { %v2803_v36 = vsub.f32 %v5613_v40, %v2797_v51 }
0x12d3   :  { %v2809_v39 = vmul.f32 %v2803_v36, %v2803_v36 }
0x12d5   :  { %v2817_v63 = vsel %vm250_vm5, %v2809_v39, 0.0 }
0x12d6   :  { %2818 = vadd.xlane.f32.xlu1 %v2817_v63 }
0x12fb   :  { %v2786_v60 = vpop.xlane.xlu0 %2785 }
0x12fc   :  { %v2798_v33 = vmul.f32 %v2786_v60, %v4194_v48 }
0x12fe   :  { %v5649_v30 = vsub.f32 %v5620_v18, %v2798_v33 }
0x1300   :  { %v2810_v53 = vmul.f32 %v5649_v30, %v5649_v30 }
0x1302   :  { %v2820_v11 = vsel %vm250_vm5, %v2810_v53, 0.0 }
0x1303   :  { %v2789_v8 = vpop.xlane.xlu2 %2788  ;;  %2821 = vadd.xlane.f32.xlu0 %v2820_v11 }
0x1304   :  { %v2799_v45 = vmul.f32 %v2789_v8, %v4194_v48 }
0x1306   :  { %v5656_v28 = vsub.f32 %v5626_v29, %v2799_v45 }
0x1308   :  { %v2811_v25 = vmul.f32 %v5656_v28, %v5656_v28 }
0x130a   :  { %v2823_v27 = vsel %vm250_vm5, %v2811_v25, 0.0 }
0x130b   :  { %2824 = vadd.xlane.f32.xlu2 %v2823_v27  ;;  %v2792_v46 = vpop.xlane.xlu1 %2791 }
0x130c   :  { %v2800_v52 = vmul.f32 %v2792_v46, %v4194_v48 }
0x130e   :  { %v5663_v20 = vsub.f32 %v5632_v31, %v2800_v52 }
0x1310   :  { %v2812_v62 = vmul.f32 %v5663_v20, %v5663_v20 }
0x1312   :  { %v2826_v58 = vsel %vm250_vm5, %v2812_v62, 0.0 }
0x1313   :  { %2827 = vadd.xlane.f32.xlu1 %v2826_v58  ;;  %v2795_v44 = vpop.xlane.xlu0 %2794 }
0x1314   :  { %v2801_v6 = vmul.f32 %v2795_v44, %v4194_v48 }
0x1316   :  { %v5670_v22 = vsub.f32 %v5637_v56, %v2801_v6 }
0x1318   :  { %v2813_v16 = vmul.f32 %v5670_v22, %v5670_v22 }
0x131a   :  { %v2829_v14 = vsel %vm250_vm5, %v2813_v16, 0.0 }
0x131b   :  { %2830 = vadd.xlane.f32.xlu0 %v2829_v14 }
0x1341   :  { %v2816_v41 = vpop.xlane.xlu2 %2815 }
0x1342   :  { %v2832_v7 = vmul.f32 %v2816_v41, %v4194_v48 }
0x1344   :  { %v2838_v0 = vadd.f32 1e-05, %v2832_v7 }
0x1346   :  { %3944 = vrsqrt.f32 %v2838_v0  ;;  %vm2850_vm1 = vweird.f32 %v2838_v0 }
0x1349   :  { %v2819_v5 = vpop.xlane.xlu1 %2818 }
0x134a   :  { %v2833_v23 = vmul.f32 %v2819_v5, %v4194_v48 }
0x134c   :  { %v3945_v42 = vpop.eup %3944  ;;  %v2839_v54 = vadd.f32 1e-05, %v2833_v23 }
0x134d   :  { %v2845_v9 = vmul.f32 %v3945_v42, %v2838_v0  ;;  %vm2851_vm15 = vweird.f32 %v3945_v42 }
0x134e   :  { %3946 = vrsqrt.f32 %v2839_v54  ;;  %vm2852_vm9 = vmor %vm2850_vm1, %vm2851_vm15  ;;  %vm2860_vm11 = vweird.f32 %v2839_v54 }
0x134f   :  { %v2846_v43 = vmul.f32 %v3945_v42, %v2845_v9 }
0x1351   :  { %v2847_v34 = vmul.f32 0.5, %v2846_v43 }
0x1353   :  { %v2848_v10 = vsub.f32 1.5, %v2847_v34 }
0x1354   :  { %v3947_v55 = vpop.eup %3946 }
0x1355   :  { %v2849_v13 = vmul.f32 %v3945_v42, %v2848_v10  ;;  %v2855_v49 = vmul.f32 %v3947_v55, %v2839_v54  ;;  %vm2861_vm10 = vweird.f32 %v3947_v55 }
0x1356   :  { %vm2862_vm12 = vmor %vm2860_vm11, %vm2861_vm10 }
0x1357   :  { %v2856_v19 = vmul.f32 %v3947_v55, %v2855_v49  ;;  %v2853_v17 = vsel %vm2852_vm9, %v3945_v42, %v2849_v13 }
0x1358   :  { %v2904_v2 = vmul.f32 %v2853_v17, %v2802_v59 }
0x1359   :  { %v2857_v32 = vmul.f32 0.5, %v2856_v19 }
0x135a   :  { %v2910_v61 = vmul.f32 %v5680_v38, %v2904_v2 }
0x135b   :  { %v2858_v37 = vsub.f32 1.5, %v2857_v32 }
0x135c   :  { %v2916_v35 = vadd.f32 %v5687_v24, %v2910_v61 }
0x135d   :  { %v2859_v47 = vmul.f32 %v3947_v55, %v2858_v37 }
0x135f   :  { %v2863_v1 = vsel %vm2862_vm12, %v3947_v55, %v2859_v47 }
0x1360   :  { %v2905_v57 = vmul.f32 %v2863_v1, %v2803_v36 }
0x1362   :  { %v2911_v3 = vmul.f32 %v5680_v38, %v2905_v57 }
0x1364   :  { %v2917_v4 = vadd.f32 %v5687_v24, %v2911_v3 }
0x1366   :  { %v2922_v59 = vpack.c.bf16 %v2917_v4, %v2916_v35 }
0x1368   :  { %3597 = vmatmul.msk.bf16.vlgmr.msra.gmra.mxu3 %vm250_vm5, %v2922_v59 }
0x1376   :  { %v2822_v15 = vpop.xlane.xlu0 %2821 }
0x1377   :  { %v2834_v21 = vmul.f32 %v2822_v15, %v4194_v48 }
0x1379   :  { %v2840_v26 = vadd.f32 1e-05, %v2834_v21 }
0x137b   :  { %3948 = vrsqrt.f32 %v2840_v26  ;;  %vm2870_vm14 = vweird.f32 %v2840_v26 }
0x137e   :  { %v2825_v51 = vpop.xlane.xlu2 %2824 }
0x137f   :  { %v2835_v36 = vmul.f32 %v2825_v51, %v4194_v48 }
0x1381   :  { %v3949_v39 = vpop.eup %3948  ;;  %v2841_v63 = vadd.f32 1e-05, %v2835_v36 }
0x1382   :  { %v2865_v60 = vmul.f32 %v3949_v39, %v2840_v26  ;;  %vm2871_vm13 = vweird.f32 %v3949_v39 }
0x1383   :  { %3950 = vrsqrt.f32 %v2841_v63  ;;  %vm2872_vm2 = vmor %vm2870_vm14, %vm2871_vm13  ;;  %vm2880_vm4 = vweird.f32 %v2841_v63 }
0x1384   :  { %v2866_v33 = vmul.f32 %v3949_v39, %v2865_v60 }
0x1386   :  { %v2867_v53 = vmul.f32 0.5, %v2866_v33  ;;  %v2828_v11 = vpop.xlane.xlu1 %2827 }
0x1387   :  { %v2836_v8 = vmul.f32 %v2828_v11, %v4194_v48 }
0x1388   :  { %v2868_v45 = vsub.f32 1.5, %v2867_v53 }
0x1389   :  { %v3951_v25 = vpop.eup %3950  ;;  %v2842_v27 = vadd.f32 1e-05, %v2836_v8 }
0x138a   :  { %v2869_v46 = vmul.f32 %v3949_v39, %v2868_v45  ;;  %v2875_v52 = vmul.f32 %v3951_v25, %v2841_v63  ;;  %vm2881_vm3 = vweird.f32 %v3951_v25 }
0x138b   :  { %3952 = vrsqrt.f32 %v2842_v27  ;;  %vm2882_vm6 = vmor %vm2880_vm4, %vm2881_vm3  ;;  %vm2890_vm8 = vweird.f32 %v2842_v27 }
0x138c   :  { %v2876_v62 = vmul.f32 %v3951_v25, %v2875_v52  ;;  %v2873_v58 = vsel %vm2872_vm2, %v3949_v39, %v2869_v46 }
0x138d   :  { %v2906_v7 = vmul.f32 %v2873_v58, %v5649_v30 }
0x138e   :  { %v2877_v44 = vmul.f32 0.5, %v2876_v62  ;;  %v2831_v6 = vpop.xlane.xlu0 %2830 }
0x138f   :  { %v2837_v16 = vmul.f32 %v2831_v6, %v4194_v48  ;;  %v2912_v43 = vmul.f32 %v5680_v38, %v2906_v7 }
0x1390   :  { %v2878_v14 = vsub.f32 1.5, %v2877_v44 }
0x1391   :  { %v3953_v41 = vpop.eup %3952  ;;  %v2843_v0 = vadd.f32 1e-05, %v2837_v16  ;;  %v2918_v49 = vadd.f32 %v5687_v24, %v2912_v43 }
0x1392   :  { %v2879_v5 = vmul.f32 %v3951_v25, %v2878_v14  ;;  %v2885_v23 = vmul.f32 %v3953_v41, %v2842_v27  ;;  %vm2891_vm7 = vweird.f32 %v3953_v41 }
0x1393   :  { %3954 = vrsqrt.f32 %v2843_v0  ;;  %vm2892_vm15 = vmor %vm2890_vm8, %vm2891_vm7  ;;  %vm2900_vm9 = vweird.f32 %v2843_v0 }
0x1394   :  { %v2883_v42 = vsel %vm2882_vm6, %v3951_v25, %v2879_v5  ;;  %v2886_v54 = vmul.f32 %v3953_v41, %v2885_v23 }
0x1395   :  { %v2907_v9 = vmul.f32 %v2883_v42, %v5656_v28 }
0x1396   :  { %v2887_v34 = vmul.f32 0.5, %v2886_v54 }
0x1397   :  { %v2913_v10 = vmul.f32 %v5680_v38, %v2907_v9 }
0x1398   :  { %v2888_v55 = vsub.f32 1.5, %v2887_v34 }
0x1399   :  { %v3955_v13 = vpop.eup %3954  ;;  %v2919_v30 = vadd.f32 %v5687_v24, %v2913_v10 }
0x139a   :  { %v2889_v19 = vmul.f32 %v3953_v41, %v2888_v55  ;;  %v2895_v17 = vmul.f32 %v3955_v13, %v2843_v0  ;;  %vm2901_vm1 = vweird.f32 %v3955_v13 }
0x139b   :  { %v2923_v32 = vpack.c.bf16 %v2919_v30, %v2918_v49  ;;  %vm2902_vm10 = vmor %vm2900_vm9, %vm2901_vm1 }
0x139c   :  { %v2896_v37 = vmul.f32 %v3955_v13, %v2895_v17  ;;  %v2893_v28 = vsel %vm2892_vm15, %v3953_v41, %v2889_v19 }
0x139d   :  { %3598 = vmatmul.msk.bf16.gmra.mxu3 %vm250_vm5, %v2923_v32  ;;  %v2908_v1 = vmul.f32 %v2893_v28, %v5663_v20  ;;  %v5713_v20 = vld [vmem:[%s5901_s2 + $0xa] ss:$0 sm:$0xff] }
0x139e   :  { %v2897_v2 = vmul.f32 0.5, %v2896_v37 }
0x139f   :  { %v2914_v35 = vmul.f32 %v5680_v38, %v2908_v1 }
0x13a0   :  { %v2898_v47 = vsub.f32 1.5, %v2897_v2 }
0x13a1   :  { %v2920_v59 = vadd.f32 %v5687_v24, %v2914_v35 }
0x13a2   :  { %v2899_v61 = vmul.f32 %v3955_v13, %v2898_v47 }
0x13a4   :  { %v2903_v57 = vsel %vm2902_vm10, %v3955_v13, %v2899_v61 }
0x13a5   :  { %v2909_v3 = vmul.f32 %v2903_v57, %v5670_v22 }
0x13a7   :  { %v2915_v4 = vmul.f32 %v5680_v38, %v2909_v3 }
0x13a9   :  { %v2921_v15 = vadd.f32 %v5687_v24, %v2915_v4 }
0x13ab   :  { %v2924_v21 = vpack.c.bf16 %v2921_v15, %v2920_v59 }
0x13ad   :  { %3599 = vmatmul.msk.bf16.gmra.mxu3 %vm250_vm5, %v2924_v21 }
0x13eb   :  { %v2943_v26 = vpop.f32.mrf.mxu3 }
0x13ec   :  { %v5716_v51 = vadd.f32 %v5713_v20, %v2943_v26 }
0x13ee   :  { %v5719_v22 = vmul.f32 0.70710677, %v5716_v51 }
0x13f0   :  { %v2982_v38 = vand.u32 2147483647, %v5719_v22  ;;  %vm2970_vm7 = vcmp.ge.f32.partialorder %v5719_v22, 0.0 }
0x13f2   :  { %v2988_v36 = vmul.f32 0.3275911, %v2982_v38  ;;  %v3144_v7 = vsub.f32 0.0, %v2982_v38 }
0x13f3   :  { %v2945_v39 = vpop.f32.mrf.mxu3 }
0x13f4   :  { %v2994_v24 = vadd.f32 1.0, %v2988_v36  ;;  %v5723_v63 = vadd.f32 %v5713_v20, %v2945_v39  ;;  %v3150_v43 = vmul.f32 %v3144_v7, %v2982_v38 }
0x13f6   :  { %3956 = vrcp.f32 %v2994_v24  ;;  %v5726_v60 = vmul.f32 0.70710677, %v5723_v63  ;;  %v3011_v27 = vand.u32 2147483648, %v2994_v24  ;;  %v3009_v52 = vand.u32 2147483647, %v2994_v24 }
0x13f7   :  { %vm3005_vm12 = vweird.f32 %v2994_v24  ;;  %v3156_v30 = vmul.f32 1.442695, %v3150_v43 }
0x13f8   :  { %v2983_v33 = vand.u32 2147483647, %v5726_v60  ;;  %v3012_v58 = vor.u32 1.1754944e-38, %v3011_v27  ;;  %vm3010_vm14 = vcmp.eq.f32.partialorder %v3009_v52, 8.507059e+37  ;;  %vm2971_vm8 = vcmp.ge.f32.partialorder %v5726_v60, 0.0 }
0x13f9   :  { %v2977_v22 = vsel %vm2971_vm8, 1.0, %v4042_v50 }
0x13fa   :  { %v2989_v53 = vmul.f32 0.3275911, %v2983_v33  ;;  %v3145_v17 = vsub.f32 0.0, %v2983_v33 }
0x13fc   :  { %v3957_v11 = vpop.eup %3956  ;;  %v2995_v45 = vadd.f32 1.0, %v2989_v53  ;;  %v3151_v47 = vmul.f32 %v3145_v17, %v2983_v33  ;;  %v2976_v33 = vsel %vm2970_vm7, 1.0, %v4042_v50 }
0x13fd   :  { %v3001_v8 = vmul.f32 %v3957_v11, %v2994_v24  ;;  %vm3006_vm11 = vweird.f32 %v3957_v11 }
0x13fe   :  { %3958 = vrcp.f32 %v2995_v45  ;;  %vm3007_vm13 = vmor %vm3005_vm12, %vm3006_vm11  ;;  %v3026_v23 = vand.u32 2147483648, %v2995_v45  ;;  %v3024_v54 = vand.u32 2147483647, %v2995_v45  ;;  %vm3020_vm3 = vweird.f32 %v2995_v45 }
0x13ff   :  { %v3002_v25 = vsub.f32 1.0, %v3001_v8  ;;  %3960 = vpow2.f32 %v3156_v30  ;;  %v3158_v35 = vmul.f32 1.442695, %v3151_v47 }
0x1400   :  { %v3027_v55 = vor.u32 1.1754944e-38, %v3026_v23  ;;  %vm3025_vm6 = vcmp.eq.f32.partialorder %v3024_v54, 8.507059e+37 }
0x1401   :  { %v3003_v46 = vmul.f32 %v3957_v11, %v3002_v25  ;;  %3962 = vpow2.f32 %v3158_v35 }
0x1403   :  { %v3004_v62 = vadd.f32 %v3957_v11, %v3003_v46 }
0x1404   :  { %v3959_v44 = vpop.eup %3958 }
0x1405   :  { %v3008_v6 = vsel %vm3007_vm13, %v3957_v11, %v3004_v62  ;;  %v3016_v14 = vmul.f32 %v3959_v44, %v2995_v45  ;;  %vm3021_vm2 = vweird.f32 %v3959_v44  ;;  %v3961_v59 = vpop.eup %3960 }
0x1406   :  { %v3013_v16 = vsel %vm3010_vm14, %v3012_v58, %v3008_v6  ;;  %vm3022_vm4 = vmor %vm3020_vm3, %vm3021_vm2  ;;  %v2959_v6 = vmul.f32 0.5, %v5723_v63 }
0x1407   :  { %v3090_v41 = vmul.f32 1.0614054, %v3013_v16  ;;  %v3017_v0 = vsub.f32 1.0, %v3016_v14  ;;  %v3963_v53 = vpop.eup %3962 }
0x1409   :  { %v3096_v5 = vadd.f32 -1.4531521, %v3090_v41  ;;  %v3018_v42 = vmul.f32 %v3959_v44, %v3017_v0 }
0x140b   :  { %v3102_v9 = vmul.f32 %v3096_v5, %v3013_v16  ;;  %v3019_v34 = vadd.f32 %v3959_v44, %v3018_v42 }
0x140d   :  { %v3108_v10 = vadd.f32 1.4214138, %v3102_v9  ;;  %v3023_v13 = vsel %vm3022_vm4, %v3959_v44, %v3019_v34  ;;  %v2958_v44 = vmul.f32 0.5, %v5716_v51 }
0x140e   :  { %v3028_v19 = vsel %vm3025_vm6, %v3027_v55, %v3023_v13 }
0x140f   :  { %v3114_v49 = vmul.f32 %v3108_v10, %v3013_v16  ;;  %v3091_v32 = vmul.f32 1.0614054, %v3028_v19 }
0x1411   :  { %v3120_v37 = vadd.f32 -0.28449672, %v3114_v49  ;;  %v3097_v28 = vadd.f32 -1.4531521, %v3091_v32 }
0x1413   :  { %v3126_v2 = vmul.f32 %v3120_v37, %v3013_v16  ;;  %v3103_v1 = vmul.f32 %v3097_v28, %v3028_v19 }
0x1415   :  { %v3132_v61 = vadd.f32 0.2548296, %v3126_v2  ;;  %v3109_v57 = vadd.f32 1.4214138, %v3103_v1 }
0x1417   :  { %v3138_v3 = vmul.f32 %v3132_v61, %v3013_v16  ;;  %v3115_v4 = vmul.f32 %v3109_v57, %v3028_v19 }
0x1419   :  { %v3168_v15 = vmul.f32 %v3961_v59, %v3138_v3  ;;  %v3121_v21 = vadd.f32 -0.28449672, %v3115_v4 }
0x141b   :  { %v3127_v26 = vmul.f32 %v3121_v21, %v3028_v19  ;;  %v3174_v38 = vsub.f32 1.0, %v3168_v15 }
0x141d   :  { %v3133_v36 = vadd.f32 0.2548296, %v3127_v26  ;;  %v3180_v8 = vmul.f32 %v3174_v38, %v2976_v33 }
0x141f   :  { %v3139_v39 = vmul.f32 %v3133_v36, %v3028_v19  ;;  %v3186_v52 = vadd.f32 1.0, %v3180_v8 }
0x1420   :  { %v2948_v24 = vpop.f32.mrf.mxu3 }
0x1421   :  { %v5732_v11 = vadd.f32 %v5713_v20, %v2948_v24  ;;  %v3169_v45 = vmul.f32 %v3963_v53, %v3139_v39  ;;  %v3192_v7 = vmul.f32 %v3186_v52, %v2958_v44 }
0x1423   :  { %v5736_v25 = vmul.f32 0.70710677, %v5732_v11  ;;  %v3175_v27 = vsub.f32 1.0, %v3169_v45 }
0x1425   :  { %v2984_v46 = vand.u32 2147483647, %v5736_v25  ;;  %v3181_v62 = vmul.f32 %v3175_v27, %v2977_v22 }
0x1427   :  { %v2990_v58 = vmul.f32 0.3275911, %v2984_v46  ;;  %v3187_v16 = vadd.f32 1.0, %v3181_v62  ;;  %v3146_v4 = vsub.f32 0.0, %v2984_v46 }
0x1428   :  { %v2950_v14 = vpop.f32.mrf.mxu3 }
0x1429   :  { %v2996_v41 = vadd.f32 1.0, %v2990_v58  ;;  %v5743_v60 = vadd.f32 %v5713_v20, %v2950_v14  ;;  %v3193_v0 = vmul.f32 %v3187_v16, %v2959_v6  ;;  %v3152_v24 = vmul.f32 %v3146_v4, %v2984_v46 }
0x142b   :  { %3964 = vrcp.f32 %v2996_v41  ;;  %v3198_v5 = vpack.c.bf16 %v3193_v0, %v3192_v7  ;;  %v5746_v23 = vmul.f32 0.70710677, %v5743_v60  ;;  %v3041_v13 = vand.u32 2147483648, %v2996_v41 }
0x142c   :  { %v3039_v19 = vand.u32 2147483647, %v2996_v41  ;;  %vm3035_vm1 = vweird.f32 %v2996_v41  ;;  %v3160_v6 = vmul.f32 1.442695, %v3152_v24 }
0x142d   :  { %v5749_v42 = vand.u32 2147483647, %v5746_v23  ;;  %3600 = vmatmul.msk.bf16.vlgmr.msra.gmra.mxu1 %vm24_vm0, %v3198_v5  ;;  %v3042_v28 = vor.u32 1.1754944e-38, %v3041_v13 }
0x142e   :  { %vm3040_vm10 = vcmp.eq.f32.partialorder %v3039_v19, 8.507059e+37 }
0x142f   :  { %v2991_v51 = vmul.f32 0.3275911, %v5749_v42  ;;  %v3147_v62 = vsub.f32 0.0, %v5749_v42 }
0x1430   :  { %v2953_v63 = vpop.f32.mrf.mxu3 }
0x1431   :  { %v3965_v54 = vpop.eup %3964  ;;  %v5754_v9 = vadd.f32 %v5713_v20, %v2953_v63  ;;  %v2997_v34 = vadd.f32 1.0, %v2991_v51  ;;  %v3153_v63 = vmul.f32 %v3147_v62, %v5749_v42 }
0x1432   :  { %v3031_v43 = vmul.f32 %v3965_v54, %v2996_v41  ;;  %vm3036_vm15 = vweird.f32 %v3965_v54 }
0x1433   :  { %v5757_v10 = vmul.f32 0.70710677, %v5754_v9  ;;  %3966 = vrcp.f32 %v2997_v34  ;;  %vm3037_vm9 = vmor %vm3035_vm1, %vm3036_vm15  ;;  %v3056_v26 = vand.u32 2147483648, %v2997_v34  ;;  %v3054_v36 = vand.u32 2147483647, %v2997_v34 }
0x1434   :  { %v3032_v55 = vsub.f32 1.0, %v3031_v43  ;;  %vm3050_vm12 = vweird.f32 %v2997_v34  ;;  %vm2972_vm15 = vcmp.ge.f32.partialorder %v5736_v25, 0.0 }
0x1435   :  { %v5760_v49 = vand.u32 2147483647, %v5757_v10  ;;  %v3057_v27 = vor.u32 1.1754944e-38, %v3056_v26  ;;  %vm3055_vm14 = vcmp.eq.f32.partialorder %v3054_v36, 8.507059e+37 }
0x1436   :  { %v3033_v30 = vmul.f32 %v3965_v54, %v3032_v55 }
0x1437   :  { %v2992_v17 = vmul.f32 0.3275911, %v5760_v49  ;;  %v3148_v42 = vsub.f32 0.0, %v5760_v49 }
0x1438   :  { %v3034_v32 = vadd.f32 %v3965_v54, %v3033_v30  ;;  %v2955_v37 = vpop.f32.mrf.mxu3 }
0x1439   :  { %v2998_v2 = vadd.f32 1.0, %v2992_v17  ;;  %v5764_v47 = vadd.f32 %v5713_v20, %v2955_v37  ;;  %v3967_v1 = vpop.eup %3966 }
0x143a   :  { %v3038_v61 = vsel %vm3037_vm9, %v3965_v54, %v3034_v32  ;;  %v3046_v3 = vmul.f32 %v3967_v1, %v2997_v34  ;;  %vm3051_vm11 = vweird.f32 %v3967_v1  ;;  %v3162_v32 = vmul.f32 1.442695, %v3153_v63 }
0x143b   :  { %v3043_v57 = vsel %vm3040_vm10, %v3042_v28, %v3038_v61  ;;  %3968 = vrcp.f32 %v2998_v2  ;;  %v5767_v15 = vmul.f32 0.70710677, %v5764_v47  ;;  %vm3052_vm13 = vmor %vm3050_vm12, %vm3051_vm11  ;;  %v3071_v46 = vand.u32 2147483648, %v2998_v2 }
0x143c   :  { %v3092_v35 = vmul.f32 1.0614054, %v3043_v57  ;;  %v3047_v59 = vsub.f32 1.0, %v3046_v3  ;;  %v3069_v5 = vand.u32 2147483647, %v2998_v2  ;;  %vm3065_vm3 = vweird.f32 %v2998_v2 }
0x143d   :  { %v5770_v20 = vand.u32 2147483647, %v5767_v15  ;;  %v3072_v55 = vor.u32 1.1754944e-38, %v3071_v46  ;;  %vm2973_vm10 = vcmp.ge.f32.partialorder %v5746_v23, 0.0  ;;  %vm2974_vm11 = vcmp.ge.f32.partialorder %v5757_v10, 0.0 }
0x143e   :  { %v3098_v21 = vadd.f32 -1.4531521, %v3092_v35  ;;  %v3048_v38 = vmul.f32 %v3967_v1, %v3047_v59  ;;  %vm3070_vm6 = vcmp.eq.f32.partialorder %v3069_v5, 8.507059e+37  ;;  %vm2975_vm12 = vcmp.ge.f32.partialorder %v5767_v15, 0.0  ;;  %v4004_v15 = vld [vmem:[%s5901_s2 + $0xb] ss:$0 sm:$0xff] }
0x143f   :  { %v2993_v8 = vmul.f32 0.3275911, %v5770_v20 }
0x1440   :  { %v3104_v39 = vmul.f32 %v3098_v21, %v3043_v57  ;;  %v3049_v33 = vadd.f32 %v3967_v1, %v3048_v38 }
0x1441   :  { %v3969_v53 = vpop.eup %3968  ;;  %v2999_v58 = vadd.f32 1.0, %v2993_v8 }
0x1442   :  { %v3110_v45 = vadd.f32 1.4214138, %v3104_v39  ;;  %v3061_v22 = vmul.f32 %v3969_v53, %v2998_v2  ;;  %v3053_v52 = vsel %vm3052_vm13, %v3967_v1, %v3049_v33  ;;  %vm3066_vm2 = vweird.f32 %v3969_v53 }
0x1443   :  { %v3058_v16 = vsel %vm3055_vm14, %v3057_v27, %v3053_v52  ;;  %3970 = vrcp.f32 %v2999_v58  ;;  %vm3067_vm4 = vmor %vm3065_vm3, %vm3066_vm2  ;;  %v3086_v26 = vand.u32 2147483648, %v2999_v58  ;;  %v3084_v39 = vand.u32 2147483647, %v2999_v58 }
0x1444   :  { %v3116_v44 = vmul.f32 %v3110_v45, %v3043_v57  ;;  %v3062_v14 = vsub.f32 1.0, %v3061_v22  ;;  %v3093_v41 = vmul.f32 1.0614054, %v3058_v16  ;;  %3972 = vpow2.f32 %v3160_v6 }
0x1445   :  { %3974 = vpow2.f32 %v3162_v32  ;;  %vm3080_vm8 = vweird.f32 %v2999_v58  ;;  %v3087_v27 = vor.u32 1.1754944e-38, %v3086_v26  ;;  %vm3085_vm9 = vcmp.eq.f32.partialorder %v3084_v39, 8.507059e+37 }
0x1446   :  { %v3122_v7 = vadd.f32 -0.28449672, %v3116_v44  ;;  %v3063_v0 = vmul.f32 %v3969_v53, %v3062_v14  ;;  %v3099_v51 = vadd.f32 -1.4531521, %v3093_v41  ;;  %v3149_v41 = vsub.f32 0.0, %v5770_v20 }
0x1448   :  { %v3128_v54 = vmul.f32 %v3122_v7, %v3043_v57  ;;  %v3064_v43 = vadd.f32 %v3969_v53, %v3063_v0  ;;  %v3105_v34 = vmul.f32 %v3099_v51, %v3058_v16  ;;  %v3155_v63 = vmul.f32 %v3149_v41, %v5770_v20 }
0x1449   :  { %v3971_v19 = vpop.eup %3970 }
0x144a   :  { %v3134_v13 = vadd.f32 0.2548296, %v3128_v54  ;;  %v3068_v30 = vsel %vm3067_vm4, %v3969_v53, %v3064_v43  ;;  %v3111_v17 = vadd.f32 1.4214138, %v3105_v34  ;;  %v3076_v61 = vmul.f32 %v3971_v19, %v2999_v58  ;;  %v3973_v35 = vpop.eup %3972 }
0x144b   :  { %v3073_v37 = vsel %vm3070_vm6, %v3072_v55, %v3068_v30  ;;  %vm3081_vm7 = vweird.f32 %v3971_v19  ;;  %v3154_v53 = vmul.f32 %v3148_v42, %v5760_v49  ;;  %v3975_v62 = vpop.eup %3974  ;;  %v2978_v49 = vsel %vm2972_vm15, 1.0, %v4042_v50 }
0x144c   :  { %v3140_v28 = vmul.f32 %v3134_v13, %v3043_v57  ;;  %v3094_v1 = vmul.f32 1.0614054, %v3073_v37  ;;  %v3117_v3 = vmul.f32 %v3111_v17, %v3058_v16  ;;  %v3077_v59 = vsub.f32 1.0, %v3076_v61  ;;  %vm3082_vm1 = vmor %vm3080_vm8, %vm3081_vm7 }
0x144d   :  { %v3164_v6 = vmul.f32 1.442695, %v3154_v53  ;;  %v2961_v17 = vmul.f32 0.5, %v5743_v60  ;;  %v3166_v32 = vmul.f32 1.442695, %v3155_v63  ;;  %v2980_v60 = vsel %vm2974_vm11, 1.0, %v4042_v50 }
0x144e   :  { %v3100_v4 = vadd.f32 -1.4531521, %v3094_v1  ;;  %v3170_v2 = vmul.f32 %v3973_v35, %v3140_v28  ;;  %v3123_v21 = vadd.f32 -0.28449672, %v3117_v3  ;;  %v3078_v36 = vmul.f32 %v3971_v19, %v3077_v59 }
0x144f   :  { %3976 = vpow2.f32 %v3164_v6  ;;  %v2962_v53 = vmul.f32 0.5, %v5754_v9 }
0x1450   :  { %v3106_v38 = vmul.f32 %v3100_v4, %v3073_v37  ;;  %v3129_v24 = vmul.f32 %v3123_v21, %v3058_v16  ;;  %v3079_v33 = vadd.f32 %v3971_v19, %v3078_v36  ;;  %v3176_v8 = vsub.f32 1.0, %v3170_v2 }
0x1451   :  { %3978 = vpow2.f32 %v3166_v32  ;;  %v2981_v36 = vsel %vm2975_vm12, 1.0, %v4042_v50 }
0x1452   :  { %v3112_v57 = vadd.f32 1.4214138, %v3106_v38  ;;  %v3135_v45 = vadd.f32 0.2548296, %v3129_v24  ;;  %v3083_v52 = vsel %vm3082_vm1, %v3971_v19, %v3079_v33  ;;  %v3182_v58 = vmul.f32 %v3176_v8, %v2978_v49 }
0x1453   :  { %v3088_v14 = vsel %vm3085_vm9, %v3087_v27, %v3083_v52  ;;  %v2960_v19 = vmul.f32 0.5, %v5732_v11 }
0x1454   :  { %v3118_v22 = vmul.f32 %v3112_v57, %v3073_v37  ;;  %v3141_v44 = vmul.f32 %v3135_v45, %v3058_v16  ;;  %v3095_v7 = vmul.f32 1.0614054, %v3088_v14  ;;  %v2979_v16 = vsel %vm2973_vm10, 1.0, %v4042_v50 }
0x1455   :  { %v3188_v34 = vadd.f32 1.0, %v3182_v58  ;;  %v3977_v1 = vpop.eup %3976  ;;  %v2963_v57 = vmul.f32 0.5, %v5764_v47 }
0x1456   :  { %v3124_v46 = vadd.f32 -0.28449672, %v3118_v22  ;;  %v3171_v25 = vmul.f32 %v3975_v62, %v3141_v44  ;;  %v3101_v5 = vadd.f32 -1.4531521, %v3095_v7 }
0x1457   :  { %v3194_v61 = vmul.f32 %v3188_v34, %v2960_v19  ;;  %v3979_v2 = vpop.eup %3978 }
0x1458   :  { %v3130_v0 = vmul.f32 %v3124_v46, %v3073_v37  ;;  %v3177_v51 = vsub.f32 1.0, %v3171_v25  ;;  %v3107_v43 = vmul.f32 %v3101_v5, %v3088_v14 }
0x145a   :  { %v3136_v54 = vadd.f32 0.2548296, %v3130_v0  ;;  %v3183_v55 = vmul.f32 %v3177_v51, %v2979_v16  ;;  %v3113_v30 = vadd.f32 1.4214138, %v3107_v43 }
0x145c   :  { %v3142_v13 = vmul.f32 %v3136_v54, %v3073_v37  ;;  %v3189_v23 = vadd.f32 1.0, %v3183_v55  ;;  %v3119_v28 = vmul.f32 %v3113_v30, %v3088_v14 }
0x145e   :  { %v3195_v3 = vmul.f32 %v3189_v23, %v2961_v17  ;;  %v3172_v42 = vmul.f32 %v3977_v1, %v3142_v13  ;;  %v3125_v20 = vadd.f32 -0.28449672, %v3119_v28 }
0x1460   :  { %v3199_v35 = vpack.c.bf16 %v3195_v3, %v3194_v61  ;;  %v3131_v4 = vmul.f32 %v3125_v20, %v3088_v14  ;;  %v3178_v37 = vsub.f32 1.0, %v3172_v42 }
0x1462   :  { %3601 = vmatmul.msk.bf16.gmra.mxu1 %vm24_vm0, %v3199_v35  ;;  %v3137_v59 = vadd.f32 0.2548296, %v3131_v4  ;;  %v3184_v21 = vmul.f32 %v3178_v37, %v2980_v60 }
0x1464   :  { %v3143_v11 = vmul.f32 %v3137_v59, %v3088_v14  ;;  %v3190_v39 = vadd.f32 1.0, %v3184_v21 }
0x1466   :  { %v3173_v26 = vmul.f32 %v3979_v2, %v3143_v11  ;;  %v3196_v33 = vmul.f32 %v3190_v39, %v2962_v53  ;;  %v3609_v39 = vld [vmem:[%s5900_s1 + $0xd0] sm:$0xf] }
0x1468   :  { %v3179_v38 = vsub.f32 1.0, %v3173_v26 }
0x146a   :  { %v3185_v24 = vmul.f32 %v3179_v38, %v2981_v36 }
0x146c   :  { %v3191_v10 = vadd.f32 1.0, %v3185_v24  ;;  %v3629_v24 = vld [vmem:[%s5900_s1 + $0xd4] sm:$0xf0] }
0x146e   :  { %v3197_v8 = vmul.f32 %v3191_v10, %v2963_v57  ;;  %v3610_v57 = vor.u32 %v3629_v24, %v3609_v39 }
0x1470   :  { %v3200_v45 = vpack.c.bf16 %v3197_v8, %v3196_v33  ;;  %3430 = vmatpush.bf16.msra.mxu2 %v3610_v57  ;;  %v3605_v8 = vld [vmem:[%s5900_s1 + $0xc0] sm:$0xf] }
0x1472   :  { %3602 = vmatmul.msk.bf16.gmra.mxu1 %vm24_vm0, %v3200_v45  ;;  %v3628_v45 = vld [vmem:[%s5900_s1 + $0xc4] sm:$0xf0] }
0x14aa   :  { %v3219_v27 = vpop.f32.mrf.mxu1 }
0x14ab   :  { %v3234_v22 = vadd.f32 %v3219_v27, %v5608_v12  ;;  %v3606_v27 = vor.u32 %v3628_v45, %v3605_v8 }
0x14ad   :  { %v3240_v50 = vadd.f32 %v4004_v15, %v3234_v22  ;;  %3431 = vmatpush.bf16.msra.mxu2 %v3606_v27 }
0x14af   :  { %v3248_v52 = vsel %vm250_vm5, %v3240_v50, 0.0 }
0x14b0   :  { %3249 = vadd.xlane.f32.xlu2 %v3248_v52 }
0x14b2   :  { %v3221_v9 = vpop.f32.mrf.mxu1 }
0x14b3   :  { %v3235_v47 = vadd.f32 %v3221_v9, %v5613_v40 }
0x14b5   :  { %v3241_v62 = vadd.f32 %v4004_v15, %v3235_v47 }
0x14b7   :  { %v3251_v44 = vsel %vm250_vm5, %v3241_v62, 0.0 }
0x14b8   :  { %3252 = vadd.xlane.f32.xlu1 %v3251_v44 }
0x14df   :  { %v3224_v6 = vpop.f32.mrf.mxu1 }
0x14e0   :  { %v3236_v14 = vadd.f32 %v3224_v6, %v5620_v18 }
0x14e2   :  { %v3242_v41 = vadd.f32 %v4004_v15, %v3236_v14 }
0x14e4   :  { %v3254_v12 = vsel %vm250_vm5, %v3242_v41, 0.0 }
0x14e5   :  { %3255 = vadd.xlane.f32.xlu0 %v3254_v12 }
0x14e7   :  { %v3226_v49 = vpop.f32.mrf.mxu1 }
0x14e8   :  { %v3237_v46 = vadd.f32 %v3226_v49, %v5626_v29 }
0x14ea   :  { %v3243_v7 = vadd.f32 %v4004_v15, %v3237_v46 }
0x14ec   :  { %v3257_v58 = vsel %vm250_vm5, %v3243_v7, 0.0 }
0x14ed   :  { %3258 = vadd.xlane.f32.xlu2 %v3257_v58  ;;  %v5861_v58 = vld [vmem:[%s5901_s2 + $0xc] ss:$0 sm:$0xff] }
0x14ef   :  { %v3229_v25 = vpop.f32.mrf.mxu1 }
0x14f0   :  { %v3238_v40 = vadd.f32 %v3229_v25, %v5632_v31 }
0x14f2   :  { %v3244_v0 = vadd.f32 %v4004_v15, %v3238_v40 }
0x14f4   :  { %v3260_v5 = vsel %vm250_vm5, %v3244_v0, 0.0 }
0x14f5   :  { %3261 = vadd.xlane.f32.xlu1 %v3260_v5  ;;  %v5867_v5 = vld [vmem:[%s5901_s2 + $0xd] ss:$0 sm:$0xff] }
0x14f7   :  { %v3231_v51 = vpop.f32.mrf.mxu1 }
0x14f8   :  { %v3239_v18 = vadd.f32 %v3231_v51, %v5637_v56 }
0x14fa   :  { %v3245_v63 = vadd.f32 %v4004_v15, %v3239_v18 }
0x14fc   :  { %v3263_v16 = vsel %vm250_vm5, %v3245_v63, 0.0 }
0x14fd   :  { %3264 = vadd.xlane.f32.xlu0 %v3263_v16 }
0x1523   :  { %v3250_v54 = vpop.xlane.xlu2 %3249 }
0x1524   :  { %v3266_v29 = vmul.f32 %v3250_v54, %v4194_v48 }
0x1526   :  { %v5809_v43 = vsub.f32 %v3240_v50, %v3266_v29 }
0x1528   :  { %v3278_v34 = vmul.f32 %v5809_v43, %v5809_v43 }
0x152a   :  { %v3284_v31 = vsel %vm250_vm5, %v3278_v34, 0.0 }
0x152b   :  { %v3253_v55 = vpop.xlane.xlu1 %3252  ;;  %3285 = vadd.xlane.f32.xlu2 %v3284_v31 }
0x152c   :  { %v3267_v13 = vmul.f32 %v3253_v55, %v4194_v48 }
0x152e   :  { %v5815_v30 = vsub.f32 %v3241_v62, %v3267_v13 }
0x1530   :  { %v3279_v56 = vmul.f32 %v5815_v30, %v5815_v30 }
0x1532   :  { %v3287_v19 = vsel %vm250_vm5, %v3279_v56, 0.0 }
0x1533   :  { %3288 = vadd.xlane.f32.xlu1 %v3287_v19 }
0x1558   :  { %v3256_v17 = vpop.xlane.xlu0 %3255 }
0x1559   :  { %v3268_v23 = vmul.f32 %v3256_v17, %v4194_v48 }
0x155b   :  { %v5821_v32 = vsub.f32 %v3242_v41, %v3268_v23 }
0x155d   :  { %v3280_v28 = vmul.f32 %v5821_v32, %v5821_v32 }
0x155f   :  { %v3290_v1 = vsel %vm250_vm5, %v3280_v28, 0.0 }
0x1560   :  { %v3259_v61 = vpop.xlane.xlu2 %3258  ;;  %3291 = vadd.xlane.f32.xlu0 %v3290_v1 }
0x1561   :  { %v3269_v3 = vmul.f32 %v3259_v61, %v4194_v48 }
0x1563   :  { %v5827_v42 = vsub.f32 %v3243_v7, %v3269_v3 }
0x1565   :  { %v3281_v20 = vmul.f32 %v5827_v42, %v5827_v42 }
0x1567   :  { %v3293_v35 = vsel %vm250_vm5, %v3281_v20, 0.0 }
0x1568   :  { %3294 = vadd.xlane.f32.xlu2 %v3293_v35  ;;  %v3262_v4 = vpop.xlane.xlu1 %3261 }
0x1569   :  { %v3270_v37 = vmul.f32 %v3262_v4, %v4194_v48 }
0x156b   :  { %v5833_v59 = vsub.f32 %v3244_v0, %v3270_v37 }
0x156d   :  { %v3282_v11 = vmul.f32 %v5833_v59, %v5833_v59 }
0x156f   :  { %v3296_v2 = vsel %vm250_vm5, %v3282_v11, 0.0 }
0x1570   :  { %3297 = vadd.xlane.f32.xlu1 %v3296_v2  ;;  %v3265_v60 = vpop.xlane.xlu0 %3264 }
0x1571   :  { %v3271_v21 = vmul.f32 %v3265_v60, %v4194_v48 }
0x1573   :  { %v5839_v26 = vsub.f32 %v3245_v63, %v3271_v21 }
0x1575   :  { %v3283_v38 = vmul.f32 %v5839_v26, %v5839_v26 }
0x1577   :  { %v3299_v36 = vsel %vm250_vm5, %v3283_v38, 0.0 }
0x1578   :  { %3300 = vadd.xlane.f32.xlu0 %v3299_v36 }
0x159e   :  { %v3286_v53 = vpop.xlane.xlu2 %3285 }
0x159f   :  { %v3302_v10 = vmul.f32 %v3286_v53, %v4194_v48 }
0x15a1   :  { %v3308_v33 = vadd.f32 1e-05, %v3302_v10 }
0x15a3   :  { %3980 = vrsqrt.f32 %v3308_v33  ;;  %vm3320_vm13 = vweird.f32 %v3308_v33 }
0x15a6   :  { %v3289_v22 = vpop.xlane.xlu1 %3288 }
0x15a7   :  { %v3303_v15 = vmul.f32 %v3289_v22, %v4194_v48 }
0x15a9   :  { %v3981_v50 = vpop.eup %3980  ;;  %v3309_v52 = vadd.f32 1e-05, %v3303_v15 }
0x15aa   :  { %v3315_v9 = vmul.f32 %v3981_v50, %v3308_v33  ;;  %vm3321_vm0 = vweird.f32 %v3981_v50 }
0x15ab   :  { %3982 = vrsqrt.f32 %v3309_v52  ;;  %vm3322_vm14 = vmor %vm3320_vm13, %vm3321_vm0  ;;  %vm3330_vm3 = vweird.f32 %v3309_v52 }
0x15ac   :  { %v3316_v47 = vmul.f32 %v3981_v50, %v3315_v9 }
0x15ae   :  { %v3317_v62 = vmul.f32 0.5, %v3316_v47 }
0x15b0   :  { %v3318_v44 = vsub.f32 1.5, %v3317_v62 }
0x15b1   :  { %v3983_v6 = vpop.eup %3982 }
0x15b2   :  { %v3319_v14 = vmul.f32 %v3981_v50, %v3318_v44  ;;  %v3325_v41 = vmul.f32 %v3983_v6, %v3309_v52  ;;  %vm3331_vm2 = vweird.f32 %v3983_v6 }
0x15b3   :  { %vm3332_vm4 = vmor %vm3330_vm3, %vm3331_vm2 }
0x15b4   :  { %v3326_v12 = vmul.f32 %v3983_v6, %v3325_v41  ;;  %v3323_v49 = vsel %vm3322_vm14, %v3981_v50, %v3319_v14 }
0x15b5   :  { %v3374_v25 = vmul.f32 %v3323_v49, %v5809_v43 }
0x15b6   :  { %v3327_v46 = vmul.f32 0.5, %v3326_v12 }
0x15b7   :  { %v3381_v51 = vmul.f32 %v5861_v58, %v3374_v25 }
0x15b8   :  { %v3328_v7 = vsub.f32 1.5, %v3327_v46 }
0x15b9   :  { %v3388_v16 = vadd.f32 %v5867_v5, %v3381_v51 }
0x15ba   :  { %v3329_v40 = vmul.f32 %v3983_v6, %v3328_v7 }
0x15bc   :  { %v3333_v0 = vsel %vm3332_vm4, %v3983_v6, %v3329_v40 }
0x15bd   :  { %v3375_v18 = vmul.f32 %v3333_v0, %v5815_v30 }
0x15bf   :  { %v3382_v63 = vmul.f32 %v5861_v58, %v3375_v18 }
0x15c1   :  { %v3389_v54 = vadd.f32 %v5867_v5, %v3382_v63 }
0x15c3   :  { %v3398_v29 = vpack.c.bf16 %v3389_v54, %v3388_v16 }
0x15c5   :  { %3611 = vmatmul.msk.bf16.vlgmr.msra.gmra.mxu2 %vm250_vm5, %v3398_v29 }
0x15d3   :  { %v3292_v43 = vpop.xlane.xlu0 %3291 }
0x15d4   :  { %v3304_v34 = vmul.f32 %v3292_v43, %v4194_v48 }
0x15d6   :  { %v3310_v31 = vadd.f32 1e-05, %v3304_v34 }
0x15d8   :  { %3984 = vrsqrt.f32 %v3310_v31  ;;  %vm3340_vm7 = vweird.f32 %v3310_v31 }
0x15db   :  { %v3295_v55 = vpop.xlane.xlu2 %3294 }
0x15dc   :  { %v3305_v13 = vmul.f32 %v3295_v55, %v4194_v48 }
0x15de   :  { %v3985_v56 = vpop.eup %3984  ;;  %v3311_v19 = vadd.f32 1e-05, %v3305_v13 }
0x15df   :  { %v3335_v30 = vmul.f32 %v3985_v56, %v3310_v31  ;;  %vm3341_vm6 = vweird.f32 %v3985_v56 }
0x15e0   :  { %3986 = vrsqrt.f32 %v3311_v19  ;;  %vm3342_vm8 = vmor %vm3340_vm7, %vm3341_vm6  ;;  %vm3350_vm1 = vweird.f32 %v3311_v19 }
0x15e1   :  { %v3336_v17 = vmul.f32 %v3985_v56, %v3335_v30 }
0x15e3   :  { %v3337_v23 = vmul.f32 0.5, %v3336_v17  ;;  %v3298_v28 = vpop.xlane.xlu1 %3297 }
0x15e4   :  { %v3306_v61 = vmul.f32 %v3298_v28, %v4194_v48 }
0x15e5   :  { %v3338_v1 = vsub.f32 1.5, %v3337_v23 }
0x15e6   :  { %v3987_v3 = vpop.eup %3986  ;;  %v3312_v4 = vadd.f32 1e-05, %v3306_v61 }
0x15e7   :  { %v3339_v20 = vmul.f32 %v3985_v56, %v3338_v1  ;;  %v3345_v35 = vmul.f32 %v3987_v3, %v3311_v19  ;;  %vm3351_vm15 = vweird.f32 %v3987_v3 }
0x15e8   :  { %3988 = vrsqrt.f32 %v3312_v4  ;;  %vm3352_vm9 = vmor %vm3350_vm1, %vm3351_vm15  ;;  %vm3360_vm11 = vweird.f32 %v3312_v4 }
0x15e9   :  { %v3346_v37 = vmul.f32 %v3987_v3, %v3345_v35  ;;  %v3343_v11 = vsel %vm3342_vm8, %v3985_v56, %v3339_v20 }
0x15ea   :  { %v3376_v36 = vmul.f32 %v3343_v11, %v5821_v32 }
0x15eb   :  { %v3347_v2 = vmul.f32 0.5, %v3346_v37  ;;  %v3301_v60 = vpop.xlane.xlu0 %3300 }
0x15ec   :  { %v3307_v38 = vmul.f32 %v3301_v60, %v4194_v48  ;;  %v3383_v45 = vmul.f32 %v5861_v58, %v3376_v36 }
0x15ed   :  { %v3348_v21 = vsub.f32 1.5, %v3347_v2 }
0x15ee   :  { %v3989_v39 = vpop.eup %3988  ;;  %v3313_v53 = vadd.f32 1e-05, %v3307_v38  ;;  %v3390_v48 = vadd.f32 %v5867_v5, %v3383_v45 }
0x15ef   :  { %v3349_v24 = vmul.f32 %v3987_v3, %v3348_v21  ;;  %v3355_v57 = vmul.f32 %v3989_v39, %v3312_v4  ;;  %vm3361_vm10 = vweird.f32 %v3989_v39 }
0x15f0   :  { %3990 = vrsqrt.f32 %v3313_v53  ;;  %vm3362_vm12 = vmor %vm3360_vm11, %vm3361_vm10  ;;  %vm3370_vm13 = vweird.f32 %v3313_v53 }
0x15f1   :  { %v3353_v10 = vsel %vm3352_vm9, %v3987_v3, %v3349_v24  ;;  %v3356_v8 = vmul.f32 %v3989_v39, %v3355_v57 }
0x15f2   :  { %v3377_v33 = vmul.f32 %v3353_v10, %v5827_v42 }
0x15f3   :  { %v3357_v27 = vmul.f32 0.5, %v3356_v8 }
0x15f4   :  { %v3384_v22 = vmul.f32 %v5861_v58, %v3377_v33 }
0x15f5   :  { %v3358_v15 = vsub.f32 1.5, %v3357_v27 }
0x15f6   :  { %v3391_v32 = vadd.f32 %v5867_v5, %v3384_v22  ;;  %v3991_v50 = vpop.eup %3990 }
0x15f7   :  { %v3359_v52 = vmul.f32 %v3989_v39, %v3358_v15  ;;  %v3365_v9 = vmul.f32 %v3991_v50, %v3313_v53  ;;  %vm3371_vm0 = vweird.f32 %v3991_v50 }
0x15f8   :  { %v3399_v47 = vpack.c.bf16 %v3391_v32, %v3390_v48  ;;  %vm3372_vm14 = vmor %vm3370_vm13, %vm3371_vm0 }
0x15f9   :  { %v3366_v62 = vmul.f32 %v3991_v50, %v3365_v9  ;;  %v3363_v42 = vsel %vm3362_vm12, %v3989_v39, %v3359_v52 }
0x15fa   :  { %3612 = vmatmul.msk.bf16.gmra.mxu2 %vm250_vm5, %v3399_v47  ;;  %v3378_v14 = vmul.f32 %v3363_v42, %v5833_v59  ;;  %v3663_v59 = vld [vmem:[%s5901_s2 + $0xe] ss:$0 sm:$0xff]  ;;  %s3460_s2 = sshll.u32 %s5902_s3, 4  ;;  %s3461_s2 = int_to_ptr.hbm [resolvable:$true] %s3460_s2 }
0x15fb   :  { %v3367_v44 = vmul.f32 0.5, %v3366_v62 }
0x15fc   :  { %v3385_v46 = vmul.f32 %v5861_v58, %v3378_v14 }
0x15fd   :  { %v3368_v6 = vsub.f32 1.5, %v3367_v44 }
0x15fe   :  { %v3392_v25 = vadd.f32 %v5867_v5, %v3385_v46 }
0x15ff   :  { %v3369_v41 = vmul.f32 %v3991_v50, %v3368_v6 }
0x1601   :  { %v3373_v12 = vsel %vm3372_vm14, %v3991_v50, %v3369_v41 }
0x1602   :  { %v3379_v49 = vmul.f32 %v3373_v12, %v5839_v26 }
0x1604   :  { %v3386_v7 = vmul.f32 %v5861_v58, %v3379_v49 }
0x1606   :  { %v3393_v40 = vadd.f32 %v5867_v5, %v3386_v7 }
0x1608   :  { %v3400_v0 = vpack.c.bf16 %v3393_v40, %v3392_v25 }
0x160a   :  { %3613 = vmatmul.msk.bf16.gmra.mxu2 %vm250_vm5, %v3400_v0 }
0x1648   :  { %v3433_v51 = vpop.f32.mrf.mxu2 }
0x1649   :  { %v3434_v18 = vadd.f32 %v3663_v59, %v3433_v51 }
0x164b   :  { %3448 = vst [vmem:[#allocation2] sm:$0xff] %v3434_v18 }
0x1650   :  { %v3435_v63 = vpop.f32.mrf.mxu2 }
0x1651   :  { %v3436_v26 = vadd.f32 %v3663_v59, %v3435_v63 }
0x1653   :  { %3449 = vst [vmem:[#allocation2 + $0x8] sm:$0xff] %v3436_v26 }
0x167d   :  { %v3438_v16 = vpop.f32.mrf.mxu2 }
0x167e   :  { %v3439_v54 = vadd.f32 %v3663_v59, %v3438_v16 }
0x1680   :  { %3450 = vst [vmem:[#allocation2 + $0x10] sm:$0xff] %v3439_v54 }
0x1685   :  { %v3440_v58 = vpop.f32.mrf.mxu2 }
0x1686   :  { %v3441_v29 = vadd.f32 %v3663_v59, %v3440_v58 }
0x1688   :  { %3451 = vst [vmem:[#allocation2 + $0x18] sm:$0xff] %v3441_v29 }
0x168d   :  { %v3443_v5 = vpop.f32.mrf.mxu2 }
0x168e   :  { %v3444_v43 = vadd.f32 %v3663_v59, %v3443_v5 }
0x1690   :  { %3452 = vst [vmem:[#allocation2 + $0x20] sm:$0xff] %v3444_v43 }
0x1695   :  { %v3445_v34 = vpop.f32.mrf.mxu2 }
0x1696   :  { %v3446_v31 = vadd.f32 %v3663_v59, %v3445_v34 }
0x1698   :  { %3453 = vst [vmem:[#allocation2 + $0x28] sm:$0xff] %v3446_v31 }
0x1699   :  { %3466 = dma.vmem_to_hbm [thread:$0]  %s3459_s25, 768, %s3461_s2, [#allocation3], %s4044_s4, %s4044_s4, %s4045_s20  }
0x169a   :  { %4029 = dma.done.wait [#allocation3], 768  }
0x169b   :  { %4030 = vsyncadd [#allocation3], 4294966528 }
0x169c   :  { %3471 = vsyncpa [#allocation3], 1 }

</bundles_post_ra>
